<compile_context>
chip_gen: v7x
topology: tpu7x:2x2x1
jax: 0.10.0
libtpu: 0.0.40
codegen_flags: <defaults>
</compile_context>

<pallas_src>
import functools

import jax
import jax.numpy as jnp
from jax.experimental import pallas as pl
from jax.experimental.pallas import tpu as pltpu

# Architecture constants (fixed by AtariA2C with a 36x36 input -> 1x1 conv3 map).
_A1 = 8                 # act1 map is 8x8 (64 unique conv1 output positions)
_PIX2 = 9               # conv2 output pixels (3x3)
_K2SQ = 16              # conv2 kernel positions (4x4)
_C1_CHUNK_ROWS = 512    # conv1 GEMM row chunk (bounds the f32 live value to 64 KiB)


# ----------------------------------------------------------------------------
# Fused Pallas kernel: conv1 -> conv2 -> conv3 -> (policy ‖ value) heads
# ----------------------------------------------------------------------------
def _make_fused_kernel(npb):
    """Builds the kernel for one batch block of `npb` samples (npb % 8 == 0)."""
    rows_total = _A1 * _A1 * npb            # 64*npb conv1 patch rows per block
    c1_rows = min(_C1_CHUNK_ROWS, rows_total)
    n_c1 = rows_total // c1_rows            # exact: 64*npb is a multiple of 512

    def kernel(p_ref, w1_ref, b1_ref, w2_ref, b2_ref, w3_ref, b3_ref,
               wh1_ref, bh1_ref, wh2_ref, bh2_ref,
               o_ref, y1_ref, p2_ref, y2_ref):
        # ---- conv1: one GEMM over all 64 unique act1 positions ------------
        # p_ref rows ordered (ih1, iw1, sample); cols (c, kh1, kw1).
        w1 = w1_ref[...]                    # (C*64, 32) bf16, /256 folded in
        b1 = b1_ref[...]                    # (1, 32) f32
        for t in range(n_c1):
            r0 = t * c1_rows
            y = jnp.dot(p_ref[0, r0:r0 + c1_rows, :], w1,
                        preferred_element_type=jnp.float32)
            y1_ref[r0:r0 + c1_rows, :] = jnp.maximum(y + b1, 0.0).astype(jnp.bfloat16)

        # ---- conv2: regroup VMEM-resident y1 into big-K patches, 3 GEMMs --
        # For each conv2 output row oh2, assemble a (3*npb, 512) slab whose
        # columns are (kh2, kw2, cin) and rows are (ow2, sample), then one
        # (3*npb,512)@(512,64) MXU GEMM (K=512 instead of 16 K=32 dots).
        w2 = w2_ref[...]                    # (512, 64) bf16
        b2 = b2_ref[...]                    # (1, 64) f32
        for oh2 in range(3):
            for ow2 in range(3):
                for kh2 in range(4):
                    for kw2 in range(4):
                        a = (2 * oh2 + kh2) * _A1 + (2 * ow2 + kw2)   # act1 pixel
                        col = (kh2 * 4 + kw2) * 32
                        p2_ref[ow2 * npb:(ow2 + 1) * npb, col:col + 32] = (
                            y1_ref[a * npb:(a + 1) * npb, :])
            y2 = jnp.dot(p2_ref[...], w2, preferred_element_type=jnp.float32)
            y2_ref[oh2 * 3 * npb:(oh2 + 1) * 3 * npb, :] = (
                jnp.maximum(y2 + b2, 0.0).astype(jnp.bfloat16))

        # ---- conv3: 3x3 kernel on a 3x3 map == 9-term per-pixel FC --------
        # (small FLOP share; kept as an accumulation over contiguous row slabs)
        acc3 = jnp.zeros((npb, 64), jnp.float32)
        for p in range(_PIX2):
            acc3 = acc3 + jnp.dot(y2_ref[p * npb:(p + 1) * npb, :], w3_ref[p],
                                  preferred_element_type=jnp.float32)
        flat = jnp.maximum(acc3 + b3_ref[...], 0.0).astype(jnp.bfloat16)     # (npb, 64)

        # ---- heads (policy ‖ value fused), chunked over the 1024 hidden ---
        out = jnp.zeros((npb, 128), jnp.float32)
        for j in range(4):
            c0 = j * 256
            h = jnp.dot(flat, wh1_ref[:, c0:c0 + 256],
                        preferred_element_type=jnp.float32)
            h = jnp.maximum(h + bh1_ref[:, c0:c0 + 256], 0.0).astype(jnp.bfloat16)
            out = out + jnp.dot(h, wh2_ref[c0:c0 + 256, :],
                                preferred_element_type=jnp.float32)
        o_ref[...] = out + bh2_ref[...]                                      # (npb, 128)

    return kernel


# ----------------------------------------------------------------------------
# Wrapper-side dedup'd patch gather (bf16, 64 unique act1 positions per sample)
# ----------------------------------------------------------------------------
def _build_conv1_patches(x, nb, npb):
    """x: (N, C, 36, 36) -> (nb, 64*npb, C*64) bf16.

    Row ((ih1*8+iw1)*npb + q) = conv1 im2col patch of sample q at act1 position
    (ih1, iw1); columns ordered (c, kh1, kw1).  Padded samples are zero.
    """
    N, C, H, W = x.shape
    xb = x.astype(jnp.bfloat16)                       # exact for 0..255 frames
    xb = jnp.pad(xb, ((0, nb * npb - N), (0, 0), (0, 0), (0, 0)))
    xb = xb.reshape(nb, npb, C, H, W)
    a1 = jnp.arange(_A1)
    k1 = jnp.arange(8)
    idx = 4 * a1[:, None] + k1[None, :]               # (act1 coord, kernel offset)
    g = xb[:, :, :, idx, :]                           # (nb, q, C, ih1, kh1, W)
    g = g[..., idx]                                   # (nb, q, C, ih1, kh1, iw1, kw1)
    g = g.transpose(0, 3, 5, 1, 2, 4, 6)              # (nb, ih1, iw1, q, c, kh1, kw1)
    return g.reshape(nb, _A1 * _A1 * npb, C * 64)


# ----------------------------------------------------------------------------
# One-time weight packing (torch layouts -> MXU-ready (K, N) bf16 matrices)
# ----------------------------------------------------------------------------
def pack_params(params, n_actions):
    f32 = jnp.float32
    bf16 = jnp.bfloat16
    assert params["p1_w"].shape[1] == 64, "fused kernel assumes conv_out == 64 (1x1 conv3 map)"
    assert n_actions + 1 <= 128
    # conv1: fold the x/256 prescale into the weights; rows (c, kh, kw).
    w1p = (params["c1_w"].reshape(32, -1).T / 256.0).astype(bf16)            # (C*64, 32)
    b1p = params["c1_b"].reshape(1, 32).astype(f32)
    # conv2 packed as one big-K matrix with rows ordered (kh2, kw2, cin).
    w2p = jnp.transpose(params["c2_w"], (2, 3, 1, 0)).reshape(_K2SQ * 32, 64).astype(bf16)
    b2p = params["c2_b"].reshape(1, 64).astype(f32)
    # conv3 packed per kernel position as (cin, cout) matrices.
    w3p = jnp.transpose(params["c3_w"], (2, 3, 1, 0)).reshape(9, 64, 64).astype(bf16)
    b3p = params["c3_b"].reshape(1, 64).astype(f32)
    # heads: concatenate policy‖value hidden layer; block-diagonal output layer
    # zero-padded to 128 lanes so the kernel output is a full (npb,128) tile.
    wh1 = jnp.concatenate([params["p1_w"].T, params["v1_w"].T], axis=1).astype(bf16)   # (64, 1024)
    bh1 = jnp.concatenate([params["p1_b"], params["v1_b"]]).reshape(1, 1024).astype(f32)
    wh2 = jnp.zeros((1024, 128), f32)
    wh2 = wh2.at[:512, :n_actions].set(params["p2_w"].T)
    wh2 = wh2.at[512:, n_actions].set(params["v2_w"][0])
    wh2 = wh2.astype(bf16)
    bh2 = jnp.zeros((1, 128), f32)
    bh2 = bh2.at[0, :n_actions].set(params["p2_b"])
    bh2 = bh2.at[0, n_actions].set(params["v2_b"][0])
    return dict(w1=w1p, b1=b1p, w2=w2p, b2=b2p, w3=w3p, b3=b3p,
                wh1=wh1, bh1=bh1, wh2=wh2, bh2=bh2)


def _const_spec(a):
    nd = a.ndim
    return pl.BlockSpec(a.shape, lambda i, nd=nd: (0,) * nd)


# ----------------------------------------------------------------------------
# Forward pass
# ----------------------------------------------------------------------------
def atari_a2c_forward(x, packed, n_actions, block_samples=None):
    N, C, H, W = x.shape
    # Sanity: the conv chain must end at a 1x1 map (e.g. 36x36 input).
    oh1 = (H - 8) // 4 + 1
    oh2 = (oh1 - 4) // 2 + 1
    oh3 = (oh2 - 3) // 1 + 1
    assert (oh1, oh2, oh3) == (8, 3, 1), "fused kernel specialised to a 1x1 conv3 map"

    if block_samples is None:
        # Up to 64 samples per grid step: amortizes the ~0.35us per-step overhead
        # and keeps all GEMMs at M >= 64; cdiv(N,16) keeps NB >= 2 for batch > 8
        # so both v7x TensorCores get work.  Total VMEM ~7 MiB at npb=64.
        block_samples = min(64, 8 * pl.cdiv(N, 16))
    npb = max(8, (block_samples // 8) * 8)
    NB = pl.cdiv(N, npb)

    P = _build_conv1_patches(x, NB, npb)              # (NB, 64*npb, C*64) bf16

    weight_args = (packed["w1"], packed["b1"], packed["w2"], packed["b2"],
                   packed["w3"], packed["b3"], packed["wh1"], packed["bh1"],
                   packed["wh2"], packed["bh2"])

    in_specs = [pl.BlockSpec((1, _A1 * _A1 * npb, C * 64), lambda i: (i, 0, 0))]
    in_specs += [_const_spec(a) for a in weight_args]

    out = pl.pallas_call(
        _make_fused_kernel(npb),
        out_shape=jax.ShapeDtypeStruct((NB * npb, 128), jnp.float32),
        grid=(NB,),
        in_specs=in_specs,
        out_specs=pl.BlockSpec((npb, 128), lambda i: (i, 0)),
        scratch_shapes=[
            pltpu.VMEM((_A1 * _A1 * npb, 32), jnp.bfloat16),   # y1 (act1 activations)
            pltpu.VMEM((3 * npb, _K2SQ * 32), jnp.bfloat16),   # conv2 big-K patch slab
            pltpu.VMEM((_PIX2 * npb, 64), jnp.bfloat16),       # y2 (conv2 activations)
        ],
        compiler_params=pltpu.CompilerParams(
            dimension_semantics=("parallel",),
            vmem_limit_bytes=32 * 1024 * 1024),
    )(P, *weight_args)

    # Padded batch rows carry bias-driven garbage; discard them here.
    policy = out[:N, :n_actions]
    value = out[:N, n_actions:n_actions + 1]
    return policy, value


# ----------------------------------------------------------------------------
# Pure-JAX reference for validation
# ----------------------------------------------------------------------------
def reference_forward(x, params):
    fx = x.astype(jnp.float32) / 256.0

    def conv(h, w, b, s):
        y = jax.lax.conv_general_dilated(
            h, w, (s, s), "VALID", dimension_numbers=("NCHW", "OIHW", "NCHW"))
        return jnp.maximum(y + b[None, :, None, None], 0.0)

    h = conv(fx, params["c1_w"], params["c1_b"], 4)
    h = conv(h, params["c2_w"], params["c2_b"], 2)
    h = conv(h, params["c3_w"], params["c3_b"], 1)
    flat = h.reshape(x.shape[0], -1)
    ph = jnp.maximum(flat @ params["p1_w"].T + params["p1_b"], 0.0)
    policy = ph @ params["p2_w"].T + params["p2_b"]
    vh = jnp.maximum(flat @ params["v1_w"].T + params["v1_b"], 0.0)
    value = vh @ params["v2_w"].T + params["v2_b"]
    return policy, value


# ----------------------------------------------------------------------------
# Deterministic parameter init (torch shapes: Conv2d (Cout,Cin,k,k), Linear (out,in))
# ----------------------------------------------------------------------------
def init_params(key, in_channels, conv_out, n_actions):
    ks = jax.random.split(key, 14)
    f = lambda k, shape, s=0.05: (s * jax.random.normal(k, shape)).astype(jnp.float32)
    return {
        "c1_w": f(ks[0], (32, in_channels, 8, 8)),
        "c1_b": f(ks[1], (32,)),
        "c2_w": f(ks[2], (64, 32, 4, 4)),
        "c2_b": f(ks[3], (64,)),
        "c3_w": f(ks[4], (64, 64, 3, 3)),
        "c3_b": f(ks[5], (64,)),
        "p1_w": f(ks[6], (512, conv_out)),
        "p1_b": f(ks[7], (512,)),
        "p2_w": f(ks[8], (n_actions, 512)),
        "p2_b": f(ks[9], (n_actions,)),
        "v1_w": f(ks[10], (512, conv_out)),
        "v1_b": f(ks[11], (512,)),
        "v2_w": f(ks[12], (1, 512)),
        "v2_b": f(ks[13], (1,)),
    }


if __name__ == "__main__":
    # Atari-like input: batch=2, channels=4, spatial=36 (36 -> 8 -> 3 -> 1, conv_out=64)
    batch, channels, spatial, n_actions = 2, 4, 36, 6
    conv_out = 64

    key = jax.random.PRNGKey(0)
    k_x, k_p = jax.random.split(key)
    x = jax.random.randint(k_x, (batch, channels, spatial, spatial), 0, 256).astype(jnp.float32)
    params = init_params(k_p, channels, conv_out, n_actions)
    packed = pack_params(params, n_actions)          # one-time weight packing

    fwd = jax.jit(functools.partial(atari_a2c_forward, n_actions=n_actions))
    policy, value = fwd(x, packed)
    policy = jax.block_until_ready(policy)
    value = jax.block_until_ready(value)

    assert policy.shape == (batch, n_actions), policy.shape
    assert value.shape == (batch, 1), value.shape

    ref_policy, ref_value = reference_forward(x, params)
    assert jnp.allclose(policy, ref_policy, rtol=2e-2, atol=2e-2), "policy mismatch"
    assert jnp.allclose(value, ref_value, rtol=2e-2, atol=2e-2), "value mismatch"

    print("KERNEL_OK")
</pallas_src>

<mosaic_0001>
module attributes {stable_mosaic.version = 11 : i64} {
  func.func @kernel(%arg0: i32, %arg1: memref<1x512x256xbf16, #tpu.memory_space<vmem>>, %arg2: memref<256x32xbf16, #tpu.memory_space<vmem>>, %arg3: memref<1x32xf32, #tpu.memory_space<vmem>>, %arg4: memref<512x64xbf16, #tpu.memory_space<vmem>>, %arg5: memref<1x64xf32, #tpu.memory_space<vmem>>, %arg6: memref<9x64x64xbf16, #tpu.memory_space<vmem>>, %arg7: memref<1x64xf32, #tpu.memory_space<vmem>>, %arg8: memref<64x1024xbf16, #tpu.memory_space<vmem>>, %arg9: memref<1x1024xf32, #tpu.memory_space<vmem>>, %arg10: memref<1024x128xbf16, #tpu.memory_space<vmem>>, %arg11: memref<1x128xf32, #tpu.memory_space<vmem>>, %arg12: memref<8x128xf32, #tpu.memory_space<vmem>>, %arg13: memref<512x32xbf16, #tpu.memory_space<vmem>>, %arg14: memref<24x512xbf16, #tpu.memory_space<vmem>>, %arg15: memref<72x64xbf16, #tpu.memory_space<vmem>>) attributes {dimension_semantics = [#tpu.dimension_semantics<parallel>], iteration_bounds = array<i64: 1>, scalar_prefetch = 0 : i64, scratch_operands = 3 : i64, tpu.core_type = #tpu.core_type<tc>, window_params = [{transform_indices = @transform_0, window_bounds = array<i64: 1, 512, 256>}, {pipeline_mode = #tpu.pipeline_mode<synchronous>, transform_indices = @transform_1, window_bounds = array<i64: 256, 32>}, {pipeline_mode = #tpu.pipeline_mode<synchronous>, transform_indices = @transform_2, window_bounds = array<i64: 1, 32>}, {pipeline_mode = #tpu.pipeline_mode<synchronous>, transform_indices = @transform_3, window_bounds = array<i64: 512, 64>}, {pipeline_mode = #tpu.pipeline_mode<synchronous>, transform_indices = @transform_4, window_bounds = array<i64: 1, 64>}, {pipeline_mode = #tpu.pipeline_mode<synchronous>, transform_indices = @transform_5, window_bounds = array<i64: 9, 64, 64>}, {pipeline_mode = #tpu.pipeline_mode<synchronous>, transform_indices = @transform_6, window_bounds = array<i64: 1, 64>}, {pipeline_mode = #tpu.pipeline_mode<synchronous>, transform_indices = @transform_7, window_bounds = array<i64: 64, 1024>}, {pipeline_mode = #tpu.pipeline_mode<synchronous>, transform_indices = @transform_8, window_bounds = array<i64: 1, 1024>}, {pipeline_mode = #tpu.pipeline_mode<synchronous>, transform_indices = @transform_9, window_bounds = array<i64: 1024, 128>}, {pipeline_mode = #tpu.pipeline_mode<synchronous>, transform_indices = @transform_10, window_bounds = array<i64: 1, 128>}, {transform_indices = @transform_11, window_bounds = array<i64: 8, 128>}]} {
    %c0 = arith.constant 0 : index
    %c0_0 = arith.constant 0 : index
    %0 = vector.load %arg2[%c0, %c0_0] : memref<256x32xbf16, #tpu.memory_space<vmem>>, vector<256x32xbf16>
    %c0_1 = arith.constant 0 : index
    %c0_2 = arith.constant 0 : index
    %1 = vector.load %arg3[%c0_1, %c0_2] : memref<1x32xf32, #tpu.memory_space<vmem>>, vector<1x32xf32>
    %c0_3 = arith.constant 0 : index
    %c0_4 = arith.constant 0 : index
    %c0_5 = arith.constant 0 : index
    %2 = vector.load %arg1[%c0_3, %c0_4, %c0_5] : memref<1x512x256xbf16, #tpu.memory_space<vmem>>, vector<1x512x256xbf16>
    %3 = vector.shape_cast %2 : vector<1x512x256xbf16> to vector<512x256xbf16>
    %cst = arith.constant dense<0.000000e+00> : vector<512x32xf32>
    %4 = tpu.matmul %3, %0, %cst {dimension_numbers = #tpu.dot_dimension_numbers<[1], [0], [0], [1], [0, 0, 1, 1], [], []>} : vector<512x256xbf16>, vector<256x32xbf16>, vector<512x32xf32> -> vector<512x32xf32>
    %5 = vector.broadcast %1 : vector<1x32xf32> to vector<512x32xf32>
    %6 = arith.addf %4, %5 : vector<512x32xf32>
    %cst_6 = arith.constant 0.000000e+00 : f32
    %7 = vector.broadcast %cst_6 : f32 to vector<512x32xf32>
    %8 = arith.maximumf %6, %7 : vector<512x32xf32>
    %9 = arith.truncf %8 : vector<512x32xf32> to vector<512x32xbf16>
    %c0_7 = arith.constant 0 : index
    %c0_8 = arith.constant 0 : index
    %10 = vector.load %arg13[%c0_7, %c0_8] : memref<512x32xbf16, #tpu.memory_space<vmem>>, vector<512x32xbf16>
    tpu.vector_store %arg13[%c0_7, %c0_8], %9 {strides = array<i32>} : memref<512x32xbf16, #tpu.memory_space<vmem>>, vector<512x32xbf16>,
    %c0_9 = arith.constant 0 : index
    %c0_10 = arith.constant 0 : index
    %11 = vector.load %arg4[%c0_9, %c0_10] : memref<512x64xbf16, #tpu.memory_space<vmem>>, vector<512x64xbf16>
    %c0_11 = arith.constant 0 : index
    %c0_12 = arith.constant 0 : index
    %12 = vector.load %arg5[%c0_11, %c0_12] : memref<1x64xf32, #tpu.memory_space<vmem>>, vector<1x64xf32>
    %c0_13 = arith.constant 0 : index
    %c0_14 = arith.constant 0 : index
    %13 = vector.load %arg13[%c0_13, %c0_14] : memref<512x32xbf16, #tpu.memory_space<vmem>>, vector<8x32xbf16>
    %c0_15 = arith.constant 0 : index
    %c0_16 = arith.constant 0 : index
    %14 = vector.load %arg14[%c0_15, %c0_16] : memref<24x512xbf16, #tpu.memory_space<vmem>>, vector<8x32xbf16>
    tpu.vector_store %arg14[%c0_15, %c0_16], %13 {strides = array<i32>} : memref<24x512xbf16, #tpu.memory_space<vmem>>, vector<8x32xbf16>,
    %c8 = arith.constant 8 : index
    %c0_17 = arith.constant 0 : index
    %15 = vector.load %arg13[%c8, %c0_17] : memref<512x32xbf16, #tpu.memory_space<vmem>>, vector<8x32xbf16>
    %c0_18 = arith.constant 0 : index
    %c32 = arith.constant 32 : index
    %16 = vector.load %arg14[%c0_18, %c32] : memref<24x512xbf16, #tpu.memory_space<vmem>>, vector<8x32xbf16>
    tpu.vector_store %arg14[%c0_18, %c32], %15 {strides = array<i32>} : memref<24x512xbf16, #tpu.memory_space<vmem>>, vector<8x32xbf16>,
    %c16 = arith.constant 16 : index
    %c0_19 = arith.constant 0 : index
    %17 = vector.load %arg13[%c16, %c0_19] : memref<512x32xbf16, #tpu.memory_space<vmem>>, vector<8x32xbf16>
    %c0_20 = arith.constant 0 : index
    %c64 = arith.constant 64 : index
    %18 = vector.load %arg14[%c0_20, %c64] : memref<24x512xbf16, #tpu.memory_space<vmem>>, vector<8x32xbf16>
    tpu.vector_store %arg14[%c0_20, %c64], %17 {strides = array<i32>} : memref<24x512xbf16, #tpu.memory_space<vmem>>, vector<8x32xbf16>,
    %c24 = arith.constant 24 : index
    %c0_21 = arith.constant 0 : index
    %19 = vector.load %arg13[%c24, %c0_21] : memref<512x32xbf16, #tpu.memory_space<vmem>>, vector<8x32xbf16>
    %c0_22 = arith.constant 0 : index
    %c96 = arith.constant 96 : index
    %20 = vector.load %arg14[%c0_22, %c96] : memref<24x512xbf16, #tpu.memory_space<vmem>>, vector<8x32xbf16>
    tpu.vector_store %arg14[%c0_22, %c96], %19 {strides = array<i32>} : memref<24x512xbf16, #tpu.memory_space<vmem>>, vector<8x32xbf16>,
    %c64_23 = arith.constant 64 : index
    %c0_24 = arith.constant 0 : index
    %21 = vector.load %arg13[%c64_23, %c0_24] : memref<512x32xbf16, #tpu.memory_space<vmem>>, vector<8x32xbf16>
    %c0_25 = arith.constant 0 : index
    %c128 = arith.constant 128 : index
    %22 = vector.load %arg14[%c0_25, %c128] : memref<24x512xbf16, #tpu.memory_space<vmem>>, vector<8x32xbf16>
    tpu.vector_store %arg14[%c0_25, %c128], %21 {strides = array<i32>} : memref<24x512xbf16, #tpu.memory_space<vmem>>, vector<8x32xbf16>,
    %c72 = arith.constant 72 : index
    %c0_26 = arith.constant 0 : index
    %23 = vector.load %arg13[%c72, %c0_26] : memref<512x32xbf16, #tpu.memory_space<vmem>>, vector<8x32xbf16>
    %c0_27 = arith.constant 0 : index
    %c160 = arith.constant 160 : index
    %24 = vector.load %arg14[%c0_27, %c160] : memref<24x512xbf16, #tpu.memory_space<vmem>>, vector<8x32xbf16>
    tpu.vector_store %arg14[%c0_27, %c160], %23 {strides = array<i32>} : memref<24x512xbf16, #tpu.memory_space<vmem>>, vector<8x32xbf16>,
    %c80 = arith.constant 80 : index
    %c0_28 = arith.constant 0 : index
    %25 = vector.load %arg13[%c80, %c0_28] : memref<512x32xbf16, #tpu.memory_space<vmem>>, vector<8x32xbf16>
    %c0_29 = arith.constant 0 : index
    %c192 = arith.constant 192 : index
    %26 = vector.load %arg14[%c0_29, %c192] : memref<24x512xbf16, #tpu.memory_space<vmem>>, vector<8x32xbf16>
    tpu.vector_store %arg14[%c0_29, %c192], %25 {strides = array<i32>} : memref<24x512xbf16, #tpu.memory_space<vmem>>, vector<8x32xbf16>,
    %c88 = arith.constant 88 : index
    %c0_30 = arith.constant 0 : index
    %27 = vector.load %arg13[%c88, %c0_30] : memref<512x32xbf16, #tpu.memory_space<vmem>>, vector<8x32xbf16>
    %c0_31 = arith.constant 0 : index
    %c224 = arith.constant 224 : index
    %28 = vector.load %arg14[%c0_31, %c224] : memref<24x512xbf16, #tpu.memory_space<vmem>>, vector<8x32xbf16>
    tpu.vector_store %arg14[%c0_31, %c224], %27 {strides = array<i32>} : memref<24x512xbf16, #tpu.memory_space<vmem>>, vector<8x32xbf16>,
    %c128_32 = arith.constant 128 : index
    %c0_33 = arith.constant 0 : index
    %29 = vector.load %arg13[%c128_32, %c0_33] : memref<512x32xbf16, #tpu.memory_space<vmem>>, vector<8x32xbf16>
    %c0_34 = arith.constant 0 : index
    %c256 = arith.constant 256 : index
    %30 = vector.load %arg14[%c0_34, %c256] : memref<24x512xbf16, #tpu.memory_space<vmem>>, vector<8x32xbf16>
    tpu.vector_store %arg14[%c0_34, %c256], %29 {strides = array<i32>} : memref<24x512xbf16, #tpu.memory_space<vmem>>, vector<8x32xbf16>,
    %c136 = arith.constant 136 : index
    %c0_35 = arith.constant 0 : index
    %31 = vector.load %arg13[%c136, %c0_35] : memref<512x32xbf16, #tpu.memory_space<vmem>>, vector<8x32xbf16>
    %c0_36 = arith.constant 0 : index
    %c288 = arith.constant 288 : index
    %32 = vector.load %arg14[%c0_36, %c288] : memref<24x512xbf16, #tpu.memory_space<vmem>>, vector<8x32xbf16>
    tpu.vector_store %arg14[%c0_36, %c288], %31 {strides = array<i32>} : memref<24x512xbf16, #tpu.memory_space<vmem>>, vector<8x32xbf16>,
    %c144 = arith.constant 144 : index
    %c0_37 = arith.constant 0 : index
    %33 = vector.load %arg13[%c144, %c0_37] : memref<512x32xbf16, #tpu.memory_space<vmem>>, vector<8x32xbf16>
    %c0_38 = arith.constant 0 : index
    %c320 = arith.constant 320 : index
    %34 = vector.load %arg14[%c0_38, %c320] : memref<24x512xbf16, #tpu.memory_space<vmem>>, vector<8x32xbf16>
    tpu.vector_store %arg14[%c0_38, %c320], %33 {strides = array<i32>} : memref<24x512xbf16, #tpu.memory_space<vmem>>, vector<8x32xbf16>,
    %c152 = arith.constant 152 : index
    %c0_39 = arith.constant 0 : index
    %35 = vector.load %arg13[%c152, %c0_39] : memref<512x32xbf16, #tpu.memory_space<vmem>>, vector<8x32xbf16>
    %c0_40 = arith.constant 0 : index
    %c352 = arith.constant 352 : index
    %36 = vector.load %arg14[%c0_40, %c352] : memref<24x512xbf16, #tpu.memory_space<vmem>>, vector<8x32xbf16>
    tpu.vector_store %arg14[%c0_40, %c352], %35 {strides = array<i32>} : memref<24x512xbf16, #tpu.memory_space<vmem>>, vector<8x32xbf16>,
    %c192_41 = arith.constant 192 : index
    %c0_42 = arith.constant 0 : index
    %37 = vector.load %arg13[%c192_41, %c0_42] : memref<512x32xbf16, #tpu.memory_space<vmem>>, vector<8x32xbf16>
    %c0_43 = arith.constant 0 : index
    %c384 = arith.constant 384 : index
    %38 = vector.load %arg14[%c0_43, %c384] : memref<24x512xbf16, #tpu.memory_space<vmem>>, vector<8x32xbf16>
    tpu.vector_store %arg14[%c0_43, %c384], %37 {strides = array<i32>} : memref<24x512xbf16, #tpu.memory_space<vmem>>, vector<8x32xbf16>,
    %c200 = arith.constant 200 : index
    %c0_44 = arith.constant 0 : index
    %39 = vector.load %arg13[%c200, %c0_44] : memref<512x32xbf16, #tpu.memory_space<vmem>>, vector<8x32xbf16>
    %c0_45 = arith.constant 0 : index
    %c416 = arith.constant 416 : index
    %40 = vector.load %arg14[%c0_45, %c416] : memref<24x512xbf16, #tpu.memory_space<vmem>>, vector<8x32xbf16>
    tpu.vector_store %arg14[%c0_45, %c416], %39 {strides = array<i32>} : memref<24x512xbf16, #tpu.memory_space<vmem>>, vector<8x32xbf16>,
    %c208 = arith.constant 208 : index
    %c0_46 = arith.constant 0 : index
    %41 = vector.load %arg13[%c208, %c0_46] : memref<512x32xbf16, #tpu.memory_space<vmem>>, vector<8x32xbf16>
    %c0_47 = arith.constant 0 : index
    %c448 = arith.constant 448 : index
    %42 = vector.load %arg14[%c0_47, %c448] : memref<24x512xbf16, #tpu.memory_space<vmem>>, vector<8x32xbf16>
    tpu.vector_store %arg14[%c0_47, %c448], %41 {strides = array<i32>} : memref<24x512xbf16, #tpu.memory_space<vmem>>, vector<8x32xbf16>,
    %c216 = arith.constant 216 : index
    %c0_48 = arith.constant 0 : index
    %43 = vector.load %arg13[%c216, %c0_48] : memref<512x32xbf16, #tpu.memory_space<vmem>>, vector<8x32xbf16>
    %c0_49 = arith.constant 0 : index
    %c480 = arith.constant 480 : index
    %44 = vector.load %arg14[%c0_49, %c480] : memref<24x512xbf16, #tpu.memory_space<vmem>>, vector<8x32xbf16>
    tpu.vector_store %arg14[%c0_49, %c480], %43 {strides = array<i32>} : memref<24x512xbf16, #tpu.memory_space<vmem>>, vector<8x32xbf16>,
    %c16_50 = arith.constant 16 : index
    %c0_51 = arith.constant 0 : index
    %45 = vector.load %arg13[%c16_50, %c0_51] : memref<512x32xbf16, #tpu.memory_space<vmem>>, vector<8x32xbf16>
    %c8_52 = arith.constant 8 : index
    %c0_53 = arith.constant 0 : index
    %46 = vector.load %arg14[%c8_52, %c0_53] : memref<24x512xbf16, #tpu.memory_space<vmem>>, vector<8x32xbf16>
    tpu.vector_store %arg14[%c8_52, %c0_53], %45 {strides = array<i32>} : memref<24x512xbf16, #tpu.memory_space<vmem>>, vector<8x32xbf16>,
    %c24_54 = arith.constant 24 : index
    %c0_55 = arith.constant 0 : index
    %47 = vector.load %arg13[%c24_54, %c0_55] : memref<512x32xbf16, #tpu.memory_space<vmem>>, vector<8x32xbf16>
    %c8_56 = arith.constant 8 : index
    %c32_57 = arith.constant 32 : index
    %48 = vector.load %arg14[%c8_56, %c32_57] : memref<24x512xbf16, #tpu.memory_space<vmem>>, vector<8x32xbf16>
    tpu.vector_store %arg14[%c8_56, %c32_57], %47 {strides = array<i32>} : memref<24x512xbf16, #tpu.memory_space<vmem>>, vector<8x32xbf16>,
    %c32_58 = arith.constant 32 : index
    %c0_59 = arith.constant 0 : index
    %49 = vector.load %arg13[%c32_58, %c0_59] : memref<512x32xbf16, #tpu.memory_space<vmem>>, vector<8x32xbf16>
    %c8_60 = arith.constant 8 : index
    %c64_61 = arith.constant 64 : index
    %50 = vector.load %arg14[%c8_60, %c64_61] : memref<24x512xbf16, #tpu.memory_space<vmem>>, vector<8x32xbf16>
    tpu.vector_store %arg14[%c8_60, %c64_61], %49 {strides = array<i32>} : memref<24x512xbf16, #tpu.memory_space<vmem>>, vector<8x32xbf16>,
    %c40 = arith.constant 40 : index
    %c0_62 = arith.constant 0 : index
    %51 = vector.load %arg13[%c40, %c0_62] : memref<512x32xbf16, #tpu.memory_space<vmem>>, vector<8x32xbf16>
    %c8_63 = arith.constant 8 : index
    %c96_64 = arith.constant 96 : index
    %52 = vector.load %arg14[%c8_63, %c96_64] : memref<24x512xbf16, #tpu.memory_space<vmem>>, vector<8x32xbf16>
    tpu.vector_store %arg14[%c8_63, %c96_64], %51 {strides = array<i32>} : memref<24x512xbf16, #tpu.memory_space<vmem>>, vector<8x32xbf16>,
    %c80_65 = arith.constant 80 : index
    %c0_66 = arith.constant 0 : index
    %53 = vector.load %arg13[%c80_65, %c0_66] : memref<512x32xbf16, #tpu.memory_space<vmem>>, vector<8x32xbf16>
    %c8_67 = arith.constant 8 : index
    %c128_68 = arith.constant 128 : index
    %54 = vector.load %arg14[%c8_67, %c128_68] : memref<24x512xbf16, #tpu.memory_space<vmem>>, vector<8x32xbf16>
    tpu.vector_store %arg14[%c8_67, %c128_68], %53 {strides = array<i32>} : memref<24x512xbf16, #tpu.memory_space<vmem>>, vector<8x32xbf16>,
    %c88_69 = arith.constant 88 : index
    %c0_70 = arith.constant 0 : index
    %55 = vector.load %arg13[%c88_69, %c0_70] : memref<512x32xbf16, #tpu.memory_space<vmem>>, vector<8x32xbf16>
    %c8_71 = arith.constant 8 : index
    %c160_72 = arith.constant 160 : index
    %56 = vector.load %arg14[%c8_71, %c160_72] : memref<24x512xbf16, #tpu.memory_space<vmem>>, vector<8x32xbf16>
    tpu.vector_store %arg14[%c8_71, %c160_72], %55 {strides = array<i32>} : memref<24x512xbf16, #tpu.memory_space<vmem>>, vector<8x32xbf16>,
    %c96_73 = arith.constant 96 : index
    %c0_74 = arith.constant 0 : index
    %57 = vector.load %arg13[%c96_73, %c0_74] : memref<512x32xbf16, #tpu.memory_space<vmem>>, vector<8x32xbf16>
    %c8_75 = arith.constant 8 : index
    %c192_76 = arith.constant 192 : index
    %58 = vector.load %arg14[%c8_75, %c192_76] : memref<24x512xbf16, #tpu.memory_space<vmem>>, vector<8x32xbf16>
    tpu.vector_store %arg14[%c8_75, %c192_76], %57 {strides = array<i32>} : memref<24x512xbf16, #tpu.memory_space<vmem>>, vector<8x32xbf16>,
    %c104 = arith.constant 104 : index
    %c0_77 = arith.constant 0 : index
    %59 = vector.load %arg13[%c104, %c0_77] : memref<512x32xbf16, #tpu.memory_space<vmem>>, vector<8x32xbf16>
    %c8_78 = arith.constant 8 : index
    %c224_79 = arith.constant 224 : index
    %60 = vector.load %arg14[%c8_78, %c224_79] : memref<24x512xbf16, #tpu.memory_space<vmem>>, vector<8x32xbf16>
    tpu.vector_store %arg14[%c8_78, %c224_79], %59 {strides = array<i32>} : memref<24x512xbf16, #tpu.memory_space<vmem>>, vector<8x32xbf16>,
    %c144_80 = arith.constant 144 : index
    %c0_81 = arith.constant 0 : index
    %61 = vector.load %arg13[%c144_80, %c0_81] : memref<512x32xbf16, #tpu.memory_space<vmem>>, vector<8x32xbf16>
    %c8_82 = arith.constant 8 : index
    %c256_83 = arith.constant 256 : index
    %62 = vector.load %arg14[%c8_82, %c256_83] : memref<24x512xbf16, #tpu.memory_space<vmem>>, vector<8x32xbf16>
    tpu.vector_store %arg14[%c8_82, %c256_83], %61 {strides = array<i32>} : memref<24x512xbf16, #tpu.memory_space<vmem>>, vector<8x32xbf16>,
    %c152_84 = arith.constant 152 : index
    %c0_85 = arith.constant 0 : index
    %63 = vector.load %arg13[%c152_84, %c0_85] : memref<512x32xbf16, #tpu.memory_space<vmem>>, vector<8x32xbf16>
    %c8_86 = arith.constant 8 : index
    %c288_87 = arith.constant 288 : index
    %64 = vector.load %arg14[%c8_86, %c288_87] : memref<24x512xbf16, #tpu.memory_space<vmem>>, vector<8x32xbf16>
    tpu.vector_store %arg14[%c8_86, %c288_87], %63 {strides = array<i32>} : memref<24x512xbf16, #tpu.memory_space<vmem>>, vector<8x32xbf16>,
    %c160_88 = arith.constant 160 : index
    %c0_89 = arith.constant 0 : index
    %65 = vector.load %arg13[%c160_88, %c0_89] : memref<512x32xbf16, #tpu.memory_space<vmem>>, vector<8x32xbf16>
    %c8_90 = arith.constant 8 : index
    %c320_91 = arith.constant 320 : index
    %66 = vector.load %arg14[%c8_90, %c320_91] : memref<24x512xbf16, #tpu.memory_space<vmem>>, vector<8x32xbf16>
    tpu.vector_store %arg14[%c8_90, %c320_91], %65 {strides = array<i32>} : memref<24x512xbf16, #tpu.memory_space<vmem>>, vector<8x32xbf16>,
    %c168 = arith.constant 168 : index
    %c0_92 = arith.constant 0 : index
    %67 = vector.load %arg13[%c168, %c0_92] : memref<512x32xbf16, #tpu.memory_space<vmem>>, vector<8x32xbf16>
    %c8_93 = arith.constant 8 : index
    %c352_94 = arith.constant 352 : index
    %68 = vector.load %arg14[%c8_93, %c352_94] : memref<24x512xbf16, #tpu.memory_space<vmem>>, vector<8x32xbf16>
    tpu.vector_store %arg14[%c8_93, %c352_94], %67 {strides = array<i32>} : memref<24x512xbf16, #tpu.memory_space<vmem>>, vector<8x32xbf16>,
    %c208_95 = arith.constant 208 : index
    %c0_96 = arith.constant 0 : index
    %69 = vector.load %arg13[%c208_95, %c0_96] : memref<512x32xbf16, #tpu.memory_space<vmem>>, vector<8x32xbf16>
    %c8_97 = arith.constant 8 : index
    %c384_98 = arith.constant 384 : index
    %70 = vector.load %arg14[%c8_97, %c384_98] : memref<24x512xbf16, #tpu.memory_space<vmem>>, vector<8x32xbf16>
    tpu.vector_store %arg14[%c8_97, %c384_98], %69 {strides = array<i32>} : memref<24x512xbf16, #tpu.memory_space<vmem>>, vector<8x32xbf16>,
    %c216_99 = arith.constant 216 : index
    %c0_100 = arith.constant 0 : index
    %71 = vector.load %arg13[%c216_99, %c0_100] : memref<512x32xbf16, #tpu.memory_space<vmem>>, vector<8x32xbf16>
    %c8_101 = arith.constant 8 : index
    %c416_102 = arith.constant 416 : index
    %72 = vector.load %arg14[%c8_101, %c416_102] : memref<24x512xbf16, #tpu.memory_space<vmem>>, vector<8x32xbf16>
    tpu.vector_store %arg14[%c8_101, %c416_102], %71 {strides = array<i32>} : memref<24x512xbf16, #tpu.memory_space<vmem>>, vector<8x32xbf16>,
    %c224_103 = arith.constant 224 : index
    %c0_104 = arith.constant 0 : index
    %73 = vector.load %arg13[%c224_103, %c0_104] : memref<512x32xbf16, #tpu.memory_space<vmem>>, vector<8x32xbf16>
    %c8_105 = arith.constant 8 : index
    %c448_106 = arith.constant 448 : index
    %74 = vector.load %arg14[%c8_105, %c448_106] : memref<24x512xbf16, #tpu.memory_space<vmem>>, vector<8x32xbf16>
    tpu.vector_store %arg14[%c8_105, %c448_106], %73 {strides = array<i32>} : memref<24x512xbf16, #tpu.memory_space<vmem>>, vector<8x32xbf16>,
    %c232 = arith.constant 232 : index
    %c0_107 = arith.constant 0 : index
    %75 = vector.load %arg13[%c232, %c0_107] : memref<512x32xbf16, #tpu.memory_space<vmem>>, vector<8x32xbf16>
    %c8_108 = arith.constant 8 : index
    %c480_109 = arith.constant 480 : index
    %76 = vector.load %arg14[%c8_108, %c480_109] : memref<24x512xbf16, #tpu.memory_space<vmem>>, vector<8x32xbf16>
    tpu.vector_store %arg14[%c8_108, %c480_109], %75 {strides = array<i32>} : memref<24x512xbf16, #tpu.memory_space<vmem>>, vector<8x32xbf16>,
    %c32_110 = arith.constant 32 : index
    %c0_111 = arith.constant 0 : index
    %77 = vector.load %arg13[%c32_110, %c0_111] : memref<512x32xbf16, #tpu.memory_space<vmem>>, vector<8x32xbf16>
    %c16_112 = arith.constant 16 : index
    %c0_113 = arith.constant 0 : index
    %78 = vector.load %arg14[%c16_112, %c0_113] : memref<24x512xbf16, #tpu.memory_space<vmem>>, vector<8x32xbf16>
    tpu.vector_store %arg14[%c16_112, %c0_113], %77 {strides = array<i32>} : memref<24x512xbf16, #tpu.memory_space<vmem>>, vector<8x32xbf16>,
    %c40_114 = arith.constant 40 : index
    %c0_115 = arith.constant 0 : index
    %79 = vector.load %arg13[%c40_114, %c0_115] : memref<512x32xbf16, #tpu.memory_space<vmem>>, vector<8x32xbf16>
    %c16_116 = arith.constant 16 : index
    %c32_117 = arith.constant 32 : index
    %80 = vector.load %arg14[%c16_116, %c32_117] : memref<24x512xbf16, #tpu.memory_space<vmem>>, vector<8x32xbf16>
    tpu.vector_store %arg14[%c16_116, %c32_117], %79 {strides = array<i32>} : memref<24x512xbf16, #tpu.memory_space<vmem>>, vector<8x32xbf16>,
    %c48 = arith.constant 48 : index
    %c0_118 = arith.constant 0 : index
    %81 = vector.load %arg13[%c48, %c0_118] : memref<512x32xbf16, #tpu.memory_space<vmem>>, vector<8x32xbf16>
    %c16_119 = arith.constant 16 : index
    %c64_120 = arith.constant 64 : index
    %82 = vector.load %arg14[%c16_119, %c64_120] : memref<24x512xbf16, #tpu.memory_space<vmem>>, vector<8x32xbf16>
    tpu.vector_store %arg14[%c16_119, %c64_120], %81 {strides = array<i32>} : memref<24x512xbf16, #tpu.memory_space<vmem>>, vector<8x32xbf16>,
    %c56 = arith.constant 56 : index
    %c0_121 = arith.constant 0 : index
    %83 = vector.load %arg13[%c56, %c0_121] : memref<512x32xbf16, #tpu.memory_space<vmem>>, vector<8x32xbf16>
    %c16_122 = arith.constant 16 : index
    %c96_123 = arith.constant 96 : index
    %84 = vector.load %arg14[%c16_122, %c96_123] : memref<24x512xbf16, #tpu.memory_space<vmem>>, vector<8x32xbf16>
    tpu.vector_store %arg14[%c16_122, %c96_123], %83 {strides = array<i32>} : memref<24x512xbf16, #tpu.memory_space<vmem>>, vector<8x32xbf16>,
    %c96_124 = arith.constant 96 : index
    %c0_125 = arith.constant 0 : index
    %85 = vector.load %arg13[%c96_124, %c0_125] : memref<512x32xbf16, #tpu.memory_space<vmem>>, vector<8x32xbf16>
    %c16_126 = arith.constant 16 : index
    %c128_127 = arith.constant 128 : index
    %86 = vector.load %arg14[%c16_126, %c128_127] : memref<24x512xbf16, #tpu.memory_space<vmem>>, vector<8x32xbf16>
    tpu.vector_store %arg14[%c16_126, %c128_127], %85 {strides = array<i32>} : memref<24x512xbf16, #tpu.memory_space<vmem>>, vector<8x32xbf16>,
    %c104_128 = arith.constant 104 : index
    %c0_129 = arith.constant 0 : index
    %87 = vector.load %arg13[%c104_128, %c0_129] : memref<512x32xbf16, #tpu.memory_space<vmem>>, vector<8x32xbf16>
    %c16_130 = arith.constant 16 : index
    %c160_131 = arith.constant 160 : index
    %88 = vector.load %arg14[%c16_130, %c160_131] : memref<24x512xbf16, #tpu.memory_space<vmem>>, vector<8x32xbf16>
    tpu.vector_store %arg14[%c16_130, %c160_131], %87 {strides = array<i32>} : memref<24x512xbf16, #tpu.memory_space<vmem>>, vector<8x32xbf16>,
    %c112 = arith.constant 112 : index
    %c0_132 = arith.constant 0 : index
    %89 = vector.load %arg13[%c112, %c0_132] : memref<512x32xbf16, #tpu.memory_space<vmem>>, vector<8x32xbf16>
    %c16_133 = arith.constant 16 : index
    %c192_134 = arith.constant 192 : index
    %90 = vector.load %arg14[%c16_133, %c192_134] : memref<24x512xbf16, #tpu.memory_space<vmem>>, vector<8x32xbf16>
    tpu.vector_store %arg14[%c16_133, %c192_134], %89 {strides = array<i32>} : memref<24x512xbf16, #tpu.memory_space<vmem>>, vector<8x32xbf16>,
    %c120 = arith.constant 120 : index
    %c0_135 = arith.constant 0 : index
    %91 = vector.load %arg13[%c120, %c0_135] : memref<512x32xbf16, #tpu.memory_space<vmem>>, vector<8x32xbf16>
    %c16_136 = arith.constant 16 : index
    %c224_137 = arith.constant 224 : index
    %92 = vector.load %arg14[%c16_136, %c224_137] : memref<24x512xbf16, #tpu.memory_space<vmem>>, vector<8x32xbf16>
    tpu.vector_store %arg14[%c16_136, %c224_137], %91 {strides = array<i32>} : memref<24x512xbf16, #tpu.memory_space<vmem>>, vector<8x32xbf16>,
    %c160_138 = arith.constant 160 : index
    %c0_139 = arith.constant 0 : index
    %93 = vector.load %arg13[%c160_138, %c0_139] : memref<512x32xbf16, #tpu.memory_space<vmem>>, vector<8x32xbf16>
    %c16_140 = arith.constant 16 : index
    %c256_141 = arith.constant 256 : index
    %94 = vector.load %arg14[%c16_140, %c256_141] : memref<24x512xbf16, #tpu.memory_space<vmem>>, vector<8x32xbf16>
    tpu.vector_store %arg14[%c16_140, %c256_141], %93 {strides = array<i32>} : memref<24x512xbf16, #tpu.memory_space<vmem>>, vector<8x32xbf16>,
    %c168_142 = arith.constant 168 : index
    %c0_143 = arith.constant 0 : index
    %95 = vector.load %arg13[%c168_142, %c0_143] : memref<512x32xbf16, #tpu.memory_space<vmem>>, vector<8x32xbf16>
    %c16_144 = arith.constant 16 : index
    %c288_145 = arith.constant 288 : index
    %96 = vector.load %arg14[%c16_144, %c288_145] : memref<24x512xbf16, #tpu.memory_space<vmem>>, vector<8x32xbf16>
    tpu.vector_store %arg14[%c16_144, %c288_145], %95 {strides = array<i32>} : memref<24x512xbf16, #tpu.memory_space<vmem>>, vector<8x32xbf16>,
    %c176 = arith.constant 176 : index
    %c0_146 = arith.constant 0 : index
    %97 = vector.load %arg13[%c176, %c0_146] : memref<512x32xbf16, #tpu.memory_space<vmem>>, vector<8x32xbf16>
    %c16_147 = arith.constant 16 : index
    %c320_148 = arith.constant 320 : index
    %98 = vector.load %arg14[%c16_147, %c320_148] : memref<24x512xbf16, #tpu.memory_space<vmem>>, vector<8x32xbf16>
    tpu.vector_store %arg14[%c16_147, %c320_148], %97 {strides = array<i32>} : memref<24x512xbf16, #tpu.memory_space<vmem>>, vector<8x32xbf16>,
    %c184 = arith.constant 184 : index
    %c0_149 = arith.constant 0 : index
    %99 = vector.load %arg13[%c184, %c0_149] : memref<512x32xbf16, #tpu.memory_space<vmem>>, vector<8x32xbf16>
    %c16_150 = arith.constant 16 : index
    %c352_151 = arith.constant 352 : index
    %100 = vector.load %arg14[%c16_150, %c352_151] : memref<24x512xbf16, #tpu.memory_space<vmem>>, vector<8x32xbf16>
    tpu.vector_store %arg14[%c16_150, %c352_151], %99 {strides = array<i32>} : memref<24x512xbf16, #tpu.memory_space<vmem>>, vector<8x32xbf16>,
    %c224_152 = arith.constant 224 : index
    %c0_153 = arith.constant 0 : index
    %101 = vector.load %arg13[%c224_152, %c0_153] : memref<512x32xbf16, #tpu.memory_space<vmem>>, vector<8x32xbf16>
    %c16_154 = arith.constant 16 : index
    %c384_155 = arith.constant 384 : index
    %102 = vector.load %arg14[%c16_154, %c384_155] : memref<24x512xbf16, #tpu.memory_space<vmem>>, vector<8x32xbf16>
    tpu.vector_store %arg14[%c16_154, %c384_155], %101 {strides = array<i32>} : memref<24x512xbf16, #tpu.memory_space<vmem>>, vector<8x32xbf16>,
    %c232_156 = arith.constant 232 : index
    %c0_157 = arith.constant 0 : index
    %103 = vector.load %arg13[%c232_156, %c0_157] : memref<512x32xbf16, #tpu.memory_space<vmem>>, vector<8x32xbf16>
    %c16_158 = arith.constant 16 : index
    %c416_159 = arith.constant 416 : index
    %104 = vector.load %arg14[%c16_158, %c416_159] : memref<24x512xbf16, #tpu.memory_space<vmem>>, vector<8x32xbf16>
    tpu.vector_store %arg14[%c16_158, %c416_159], %103 {strides = array<i32>} : memref<24x512xbf16, #tpu.memory_space<vmem>>, vector<8x32xbf16>,
    %c240 = arith.constant 240 : index
    %c0_160 = arith.constant 0 : index
    %105 = vector.load %arg13[%c240, %c0_160] : memref<512x32xbf16, #tpu.memory_space<vmem>>, vector<8x32xbf16>
    %c16_161 = arith.constant 16 : index
    %c448_162 = arith.constant 448 : index
    %106 = vector.load %arg14[%c16_161, %c448_162] : memref<24x512xbf16, #tpu.memory_space<vmem>>, vector<8x32xbf16>
    tpu.vector_store %arg14[%c16_161, %c448_162], %105 {strides = array<i32>} : memref<24x512xbf16, #tpu.memory_space<vmem>>, vector<8x32xbf16>,
    %c248 = arith.constant 248 : index
    %c0_163 = arith.constant 0 : index
    %107 = vector.load %arg13[%c248, %c0_163] : memref<512x32xbf16, #tpu.memory_space<vmem>>, vector<8x32xbf16>
    %c16_164 = arith.constant 16 : index
    %c480_165 = arith.constant 480 : index
    %108 = vector.load %arg14[%c16_164, %c480_165] : memref<24x512xbf16, #tpu.memory_space<vmem>>, vector<8x32xbf16>
    tpu.vector_store %arg14[%c16_164, %c480_165], %107 {strides = array<i32>} : memref<24x512xbf16, #tpu.memory_space<vmem>>, vector<8x32xbf16>,
    %c0_166 = arith.constant 0 : index
    %c0_167 = arith.constant 0 : index
    %109 = vector.load %arg14[%c0_166, %c0_167] : memref<24x512xbf16, #tpu.memory_space<vmem>>, vector<24x512xbf16>
    %cst_168 = arith.constant dense<0.000000e+00> : vector<24x64xf32>
    %110 = tpu.matmul %109, %11, %cst_168 {dimension_numbers = #tpu.dot_dimension_numbers<[1], [0], [0], [1], [0, 0, 1, 1], [], []>} : vector<24x512xbf16>, vector<512x64xbf16>, vector<24x64xf32> -> vector<24x64xf32>
    %111 = vector.broadcast %12 : vector<1x64xf32> to vector<24x64xf32>
    %112 = arith.addf %110, %111 : vector<24x64xf32>
    %cst_169 = arith.constant 0.000000e+00 : f32
    %113 = vector.broadcast %cst_169 : f32 to vector<24x64xf32>
    %114 = arith.maximumf %112, %113 : vector<24x64xf32>
    %115 = arith.truncf %114 : vector<24x64xf32> to vector<24x64xbf16>
    %c0_170 = arith.constant 0 : index
    %c0_171 = arith.constant 0 : index
    %116 = vector.load %arg15[%c0_170, %c0_171] : memref<72x64xbf16, #tpu.memory_space<vmem>>, vector<24x64xbf16>
    tpu.vector_store %arg15[%c0_170, %c0_171], %115 {strides = array<i32>} : memref<72x64xbf16, #tpu.memory_space<vmem>>, vector<24x64xbf16>,
    %c128_172 = arith.constant 128 : index
    %c0_173 = arith.constant 0 : index
    %117 = vector.load %arg13[%c128_172, %c0_173] : memref<512x32xbf16, #tpu.memory_space<vmem>>, vector<8x32xbf16>
    %c0_174 = arith.constant 0 : index
    %c0_175 = arith.constant 0 : index
    %118 = vector.load %arg14[%c0_174, %c0_175] : memref<24x512xbf16, #tpu.memory_space<vmem>>, vector<8x32xbf16>
    tpu.vector_store %arg14[%c0_174, %c0_175], %117 {strides = array<i32>} : memref<24x512xbf16, #tpu.memory_space<vmem>>, vector<8x32xbf16>,
    %c136_176 = arith.constant 136 : index
    %c0_177 = arith.constant 0 : index
    %119 = vector.load %arg13[%c136_176, %c0_177] : memref<512x32xbf16, #tpu.memory_space<vmem>>, vector<8x32xbf16>
    %c0_178 = arith.constant 0 : index
    %c32_179 = arith.constant 32 : index
    %120 = vector.load %arg14[%c0_178, %c32_179] : memref<24x512xbf16, #tpu.memory_space<vmem>>, vector<8x32xbf16>
    tpu.vector_store %arg14[%c0_178, %c32_179], %119 {strides = array<i32>} : memref<24x512xbf16, #tpu.memory_space<vmem>>, vector<8x32xbf16>,
    %c144_180 = arith.constant 144 : index
    %c0_181 = arith.constant 0 : index
    %121 = vector.load %arg13[%c144_180, %c0_181] : memref<512x32xbf16, #tpu.memory_space<vmem>>, vector<8x32xbf16>
    %c0_182 = arith.constant 0 : index
    %c64_183 = arith.constant 64 : index
    %122 = vector.load %arg14[%c0_182, %c64_183] : memref<24x512xbf16, #tpu.memory_space<vmem>>, vector<8x32xbf16>
    tpu.vector_store %arg14[%c0_182, %c64_183], %121 {strides = array<i32>} : memref<24x512xbf16, #tpu.memory_space<vmem>>, vector<8x32xbf16>,
    %c152_184 = arith.constant 152 : index
    %c0_185 = arith.constant 0 : index
    %123 = vector.load %arg13[%c152_184, %c0_185] : memref<512x32xbf16, #tpu.memory_space<vmem>>, vector<8x32xbf16>
    %c0_186 = arith.constant 0 : index
    %c96_187 = arith.constant 96 : index
    %124 = vector.load %arg14[%c0_186, %c96_187] : memref<24x512xbf16, #tpu.memory_space<vmem>>, vector<8x32xbf16>
    tpu.vector_store %arg14[%c0_186, %c96_187], %123 {strides = array<i32>} : memref<24x512xbf16, #tpu.memory_space<vmem>>, vector<8x32xbf16>,
    %c192_188 = arith.constant 192 : index
    %c0_189 = arith.constant 0 : index
    %125 = vector.load %arg13[%c192_188, %c0_189] : memref<512x32xbf16, #tpu.memory_space<vmem>>, vector<8x32xbf16>
    %c0_190 = arith.constant 0 : index
    %c128_191 = arith.constant 128 : index
    %126 = vector.load %arg14[%c0_190, %c128_191] : memref<24x512xbf16, #tpu.memory_space<vmem>>, vector<8x32xbf16>
    tpu.vector_store %arg14[%c0_190, %c128_191], %125 {strides = array<i32>} : memref<24x512xbf16, #tpu.memory_space<vmem>>, vector<8x32xbf16>,
    %c200_192 = arith.constant 200 : index
    %c0_193 = arith.constant 0 : index
    %127 = vector.load %arg13[%c200_192, %c0_193] : memref<512x32xbf16, #tpu.memory_space<vmem>>, vector<8x32xbf16>
    %c0_194 = arith.constant 0 : index
    %c160_195 = arith.constant 160 : index
    %128 = vector.load %arg14[%c0_194, %c160_195] : memref<24x512xbf16, #tpu.memory_space<vmem>>, vector<8x32xbf16>
    tpu.vector_store %arg14[%c0_194, %c160_195], %127 {strides = array<i32>} : memref<24x512xbf16, #tpu.memory_space<vmem>>, vector<8x32xbf16>,
    %c208_196 = arith.constant 208 : index
    %c0_197 = arith.constant 0 : index
    %129 = vector.load %arg13[%c208_196, %c0_197] : memref<512x32xbf16, #tpu.memory_space<vmem>>, vector<8x32xbf16>
    %c0_198 = arith.constant 0 : index
    %c192_199 = arith.constant 192 : index
    %130 = vector.load %arg14[%c0_198, %c192_199] : memref<24x512xbf16, #tpu.memory_space<vmem>>, vector<8x32xbf16>
    tpu.vector_store %arg14[%c0_198, %c192_199], %129 {strides = array<i32>} : memref<24x512xbf16, #tpu.memory_space<vmem>>, vector<8x32xbf16>,
    %c216_200 = arith.constant 216 : index
    %c0_201 = arith.constant 0 : index
    %131 = vector.load %arg13[%c216_200, %c0_201] : memref<512x32xbf16, #tpu.memory_space<vmem>>, vector<8x32xbf16>
    %c0_202 = arith.constant 0 : index
    %c224_203 = arith.constant 224 : index
    %132 = vector.load %arg14[%c0_202, %c224_203] : memref<24x512xbf16, #tpu.memory_space<vmem>>, vector<8x32xbf16>
    tpu.vector_store %arg14[%c0_202, %c224_203], %131 {strides = array<i32>} : memref<24x512xbf16, #tpu.memory_space<vmem>>, vector<8x32xbf16>,
    %c256_204 = arith.constant 256 : index
    %c0_205 = arith.constant 0 : index
    %133 = vector.load %arg13[%c256_204, %c0_205] : memref<512x32xbf16, #tpu.memory_space<vmem>>, vector<8x32xbf16>
    %c0_206 = arith.constant 0 : index
    %c256_207 = arith.constant 256 : index
    %134 = vector.load %arg14[%c0_206, %c256_207] : memref<24x512xbf16, #tpu.memory_space<vmem>>, vector<8x32xbf16>
    tpu.vector_store %arg14[%c0_206, %c256_207], %133 {strides = array<i32>} : memref<24x512xbf16, #tpu.memory_space<vmem>>, vector<8x32xbf16>,
    %c264 = arith.constant 264 : index
    %c0_208 = arith.constant 0 : index
    %135 = vector.load %arg13[%c264, %c0_208] : memref<512x32xbf16, #tpu.memory_space<vmem>>, vector<8x32xbf16>
    %c0_209 = arith.constant 0 : index
    %c288_210 = arith.constant 288 : index
    %136 = vector.load %arg14[%c0_209, %c288_210] : memref<24x512xbf16, #tpu.memory_space<vmem>>, vector<8x32xbf16>
    tpu.vector_store %arg14[%c0_209, %c288_210], %135 {strides = array<i32>} : memref<24x512xbf16, #tpu.memory_space<vmem>>, vector<8x32xbf16>,
    %c272 = arith.constant 272 : index
    %c0_211 = arith.constant 0 : index
    %137 = vector.load %arg13[%c272, %c0_211] : memref<512x32xbf16, #tpu.memory_space<vmem>>, vector<8x32xbf16>
    %c0_212 = arith.constant 0 : index
    %c320_213 = arith.constant 320 : index
    %138 = vector.load %arg14[%c0_212, %c320_213] : memref<24x512xbf16, #tpu.memory_space<vmem>>, vector<8x32xbf16>
    tpu.vector_store %arg14[%c0_212, %c320_213], %137 {strides = array<i32>} : memref<24x512xbf16, #tpu.memory_space<vmem>>, vector<8x32xbf16>,
    %c280 = arith.constant 280 : index
    %c0_214 = arith.constant 0 : index
    %139 = vector.load %arg13[%c280, %c0_214] : memref<512x32xbf16, #tpu.memory_space<vmem>>, vector<8x32xbf16>
    %c0_215 = arith.constant 0 : index
    %c352_216 = arith.constant 352 : index
    %140 = vector.load %arg14[%c0_215, %c352_216] : memref<24x512xbf16, #tpu.memory_space<vmem>>, vector<8x32xbf16>
    tpu.vector_store %arg14[%c0_215, %c352_216], %139 {strides = array<i32>} : memref<24x512xbf16, #tpu.memory_space<vmem>>, vector<8x32xbf16>,
    %c320_217 = arith.constant 320 : index
    %c0_218 = arith.constant 0 : index
    %141 = vector.load %arg13[%c320_217, %c0_218] : memref<512x32xbf16, #tpu.memory_space<vmem>>, vector<8x32xbf16>
    %c0_219 = arith.constant 0 : index
    %c384_220 = arith.constant 384 : index
    %142 = vector.load %arg14[%c0_219, %c384_220] : memref<24x512xbf16, #tpu.memory_space<vmem>>, vector<8x32xbf16>
    tpu.vector_store %arg14[%c0_219, %c384_220], %141 {strides = array<i32>} : memref<24x512xbf16, #tpu.memory_space<vmem>>, vector<8x32xbf16>,
    %c328 = arith.constant 328 : index
    %c0_221 = arith.constant 0 : index
    %143 = vector.load %arg13[%c328, %c0_221] : memref<512x32xbf16, #tpu.memory_space<vmem>>, vector<8x32xbf16>
    %c0_222 = arith.constant 0 : index
    %c416_223 = arith.constant 416 : index
    %144 = vector.load %arg14[%c0_222, %c416_223] : memref<24x512xbf16, #tpu.memory_space<vmem>>, vector<8x32xbf16>
    tpu.vector_store %arg14[%c0_222, %c416_223], %143 {strides = array<i32>} : memref<24x512xbf16, #tpu.memory_space<vmem>>, vector<8x32xbf16>,
    %c336 = arith.constant 336 : index
    %c0_224 = arith.constant 0 : index
    %145 = vector.load %arg13[%c336, %c0_224] : memref<512x32xbf16, #tpu.memory_space<vmem>>, vector<8x32xbf16>
    %c0_225 = arith.constant 0 : index
    %c448_226 = arith.constant 448 : index
    %146 = vector.load %arg14[%c0_225, %c448_226] : memref<24x512xbf16, #tpu.memory_space<vmem>>, vector<8x32xbf16>
    tpu.vector_store %arg14[%c0_225, %c448_226], %145 {strides = array<i32>} : memref<24x512xbf16, #tpu.memory_space<vmem>>, vector<8x32xbf16>,
    %c344 = arith.constant 344 : index
    %c0_227 = arith.constant 0 : index
    %147 = vector.load %arg13[%c344, %c0_227] : memref<512x32xbf16, #tpu.memory_space<vmem>>, vector<8x32xbf16>
    %c0_228 = arith.constant 0 : index
    %c480_229 = arith.constant 480 : index
    %148 = vector.load %arg14[%c0_228, %c480_229] : memref<24x512xbf16, #tpu.memory_space<vmem>>, vector<8x32xbf16>
    tpu.vector_store %arg14[%c0_228, %c480_229], %147 {strides = array<i32>} : memref<24x512xbf16, #tpu.memory_space<vmem>>, vector<8x32xbf16>,
    %c144_230 = arith.constant 144 : index
    %c0_231 = arith.constant 0 : index
    %149 = vector.load %arg13[%c144_230, %c0_231] : memref<512x32xbf16, #tpu.memory_space<vmem>>, vector<8x32xbf16>
    %c8_232 = arith.constant 8 : index
    %c0_233 = arith.constant 0 : index
    %150 = vector.load %arg14[%c8_232, %c0_233] : memref<24x512xbf16, #tpu.memory_space<vmem>>, vector<8x32xbf16>
    tpu.vector_store %arg14[%c8_232, %c0_233], %149 {strides = array<i32>} : memref<24x512xbf16, #tpu.memory_space<vmem>>, vector<8x32xbf16>,
    %c152_234 = arith.constant 152 : index
    %c0_235 = arith.constant 0 : index
    %151 = vector.load %arg13[%c152_234, %c0_235] : memref<512x32xbf16, #tpu.memory_space<vmem>>, vector<8x32xbf16>
    %c8_236 = arith.constant 8 : index
    %c32_237 = arith.constant 32 : index
    %152 = vector.load %arg14[%c8_236, %c32_237] : memref<24x512xbf16, #tpu.memory_space<vmem>>, vector<8x32xbf16>
    tpu.vector_store %arg14[%c8_236, %c32_237], %151 {strides = array<i32>} : memref<24x512xbf16, #tpu.memory_space<vmem>>, vector<8x32xbf16>,
    %c160_238 = arith.constant 160 : index
    %c0_239 = arith.constant 0 : index
    %153 = vector.load %arg13[%c160_238, %c0_239] : memref<512x32xbf16, #tpu.memory_space<vmem>>, vector<8x32xbf16>
    %c8_240 = arith.constant 8 : index
    %c64_241 = arith.constant 64 : index
    %154 = vector.load %arg14[%c8_240, %c64_241] : memref<24x512xbf16, #tpu.memory_space<vmem>>, vector<8x32xbf16>
    tpu.vector_store %arg14[%c8_240, %c64_241], %153 {strides = array<i32>} : memref<24x512xbf16, #tpu.memory_space<vmem>>, vector<8x32xbf16>,
    %c168_242 = arith.constant 168 : index
    %c0_243 = arith.constant 0 : index
    %155 = vector.load %arg13[%c168_242, %c0_243] : memref<512x32xbf16, #tpu.memory_space<vmem>>, vector<8x32xbf16>
    %c8_244 = arith.constant 8 : index
    %c96_245 = arith.constant 96 : index
    %156 = vector.load %arg14[%c8_244, %c96_245] : memref<24x512xbf16, #tpu.memory_space<vmem>>, vector<8x32xbf16>
    tpu.vector_store %arg14[%c8_244, %c96_245], %155 {strides = array<i32>} : memref<24x512xbf16, #tpu.memory_space<vmem>>, vector<8x32xbf16>,
    %c208_246 = arith.constant 208 : index
    %c0_247 = arith.constant 0 : index
    %157 = vector.load %arg13[%c208_246, %c0_247] : memref<512x32xbf16, #tpu.memory_space<vmem>>, vector<8x32xbf16>
    %c8_248 = arith.constant 8 : index
    %c128_249 = arith.constant 128 : index
    %158 = vector.load %arg14[%c8_248, %c128_249] : memref<24x512xbf16, #tpu.memory_space<vmem>>, vector<8x32xbf16>
    tpu.vector_store %arg14[%c8_248, %c128_249], %157 {strides = array<i32>} : memref<24x512xbf16, #tpu.memory_space<vmem>>, vector<8x32xbf16>,
    %c216_250 = arith.constant 216 : index
    %c0_251 = arith.constant 0 : index
    %159 = vector.load %arg13[%c216_250, %c0_251] : memref<512x32xbf16, #tpu.memory_space<vmem>>, vector<8x32xbf16>
    %c8_252 = arith.constant 8 : index
    %c160_253 = arith.constant 160 : index
    %160 = vector.load %arg14[%c8_252, %c160_253] : memref<24x512xbf16, #tpu.memory_space<vmem>>, vector<8x32xbf16>
    tpu.vector_store %arg14[%c8_252, %c160_253], %159 {strides = array<i32>} : memref<24x512xbf16, #tpu.memory_space<vmem>>, vector<8x32xbf16>,
    %c224_254 = arith.constant 224 : index
    %c0_255 = arith.constant 0 : index
    %161 = vector.load %arg13[%c224_254, %c0_255] : memref<512x32xbf16, #tpu.memory_space<vmem>>, vector<8x32xbf16>
    %c8_256 = arith.constant 8 : index
    %c192_257 = arith.constant 192 : index
    %162 = vector.load %arg14[%c8_256, %c192_257] : memref<24x512xbf16, #tpu.memory_space<vmem>>, vector<8x32xbf16>
    tpu.vector_store %arg14[%c8_256, %c192_257], %161 {strides = array<i32>} : memref<24x512xbf16, #tpu.memory_space<vmem>>, vector<8x32xbf16>,
    %c232_258 = arith.constant 232 : index
    %c0_259 = arith.constant 0 : index
    %163 = vector.load %arg13[%c232_258, %c0_259] : memref<512x32xbf16, #tpu.memory_space<vmem>>, vector<8x32xbf16>
    %c8_260 = arith.constant 8 : index
    %c224_261 = arith.constant 224 : index
    %164 = vector.load %arg14[%c8_260, %c224_261] : memref<24x512xbf16, #tpu.memory_space<vmem>>, vector<8x32xbf16>
    tpu.vector_store %arg14[%c8_260, %c224_261], %163 {strides = array<i32>} : memref<24x512xbf16, #tpu.memory_space<vmem>>, vector<8x32xbf16>,
    %c272_262 = arith.constant 272 : index
    %c0_263 = arith.constant 0 : index
    %165 = vector.load %arg13[%c272_262, %c0_263] : memref<512x32xbf16, #tpu.memory_space<vmem>>, vector<8x32xbf16>
    %c8_264 = arith.constant 8 : index
    %c256_265 = arith.constant 256 : index
    %166 = vector.load %arg14[%c8_264, %c256_265] : memref<24x512xbf16, #tpu.memory_space<vmem>>, vector<8x32xbf16>
    tpu.vector_store %arg14[%c8_264, %c256_265], %165 {strides = array<i32>} : memref<24x512xbf16, #tpu.memory_space<vmem>>, vector<8x32xbf16>,
    %c280_266 = arith.constant 280 : index
    %c0_267 = arith.constant 0 : index
    %167 = vector.load %arg13[%c280_266, %c0_267] : memref<512x32xbf16, #tpu.memory_space<vmem>>, vector<8x32xbf16>
    %c8_268 = arith.constant 8 : index
    %c288_269 = arith.constant 288 : index
    %168 = vector.load %arg14[%c8_268, %c288_269] : memref<24x512xbf16, #tpu.memory_space<vmem>>, vector<8x32xbf16>
    tpu.vector_store %arg14[%c8_268, %c288_269], %167 {strides = array<i32>} : memref<24x512xbf16, #tpu.memory_space<vmem>>, vector<8x32xbf16>,
    %c288_270 = arith.constant 288 : index
    %c0_271 = arith.constant 0 : index
    %169 = vector.load %arg13[%c288_270, %c0_271] : memref<512x32xbf16, #tpu.memory_space<vmem>>, vector<8x32xbf16>
    %c8_272 = arith.constant 8 : index
    %c320_273 = arith.constant 320 : index
    %170 = vector.load %arg14[%c8_272, %c320_273] : memref<24x512xbf16, #tpu.memory_space<vmem>>, vector<8x32xbf16>
    tpu.vector_store %arg14[%c8_272, %c320_273], %169 {strides = array<i32>} : memref<24x512xbf16, #tpu.memory_space<vmem>>, vector<8x32xbf16>,
    %c296 = arith.constant 296 : index
    %c0_274 = arith.constant 0 : index
    %171 = vector.load %arg13[%c296, %c0_274] : memref<512x32xbf16, #tpu.memory_space<vmem>>, vector<8x32xbf16>
    %c8_275 = arith.constant 8 : index
    %c352_276 = arith.constant 352 : index
    %172 = vector.load %arg14[%c8_275, %c352_276] : memref<24x512xbf16, #tpu.memory_space<vmem>>, vector<8x32xbf16>
    tpu.vector_store %arg14[%c8_275, %c352_276], %171 {strides = array<i32>} : memref<24x512xbf16, #tpu.memory_space<vmem>>, vector<8x32xbf16>,
    %c336_277 = arith.constant 336 : index
    %c0_278 = arith.constant 0 : index
    %173 = vector.load %arg13[%c336_277, %c0_278] : memref<512x32xbf16, #tpu.memory_space<vmem>>, vector<8x32xbf16>
    %c8_279 = arith.constant 8 : index
    %c384_280 = arith.constant 384 : index
    %174 = vector.load %arg14[%c8_279, %c384_280] : memref<24x512xbf16, #tpu.memory_space<vmem>>, vector<8x32xbf16>
    tpu.vector_store %arg14[%c8_279, %c384_280], %173 {strides = array<i32>} : memref<24x512xbf16, #tpu.memory_space<vmem>>, vector<8x32xbf16>,
    %c344_281 = arith.constant 344 : index
    %c0_282 = arith.constant 0 : index
    %175 = vector.load %arg13[%c344_281, %c0_282] : memref<512x32xbf16, #tpu.memory_space<vmem>>, vector<8x32xbf16>
    %c8_283 = arith.constant 8 : index
    %c416_284 = arith.constant 416 : index
    %176 = vector.load %arg14[%c8_283, %c416_284] : memref<24x512xbf16, #tpu.memory_space<vmem>>, vector<8x32xbf16>
    tpu.vector_store %arg14[%c8_283, %c416_284], %175 {strides = array<i32>} : memref<24x512xbf16, #tpu.memory_space<vmem>>, vector<8x32xbf16>,
    %c352_285 = arith.constant 352 : index
    %c0_286 = arith.constant 0 : index
    %177 = vector.load %arg13[%c352_285, %c0_286] : memref<512x32xbf16, #tpu.memory_space<vmem>>, vector<8x32xbf16>
    %c8_287 = arith.constant 8 : index
    %c448_288 = arith.constant 448 : index
    %178 = vector.load %arg14[%c8_287, %c448_288] : memref<24x512xbf16, #tpu.memory_space<vmem>>, vector<8x32xbf16>
    tpu.vector_store %arg14[%c8_287, %c448_288], %177 {strides = array<i32>} : memref<24x512xbf16, #tpu.memory_space<vmem>>, vector<8x32xbf16>,
    %c360 = arith.constant 360 : index
    %c0_289 = arith.constant 0 : index
    %179 = vector.load %arg13[%c360, %c0_289] : memref<512x32xbf16, #tpu.memory_space<vmem>>, vector<8x32xbf16>
    %c8_290 = arith.constant 8 : index
    %c480_291 = arith.constant 480 : index
    %180 = vector.load %arg14[%c8_290, %c480_291] : memref<24x512xbf16, #tpu.memory_space<vmem>>, vector<8x32xbf16>
    tpu.vector_store %arg14[%c8_290, %c480_291], %179 {strides = array<i32>} : memref<24x512xbf16, #tpu.memory_space<vmem>>, vector<8x32xbf16>,
    %c160_292 = arith.constant 160 : index
    %c0_293 = arith.constant 0 : index
    %181 = vector.load %arg13[%c160_292, %c0_293] : memref<512x32xbf16, #tpu.memory_space<vmem>>, vector<8x32xbf16>
    %c16_294 = arith.constant 16 : index
    %c0_295 = arith.constant 0 : index
    %182 = vector.load %arg14[%c16_294, %c0_295] : memref<24x512xbf16, #tpu.memory_space<vmem>>, vector<8x32xbf16>
    tpu.vector_store %arg14[%c16_294, %c0_295], %181 {strides = array<i32>} : memref<24x512xbf16, #tpu.memory_space<vmem>>, vector<8x32xbf16>,
    %c168_296 = arith.constant 168 : index
    %c0_297 = arith.constant 0 : index
    %183 = vector.load %arg13[%c168_296, %c0_297] : memref<512x32xbf16, #tpu.memory_space<vmem>>, vector<8x32xbf16>
    %c16_298 = arith.constant 16 : index
    %c32_299 = arith.constant 32 : index
    %184 = vector.load %arg14[%c16_298, %c32_299] : memref<24x512xbf16, #tpu.memory_space<vmem>>, vector<8x32xbf16>
    tpu.vector_store %arg14[%c16_298, %c32_299], %183 {strides = array<i32>} : memref<24x512xbf16, #tpu.memory_space<vmem>>, vector<8x32xbf16>,
    %c176_300 = arith.constant 176 : index
    %c0_301 = arith.constant 0 : index
    %185 = vector.load %arg13[%c176_300, %c0_301] : memref<512x32xbf16, #tpu.memory_space<vmem>>, vector<8x32xbf16>
    %c16_302 = arith.constant 16 : index
    %c64_303 = arith.constant 64 : index
    %186 = vector.load %arg14[%c16_302, %c64_303] : memref<24x512xbf16, #tpu.memory_space<vmem>>, vector<8x32xbf16>
    tpu.vector_store %arg14[%c16_302, %c64_303], %185 {strides = array<i32>} : memref<24x512xbf16, #tpu.memory_space<vmem>>, vector<8x32xbf16>,
    %c184_304 = arith.constant 184 : index
    %c0_305 = arith.constant 0 : index
    %187 = vector.load %arg13[%c184_304, %c0_305] : memref<512x32xbf16, #tpu.memory_space<vmem>>, vector<8x32xbf16>
    %c16_306 = arith.constant 16 : index
    %c96_307 = arith.constant 96 : index
    %188 = vector.load %arg14[%c16_306, %c96_307] : memref<24x512xbf16, #tpu.memory_space<vmem>>, vector<8x32xbf16>
    tpu.vector_store %arg14[%c16_306, %c96_307], %187 {strides = array<i32>} : memref<24x512xbf16, #tpu.memory_space<vmem>>, vector<8x32xbf16>,
    %c224_308 = arith.constant 224 : index
    %c0_309 = arith.constant 0 : index
    %189 = vector.load %arg13[%c224_308, %c0_309] : memref<512x32xbf16, #tpu.memory_space<vmem>>, vector<8x32xbf16>
    %c16_310 = arith.constant 16 : index
    %c128_311 = arith.constant 128 : index
    %190 = vector.load %arg14[%c16_310, %c128_311] : memref<24x512xbf16, #tpu.memory_space<vmem>>, vector<8x32xbf16>
    tpu.vector_store %arg14[%c16_310, %c128_311], %189 {strides = array<i32>} : memref<24x512xbf16, #tpu.memory_space<vmem>>, vector<8x32xbf16>,
    %c232_312 = arith.constant 232 : index
    %c0_313 = arith.constant 0 : index
    %191 = vector.load %arg13[%c232_312, %c0_313] : memref<512x32xbf16, #tpu.memory_space<vmem>>, vector<8x32xbf16>
    %c16_314 = arith.constant 16 : index
    %c160_315 = arith.constant 160 : index
    %192 = vector.load %arg14[%c16_314, %c160_315] : memref<24x512xbf16, #tpu.memory_space<vmem>>, vector<8x32xbf16>
    tpu.vector_store %arg14[%c16_314, %c160_315], %191 {strides = array<i32>} : memref<24x512xbf16, #tpu.memory_space<vmem>>, vector<8x32xbf16>,
    %c240_316 = arith.constant 240 : index
    %c0_317 = arith.constant 0 : index
    %193 = vector.load %arg13[%c240_316, %c0_317] : memref<512x32xbf16, #tpu.memory_space<vmem>>, vector<8x32xbf16>
    %c16_318 = arith.constant 16 : index
    %c192_319 = arith.constant 192 : index
    %194 = vector.load %arg14[%c16_318, %c192_319] : memref<24x512xbf16, #tpu.memory_space<vmem>>, vector<8x32xbf16>
    tpu.vector_store %arg14[%c16_318, %c192_319], %193 {strides = array<i32>} : memref<24x512xbf16, #tpu.memory_space<vmem>>, vector<8x32xbf16>,
    %c248_320 = arith.constant 248 : index
    %c0_321 = arith.constant 0 : index
    %195 = vector.load %arg13[%c248_320, %c0_321] : memref<512x32xbf16, #tpu.memory_space<vmem>>, vector<8x32xbf16>
    %c16_322 = arith.constant 16 : index
    %c224_323 = arith.constant 224 : index
    %196 = vector.load %arg14[%c16_322, %c224_323] : memref<24x512xbf16, #tpu.memory_space<vmem>>, vector<8x32xbf16>
    tpu.vector_store %arg14[%c16_322, %c224_323], %195 {strides = array<i32>} : memref<24x512xbf16, #tpu.memory_space<vmem>>, vector<8x32xbf16>,
    %c288_324 = arith.constant 288 : index
    %c0_325 = arith.constant 0 : index
    %197 = vector.load %arg13[%c288_324, %c0_325] : memref<512x32xbf16, #tpu.memory_space<vmem>>, vector<8x32xbf16>
    %c16_326 = arith.constant 16 : index
    %c256_327 = arith.constant 256 : index
    %198 = vector.load %arg14[%c16_326, %c256_327] : memref<24x512xbf16, #tpu.memory_space<vmem>>, vector<8x32xbf16>
    tpu.vector_store %arg14[%c16_326, %c256_327], %197 {strides = array<i32>} : memref<24x512xbf16, #tpu.memory_space<vmem>>, vector<8x32xbf16>,
    %c296_328 = arith.constant 296 : index
    %c0_329 = arith.constant 0 : index
    %199 = vector.load %arg13[%c296_328, %c0_329] : memref<512x32xbf16, #tpu.memory_space<vmem>>, vector<8x32xbf16>
    %c16_330 = arith.constant 16 : index
    %c288_331 = arith.constant 288 : index
    %200 = vector.load %arg14[%c16_330, %c288_331] : memref<24x512xbf16, #tpu.memory_space<vmem>>, vector<8x32xbf16>
    tpu.vector_store %arg14[%c16_330, %c288_331], %199 {strides = array<i32>} : memref<24x512xbf16, #tpu.memory_space<vmem>>, vector<8x32xbf16>,
    %c304 = arith.constant 304 : index
    %c0_332 = arith.constant 0 : index
    %201 = vector.load %arg13[%c304, %c0_332] : memref<512x32xbf16, #tpu.memory_space<vmem>>, vector<8x32xbf16>
    %c16_333 = arith.constant 16 : index
    %c320_334 = arith.constant 320 : index
    %202 = vector.load %arg14[%c16_333, %c320_334] : memref<24x512xbf16, #tpu.memory_space<vmem>>, vector<8x32xbf16>
    tpu.vector_store %arg14[%c16_333, %c320_334], %201 {strides = array<i32>} : memref<24x512xbf16, #tpu.memory_space<vmem>>, vector<8x32xbf16>,
    %c312 = arith.constant 312 : index
    %c0_335 = arith.constant 0 : index
    %203 = vector.load %arg13[%c312, %c0_335] : memref<512x32xbf16, #tpu.memory_space<vmem>>, vector<8x32xbf16>
    %c16_336 = arith.constant 16 : index
    %c352_337 = arith.constant 352 : index
    %204 = vector.load %arg14[%c16_336, %c352_337] : memref<24x512xbf16, #tpu.memory_space<vmem>>, vector<8x32xbf16>
    tpu.vector_store %arg14[%c16_336, %c352_337], %203 {strides = array<i32>} : memref<24x512xbf16, #tpu.memory_space<vmem>>, vector<8x32xbf16>,
    %c352_338 = arith.constant 352 : index
    %c0_339 = arith.constant 0 : index
    %205 = vector.load %arg13[%c352_338, %c0_339] : memref<512x32xbf16, #tpu.memory_space<vmem>>, vector<8x32xbf16>
    %c16_340 = arith.constant 16 : index
    %c384_341 = arith.constant 384 : index
    %206 = vector.load %arg14[%c16_340, %c384_341] : memref<24x512xbf16, #tpu.memory_space<vmem>>, vector<8x32xbf16>
    tpu.vector_store %arg14[%c16_340, %c384_341], %205 {strides = array<i32>} : memref<24x512xbf16, #tpu.memory_space<vmem>>, vector<8x32xbf16>,
    %c360_342 = arith.constant 360 : index
    %c0_343 = arith.constant 0 : index
    %207 = vector.load %arg13[%c360_342, %c0_343] : memref<512x32xbf16, #tpu.memory_space<vmem>>, vector<8x32xbf16>
    %c16_344 = arith.constant 16 : index
    %c416_345 = arith.constant 416 : index
    %208 = vector.load %arg14[%c16_344, %c416_345] : memref<24x512xbf16, #tpu.memory_space<vmem>>, vector<8x32xbf16>
    tpu.vector_store %arg14[%c16_344, %c416_345], %207 {strides = array<i32>} : memref<24x512xbf16, #tpu.memory_space<vmem>>, vector<8x32xbf16>,
    %c368 = arith.constant 368 : index
    %c0_346 = arith.constant 0 : index
    %209 = vector.load %arg13[%c368, %c0_346] : memref<512x32xbf16, #tpu.memory_space<vmem>>, vector<8x32xbf16>
    %c16_347 = arith.constant 16 : index
    %c448_348 = arith.constant 448 : index
    %210 = vector.load %arg14[%c16_347, %c448_348] : memref<24x512xbf16, #tpu.memory_space<vmem>>, vector<8x32xbf16>
    tpu.vector_store %arg14[%c16_347, %c448_348], %209 {strides = array<i32>} : memref<24x512xbf16, #tpu.memory_space<vmem>>, vector<8x32xbf16>,
    %c376 = arith.constant 376 : index
    %c0_349 = arith.constant 0 : index
    %211 = vector.load %arg13[%c376, %c0_349] : memref<512x32xbf16, #tpu.memory_space<vmem>>, vector<8x32xbf16>
    %c16_350 = arith.constant 16 : index
    %c480_351 = arith.constant 480 : index
    %212 = vector.load %arg14[%c16_350, %c480_351] : memref<24x512xbf16, #tpu.memory_space<vmem>>, vector<8x32xbf16>
    tpu.vector_store %arg14[%c16_350, %c480_351], %211 {strides = array<i32>} : memref<24x512xbf16, #tpu.memory_space<vmem>>, vector<8x32xbf16>,
    %c0_352 = arith.constant 0 : index
    %c0_353 = arith.constant 0 : index
    %213 = vector.load %arg14[%c0_352, %c0_353] : memref<24x512xbf16, #tpu.memory_space<vmem>>, vector<24x512xbf16>
    %cst_354 = arith.constant dense<0.000000e+00> : vector<24x64xf32>
    %214 = tpu.matmul %213, %11, %cst_354 {dimension_numbers = #tpu.dot_dimension_numbers<[1], [0], [0], [1], [0, 0, 1, 1], [], []>} : vector<24x512xbf16>, vector<512x64xbf16>, vector<24x64xf32> -> vector<24x64xf32>
    %215 = vector.broadcast %12 : vector<1x64xf32> to vector<24x64xf32>
    %216 = arith.addf %214, %215 : vector<24x64xf32>
    %cst_355 = arith.constant 0.000000e+00 : f32
    %217 = vector.broadcast %cst_355 : f32 to vector<24x64xf32>
    %218 = arith.maximumf %216, %217 : vector<24x64xf32>
    %219 = arith.truncf %218 : vector<24x64xf32> to vector<24x64xbf16>
    %c24_356 = arith.constant 24 : index
    %c0_357 = arith.constant 0 : index
    %220 = vector.load %arg15[%c24_356, %c0_357] : memref<72x64xbf16, #tpu.memory_space<vmem>>, vector<24x64xbf16>
    tpu.vector_store %arg15[%c24_356, %c0_357], %219 {strides = array<i32>} : memref<72x64xbf16, #tpu.memory_space<vmem>>, vector<24x64xbf16>,
    %c256_358 = arith.constant 256 : index
    %c0_359 = arith.constant 0 : index
    %221 = vector.load %arg13[%c256_358, %c0_359] : memref<512x32xbf16, #tpu.memory_space<vmem>>, vector<8x32xbf16>
    %c0_360 = arith.constant 0 : index
    %c0_361 = arith.constant 0 : index
    %222 = vector.load %arg14[%c0_360, %c0_361] : memref<24x512xbf16, #tpu.memory_space<vmem>>, vector<8x32xbf16>
    tpu.vector_store %arg14[%c0_360, %c0_361], %221 {strides = array<i32>} : memref<24x512xbf16, #tpu.memory_space<vmem>>, vector<8x32xbf16>,
    %c264_362 = arith.constant 264 : index
    %c0_363 = arith.constant 0 : index
    %223 = vector.load %arg13[%c264_362, %c0_363] : memref<512x32xbf16, #tpu.memory_space<vmem>>, vector<8x32xbf16>
    %c0_364 = arith.constant 0 : index
    %c32_365 = arith.constant 32 : index
    %224 = vector.load %arg14[%c0_364, %c32_365] : memref<24x512xbf16, #tpu.memory_space<vmem>>, vector<8x32xbf16>
    tpu.vector_store %arg14[%c0_364, %c32_365], %223 {strides = array<i32>} : memref<24x512xbf16, #tpu.memory_space<vmem>>, vector<8x32xbf16>,
    %c272_366 = arith.constant 272 : index
    %c0_367 = arith.constant 0 : index
    %225 = vector.load %arg13[%c272_366, %c0_367] : memref<512x32xbf16, #tpu.memory_space<vmem>>, vector<8x32xbf16>
    %c0_368 = arith.constant 0 : index
    %c64_369 = arith.constant 64 : index
    %226 = vector.load %arg14[%c0_368, %c64_369] : memref<24x512xbf16, #tpu.memory_space<vmem>>, vector<8x32xbf16>
    tpu.vector_store %arg14[%c0_368, %c64_369], %225 {strides = array<i32>} : memref<24x512xbf16, #tpu.memory_space<vmem>>, vector<8x32xbf16>,
    %c280_370 = arith.constant 280 : index
    %c0_371 = arith.constant 0 : index
    %227 = vector.load %arg13[%c280_370, %c0_371] : memref<512x32xbf16, #tpu.memory_space<vmem>>, vector<8x32xbf16>
    %c0_372 = arith.constant 0 : index
    %c96_373 = arith.constant 96 : index
    %228 = vector.load %arg14[%c0_372, %c96_373] : memref<24x512xbf16, #tpu.memory_space<vmem>>, vector<8x32xbf16>
    tpu.vector_store %arg14[%c0_372, %c96_373], %227 {strides = array<i32>} : memref<24x512xbf16, #tpu.memory_space<vmem>>, vector<8x32xbf16>,
    %c320_374 = arith.constant 320 : index
    %c0_375 = arith.constant 0 : index
    %229 = vector.load %arg13[%c320_374, %c0_375] : memref<512x32xbf16, #tpu.memory_space<vmem>>, vector<8x32xbf16>
    %c0_376 = arith.constant 0 : index
    %c128_377 = arith.constant 128 : index
    %230 = vector.load %arg14[%c0_376, %c128_377] : memref<24x512xbf16, #tpu.memory_space<vmem>>, vector<8x32xbf16>
    tpu.vector_store %arg14[%c0_376, %c128_377], %229 {strides = array<i32>} : memref<24x512xbf16, #tpu.memory_space<vmem>>, vector<8x32xbf16>,
    %c328_378 = arith.constant 328 : index
    %c0_379 = arith.constant 0 : index
    %231 = vector.load %arg13[%c328_378, %c0_379] : memref<512x32xbf16, #tpu.memory_space<vmem>>, vector<8x32xbf16>
    %c0_380 = arith.constant 0 : index
    %c160_381 = arith.constant 160 : index
    %232 = vector.load %arg14[%c0_380, %c160_381] : memref<24x512xbf16, #tpu.memory_space<vmem>>, vector<8x32xbf16>
    tpu.vector_store %arg14[%c0_380, %c160_381], %231 {strides = array<i32>} : memref<24x512xbf16, #tpu.memory_space<vmem>>, vector<8x32xbf16>,
    %c336_382 = arith.constant 336 : index
    %c0_383 = arith.constant 0 : index
    %233 = vector.load %arg13[%c336_382, %c0_383] : memref<512x32xbf16, #tpu.memory_space<vmem>>, vector<8x32xbf16>
    %c0_384 = arith.constant 0 : index
    %c192_385 = arith.constant 192 : index
    %234 = vector.load %arg14[%c0_384, %c192_385] : memref<24x512xbf16, #tpu.memory_space<vmem>>, vector<8x32xbf16>
    tpu.vector_store %arg14[%c0_384, %c192_385], %233 {strides = array<i32>} : memref<24x512xbf16, #tpu.memory_space<vmem>>, vector<8x32xbf16>,
    %c344_386 = arith.constant 344 : index
    %c0_387 = arith.constant 0 : index
    %235 = vector.load %arg13[%c344_386, %c0_387] : memref<512x32xbf16, #tpu.memory_space<vmem>>, vector<8x32xbf16>
    %c0_388 = arith.constant 0 : index
    %c224_389 = arith.constant 224 : index
    %236 = vector.load %arg14[%c0_388, %c224_389] : memref<24x512xbf16, #tpu.memory_space<vmem>>, vector<8x32xbf16>
    tpu.vector_store %arg14[%c0_388, %c224_389], %235 {strides = array<i32>} : memref<24x512xbf16, #tpu.memory_space<vmem>>, vector<8x32xbf16>,
    %c384_390 = arith.constant 384 : index
    %c0_391 = arith.constant 0 : index
    %237 = vector.load %arg13[%c384_390, %c0_391] : memref<512x32xbf16, #tpu.memory_space<vmem>>, vector<8x32xbf16>
    %c0_392 = arith.constant 0 : index
    %c256_393 = arith.constant 256 : index
    %238 = vector.load %arg14[%c0_392, %c256_393] : memref<24x512xbf16, #tpu.memory_space<vmem>>, vector<8x32xbf16>
    tpu.vector_store %arg14[%c0_392, %c256_393], %237 {strides = array<i32>} : memref<24x512xbf16, #tpu.memory_space<vmem>>, vector<8x32xbf16>,
    %c392 = arith.constant 392 : index
    %c0_394 = arith.constant 0 : index
    %239 = vector.load %arg13[%c392, %c0_394] : memref<512x32xbf16, #tpu.memory_space<vmem>>, vector<8x32xbf16>
    %c0_395 = arith.constant 0 : index
    %c288_396 = arith.constant 288 : index
    %240 = vector.load %arg14[%c0_395, %c288_396] : memref<24x512xbf16, #tpu.memory_space<vmem>>, vector<8x32xbf16>
    tpu.vector_store %arg14[%c0_395, %c288_396], %239 {strides = array<i32>} : memref<24x512xbf16, #tpu.memory_space<vmem>>, vector<8x32xbf16>,
    %c400 = arith.constant 400 : index
    %c0_397 = arith.constant 0 : index
    %241 = vector.load %arg13[%c400, %c0_397] : memref<512x32xbf16, #tpu.memory_space<vmem>>, vector<8x32xbf16>
    %c0_398 = arith.constant 0 : index
    %c320_399 = arith.constant 320 : index
    %242 = vector.load %arg14[%c0_398, %c320_399] : memref<24x512xbf16, #tpu.memory_space<vmem>>, vector<8x32xbf16>
    tpu.vector_store %arg14[%c0_398, %c320_399], %241 {strides = array<i32>} : memref<24x512xbf16, #tpu.memory_space<vmem>>, vector<8x32xbf16>,
    %c408 = arith.constant 408 : index
    %c0_400 = arith.constant 0 : index
    %243 = vector.load %arg13[%c408, %c0_400] : memref<512x32xbf16, #tpu.memory_space<vmem>>, vector<8x32xbf16>
    %c0_401 = arith.constant 0 : index
    %c352_402 = arith.constant 352 : index
    %244 = vector.load %arg14[%c0_401, %c352_402] : memref<24x512xbf16, #tpu.memory_space<vmem>>, vector<8x32xbf16>
    tpu.vector_store %arg14[%c0_401, %c352_402], %243 {strides = array<i32>} : memref<24x512xbf16, #tpu.memory_space<vmem>>, vector<8x32xbf16>,
    %c448_403 = arith.constant 448 : index
    %c0_404 = arith.constant 0 : index
    %245 = vector.load %arg13[%c448_403, %c0_404] : memref<512x32xbf16, #tpu.memory_space<vmem>>, vector<8x32xbf16>
    %c0_405 = arith.constant 0 : index
    %c384_406 = arith.constant 384 : index
    %246 = vector.load %arg14[%c0_405, %c384_406] : memref<24x512xbf16, #tpu.memory_space<vmem>>, vector<8x32xbf16>
    tpu.vector_store %arg14[%c0_405, %c384_406], %245 {strides = array<i32>} : memref<24x512xbf16, #tpu.memory_space<vmem>>, vector<8x32xbf16>,
    %c456 = arith.constant 456 : index
    %c0_407 = arith.constant 0 : index
    %247 = vector.load %arg13[%c456, %c0_407] : memref<512x32xbf16, #tpu.memory_space<vmem>>, vector<8x32xbf16>
    %c0_408 = arith.constant 0 : index
    %c416_409 = arith.constant 416 : index
    %248 = vector.load %arg14[%c0_408, %c416_409] : memref<24x512xbf16, #tpu.memory_space<vmem>>, vector<8x32xbf16>
    tpu.vector_store %arg14[%c0_408, %c416_409], %247 {strides = array<i32>} : memref<24x512xbf16, #tpu.memory_space<vmem>>, vector<8x32xbf16>,
    %c464 = arith.constant 464 : index
    %c0_410 = arith.constant 0 : index
    %249 = vector.load %arg13[%c464, %c0_410] : memref<512x32xbf16, #tpu.memory_space<vmem>>, vector<8x32xbf16>
    %c0_411 = arith.constant 0 : index
    %c448_412 = arith.constant 448 : index
    %250 = vector.load %arg14[%c0_411, %c448_412] : memref<24x512xbf16, #tpu.memory_space<vmem>>, vector<8x32xbf16>
    tpu.vector_store %arg14[%c0_411, %c448_412], %249 {strides = array<i32>} : memref<24x512xbf16, #tpu.memory_space<vmem>>, vector<8x32xbf16>,
    %c472 = arith.constant 472 : index
    %c0_413 = arith.constant 0 : index
    %251 = vector.load %arg13[%c472, %c0_413] : memref<512x32xbf16, #tpu.memory_space<vmem>>, vector<8x32xbf16>
    %c0_414 = arith.constant 0 : index
    %c480_415 = arith.constant 480 : index
    %252 = vector.load %arg14[%c0_414, %c480_415] : memref<24x512xbf16, #tpu.memory_space<vmem>>, vector<8x32xbf16>
    tpu.vector_store %arg14[%c0_414, %c480_415], %251 {strides = array<i32>} : memref<24x512xbf16, #tpu.memory_space<vmem>>, vector<8x32xbf16>,
    %c272_416 = arith.constant 272 : index
    %c0_417 = arith.constant 0 : index
    %253 = vector.load %arg13[%c272_416, %c0_417] : memref<512x32xbf16, #tpu.memory_space<vmem>>, vector<8x32xbf16>
    %c8_418 = arith.constant 8 : index
    %c0_419 = arith.constant 0 : index
    %254 = vector.load %arg14[%c8_418, %c0_419] : memref<24x512xbf16, #tpu.memory_space<vmem>>, vector<8x32xbf16>
    tpu.vector_store %arg14[%c8_418, %c0_419], %253 {strides = array<i32>} : memref<24x512xbf16, #tpu.memory_space<vmem>>, vector<8x32xbf16>,
    %c280_420 = arith.constant 280 : index
    %c0_421 = arith.constant 0 : index
    %255 = vector.load %arg13[%c280_420, %c0_421] : memref<512x32xbf16, #tpu.memory_space<vmem>>, vector<8x32xbf16>
    %c8_422 = arith.constant 8 : index
    %c32_423 = arith.constant 32 : index
    %256 = vector.load %arg14[%c8_422, %c32_423] : memref<24x512xbf16, #tpu.memory_space<vmem>>, vector<8x32xbf16>
    tpu.vector_store %arg14[%c8_422, %c32_423], %255 {strides = array<i32>} : memref<24x512xbf16, #tpu.memory_space<vmem>>, vector<8x32xbf16>,
    %c288_424 = arith.constant 288 : index
    %c0_425 = arith.constant 0 : index
    %257 = vector.load %arg13[%c288_424, %c0_425] : memref<512x32xbf16, #tpu.memory_space<vmem>>, vector<8x32xbf16>
    %c8_426 = arith.constant 8 : index
    %c64_427 = arith.constant 64 : index
    %258 = vector.load %arg14[%c8_426, %c64_427] : memref<24x512xbf16, #tpu.memory_space<vmem>>, vector<8x32xbf16>
    tpu.vector_store %arg14[%c8_426, %c64_427], %257 {strides = array<i32>} : memref<24x512xbf16, #tpu.memory_space<vmem>>, vector<8x32xbf16>,
    %c296_428 = arith.constant 296 : index
    %c0_429 = arith.constant 0 : index
    %259 = vector.load %arg13[%c296_428, %c0_429] : memref<512x32xbf16, #tpu.memory_space<vmem>>, vector<8x32xbf16>
    %c8_430 = arith.constant 8 : index
    %c96_431 = arith.constant 96 : index
    %260 = vector.load %arg14[%c8_430, %c96_431] : memref<24x512xbf16, #tpu.memory_space<vmem>>, vector<8x32xbf16>
    tpu.vector_store %arg14[%c8_430, %c96_431], %259 {strides = array<i32>} : memref<24x512xbf16, #tpu.memory_space<vmem>>, vector<8x32xbf16>,
    %c336_432 = arith.constant 336 : index
    %c0_433 = arith.constant 0 : index
    %261 = vector.load %arg13[%c336_432, %c0_433] : memref<512x32xbf16, #tpu.memory_space<vmem>>, vector<8x32xbf16>
    %c8_434 = arith.constant 8 : index
    %c128_435 = arith.constant 128 : index
    %262 = vector.load %arg14[%c8_434, %c128_435] : memref<24x512xbf16, #tpu.memory_space<vmem>>, vector<8x32xbf16>
    tpu.vector_store %arg14[%c8_434, %c128_435], %261 {strides = array<i32>} : memref<24x512xbf16, #tpu.memory_space<vmem>>, vector<8x32xbf16>,
    %c344_436 = arith.constant 344 : index
    %c0_437 = arith.constant 0 : index
    %263 = vector.load %arg13[%c344_436, %c0_437] : memref<512x32xbf16, #tpu.memory_space<vmem>>, vector<8x32xbf16>
    %c8_438 = arith.constant 8 : index
    %c160_439 = arith.constant 160 : index
    %264 = vector.load %arg14[%c8_438, %c160_439] : memref<24x512xbf16, #tpu.memory_space<vmem>>, vector<8x32xbf16>
    tpu.vector_store %arg14[%c8_438, %c160_439], %263 {strides = array<i32>} : memref<24x512xbf16, #tpu.memory_space<vmem>>, vector<8x32xbf16>,
    %c352_440 = arith.constant 352 : index
    %c0_441 = arith.constant 0 : index
    %265 = vector.load %arg13[%c352_440, %c0_441] : memref<512x32xbf16, #tpu.memory_space<vmem>>, vector<8x32xbf16>
    %c8_442 = arith.constant 8 : index
    %c192_443 = arith.constant 192 : index
    %266 = vector.load %arg14[%c8_442, %c192_443] : memref<24x512xbf16, #tpu.memory_space<vmem>>, vector<8x32xbf16>
    tpu.vector_store %arg14[%c8_442, %c192_443], %265 {strides = array<i32>} : memref<24x512xbf16, #tpu.memory_space<vmem>>, vector<8x32xbf16>,
    %c360_444 = arith.constant 360 : index
    %c0_445 = arith.constant 0 : index
    %267 = vector.load %arg13[%c360_444, %c0_445] : memref<512x32xbf16, #tpu.memory_space<vmem>>, vector<8x32xbf16>
    %c8_446 = arith.constant 8 : index
    %c224_447 = arith.constant 224 : index
    %268 = vector.load %arg14[%c8_446, %c224_447] : memref<24x512xbf16, #tpu.memory_space<vmem>>, vector<8x32xbf16>
    tpu.vector_store %arg14[%c8_446, %c224_447], %267 {strides = array<i32>} : memref<24x512xbf16, #tpu.memory_space<vmem>>, vector<8x32xbf16>,
    %c400_448 = arith.constant 400 : index
    %c0_449 = arith.constant 0 : index
    %269 = vector.load %arg13[%c400_448, %c0_449] : memref<512x32xbf16, #tpu.memory_space<vmem>>, vector<8x32xbf16>
    %c8_450 = arith.constant 8 : index
    %c256_451 = arith.constant 256 : index
    %270 = vector.load %arg14[%c8_450, %c256_451] : memref<24x512xbf16, #tpu.memory_space<vmem>>, vector<8x32xbf16>
    tpu.vector_store %arg14[%c8_450, %c256_451], %269 {strides = array<i32>} : memref<24x512xbf16, #tpu.memory_space<vmem>>, vector<8x32xbf16>,
    %c408_452 = arith.constant 408 : index
    %c0_453 = arith.constant 0 : index
    %271 = vector.load %arg13[%c408_452, %c0_453] : memref<512x32xbf16, #tpu.memory_space<vmem>>, vector<8x32xbf16>
    %c8_454 = arith.constant 8 : index
    %c288_455 = arith.constant 288 : index
    %272 = vector.load %arg14[%c8_454, %c288_455] : memref<24x512xbf16, #tpu.memory_space<vmem>>, vector<8x32xbf16>
    tpu.vector_store %arg14[%c8_454, %c288_455], %271 {strides = array<i32>} : memref<24x512xbf16, #tpu.memory_space<vmem>>, vector<8x32xbf16>,
    %c416_456 = arith.constant 416 : index
    %c0_457 = arith.constant 0 : index
    %273 = vector.load %arg13[%c416_456, %c0_457] : memref<512x32xbf16, #tpu.memory_space<vmem>>, vector<8x32xbf16>
    %c8_458 = arith.constant 8 : index
    %c320_459 = arith.constant 320 : index
    %274 = vector.load %arg14[%c8_458, %c320_459] : memref<24x512xbf16, #tpu.memory_space<vmem>>, vector<8x32xbf16>
    tpu.vector_store %arg14[%c8_458, %c320_459], %273 {strides = array<i32>} : memref<24x512xbf16, #tpu.memory_space<vmem>>, vector<8x32xbf16>,
    %c424 = arith.constant 424 : index
    %c0_460 = arith.constant 0 : index
    %275 = vector.load %arg13[%c424, %c0_460] : memref<512x32xbf16, #tpu.memory_space<vmem>>, vector<8x32xbf16>
    %c8_461 = arith.constant 8 : index
    %c352_462 = arith.constant 352 : index
    %276 = vector.load %arg14[%c8_461, %c352_462] : memref<24x512xbf16, #tpu.memory_space<vmem>>, vector<8x32xbf16>
    tpu.vector_store %arg14[%c8_461, %c352_462], %275 {strides = array<i32>} : memref<24x512xbf16, #tpu.memory_space<vmem>>, vector<8x32xbf16>,
    %c464_463 = arith.constant 464 : index
    %c0_464 = arith.constant 0 : index
    %277 = vector.load %arg13[%c464_463, %c0_464] : memref<512x32xbf16, #tpu.memory_space<vmem>>, vector<8x32xbf16>
    %c8_465 = arith.constant 8 : index
    %c384_466 = arith.constant 384 : index
    %278 = vector.load %arg14[%c8_465, %c384_466] : memref<24x512xbf16, #tpu.memory_space<vmem>>, vector<8x32xbf16>
    tpu.vector_store %arg14[%c8_465, %c384_466], %277 {strides = array<i32>} : memref<24x512xbf16, #tpu.memory_space<vmem>>, vector<8x32xbf16>,
    %c472_467 = arith.constant 472 : index
    %c0_468 = arith.constant 0 : index
    %279 = vector.load %arg13[%c472_467, %c0_468] : memref<512x32xbf16, #tpu.memory_space<vmem>>, vector<8x32xbf16>
    %c8_469 = arith.constant 8 : index
    %c416_470 = arith.constant 416 : index
    %280 = vector.load %arg14[%c8_469, %c416_470] : memref<24x512xbf16, #tpu.memory_space<vmem>>, vector<8x32xbf16>
    tpu.vector_store %arg14[%c8_469, %c416_470], %279 {strides = array<i32>} : memref<24x512xbf16, #tpu.memory_space<vmem>>, vector<8x32xbf16>,
    %c480_471 = arith.constant 480 : index
    %c0_472 = arith.constant 0 : index
    %281 = vector.load %arg13[%c480_471, %c0_472] : memref<512x32xbf16, #tpu.memory_space<vmem>>, vector<8x32xbf16>
    %c8_473 = arith.constant 8 : index
    %c448_474 = arith.constant 448 : index
    %282 = vector.load %arg14[%c8_473, %c448_474] : memref<24x512xbf16, #tpu.memory_space<vmem>>, vector<8x32xbf16>
    tpu.vector_store %arg14[%c8_473, %c448_474], %281 {strides = array<i32>} : memref<24x512xbf16, #tpu.memory_space<vmem>>, vector<8x32xbf16>,
    %c488 = arith.constant 488 : index
    %c0_475 = arith.constant 0 : index
    %283 = vector.load %arg13[%c488, %c0_475] : memref<512x32xbf16, #tpu.memory_space<vmem>>, vector<8x32xbf16>
    %c8_476 = arith.constant 8 : index
    %c480_477 = arith.constant 480 : index
    %284 = vector.load %arg14[%c8_476, %c480_477] : memref<24x512xbf16, #tpu.memory_space<vmem>>, vector<8x32xbf16>
    tpu.vector_store %arg14[%c8_476, %c480_477], %283 {strides = array<i32>} : memref<24x512xbf16, #tpu.memory_space<vmem>>, vector<8x32xbf16>,
    %c288_478 = arith.constant 288 : index
    %c0_479 = arith.constant 0 : index
    %285 = vector.load %arg13[%c288_478, %c0_479] : memref<512x32xbf16, #tpu.memory_space<vmem>>, vector<8x32xbf16>
    %c16_480 = arith.constant 16 : index
    %c0_481 = arith.constant 0 : index
    %286 = vector.load %arg14[%c16_480, %c0_481] : memref<24x512xbf16, #tpu.memory_space<vmem>>, vector<8x32xbf16>
    tpu.vector_store %arg14[%c16_480, %c0_481], %285 {strides = array<i32>} : memref<24x512xbf16, #tpu.memory_space<vmem>>, vector<8x32xbf16>,
    %c296_482 = arith.constant 296 : index
    %c0_483 = arith.constant 0 : index
    %287 = vector.load %arg13[%c296_482, %c0_483] : memref<512x32xbf16, #tpu.memory_space<vmem>>, vector<8x32xbf16>
    %c16_484 = arith.constant 16 : index
    %c32_485 = arith.constant 32 : index
    %288 = vector.load %arg14[%c16_484, %c32_485] : memref<24x512xbf16, #tpu.memory_space<vmem>>, vector<8x32xbf16>
    tpu.vector_store %arg14[%c16_484, %c32_485], %287 {strides = array<i32>} : memref<24x512xbf16, #tpu.memory_space<vmem>>, vector<8x32xbf16>,
    %c304_486 = arith.constant 304 : index
    %c0_487 = arith.constant 0 : index
    %289 = vector.load %arg13[%c304_486, %c0_487] : memref<512x32xbf16, #tpu.memory_space<vmem>>, vector<8x32xbf16>
    %c16_488 = arith.constant 16 : index
    %c64_489 = arith.constant 64 : index
    %290 = vector.load %arg14[%c16_488, %c64_489] : memref<24x512xbf16, #tpu.memory_space<vmem>>, vector<8x32xbf16>
    tpu.vector_store %arg14[%c16_488, %c64_489], %289 {strides = array<i32>} : memref<24x512xbf16, #tpu.memory_space<vmem>>, vector<8x32xbf16>,
    %c312_490 = arith.constant 312 : index
    %c0_491 = arith.constant 0 : index
    %291 = vector.load %arg13[%c312_490, %c0_491] : memref<512x32xbf16, #tpu.memory_space<vmem>>, vector<8x32xbf16>
    %c16_492 = arith.constant 16 : index
    %c96_493 = arith.constant 96 : index
    %292 = vector.load %arg14[%c16_492, %c96_493] : memref<24x512xbf16, #tpu.memory_space<vmem>>, vector<8x32xbf16>
    tpu.vector_store %arg14[%c16_492, %c96_493], %291 {strides = array<i32>} : memref<24x512xbf16, #tpu.memory_space<vmem>>, vector<8x32xbf16>,
    %c352_494 = arith.constant 352 : index
    %c0_495 = arith.constant 0 : index
    %293 = vector.load %arg13[%c352_494, %c0_495] : memref<512x32xbf16, #tpu.memory_space<vmem>>, vector<8x32xbf16>
    %c16_496 = arith.constant 16 : index
    %c128_497 = arith.constant 128 : index
    %294 = vector.load %arg14[%c16_496, %c128_497] : memref<24x512xbf16, #tpu.memory_space<vmem>>, vector<8x32xbf16>
    tpu.vector_store %arg14[%c16_496, %c128_497], %293 {strides = array<i32>} : memref<24x512xbf16, #tpu.memory_space<vmem>>, vector<8x32xbf16>,
    %c360_498 = arith.constant 360 : index
    %c0_499 = arith.constant 0 : index
    %295 = vector.load %arg13[%c360_498, %c0_499] : memref<512x32xbf16, #tpu.memory_space<vmem>>, vector<8x32xbf16>
    %c16_500 = arith.constant 16 : index
    %c160_501 = arith.constant 160 : index
    %296 = vector.load %arg14[%c16_500, %c160_501] : memref<24x512xbf16, #tpu.memory_space<vmem>>, vector<8x32xbf16>
    tpu.vector_store %arg14[%c16_500, %c160_501], %295 {strides = array<i32>} : memref<24x512xbf16, #tpu.memory_space<vmem>>, vector<8x32xbf16>,
    %c368_502 = arith.constant 368 : index
    %c0_503 = arith.constant 0 : index
    %297 = vector.load %arg13[%c368_502, %c0_503] : memref<512x32xbf16, #tpu.memory_space<vmem>>, vector<8x32xbf16>
    %c16_504 = arith.constant 16 : index
    %c192_505 = arith.constant 192 : index
    %298 = vector.load %arg14[%c16_504, %c192_505] : memref<24x512xbf16, #tpu.memory_space<vmem>>, vector<8x32xbf16>
    tpu.vector_store %arg14[%c16_504, %c192_505], %297 {strides = array<i32>} : memref<24x512xbf16, #tpu.memory_space<vmem>>, vector<8x32xbf16>,
    %c376_506 = arith.constant 376 : index
    %c0_507 = arith.constant 0 : index
    %299 = vector.load %arg13[%c376_506, %c0_507] : memref<512x32xbf16, #tpu.memory_space<vmem>>, vector<8x32xbf16>
    %c16_508 = arith.constant 16 : index
    %c224_509 = arith.constant 224 : index
    %300 = vector.load %arg14[%c16_508, %c224_509] : memref<24x512xbf16, #tpu.memory_space<vmem>>, vector<8x32xbf16>
    tpu.vector_store %arg14[%c16_508, %c224_509], %299 {strides = array<i32>} : memref<24x512xbf16, #tpu.memory_space<vmem>>, vector<8x32xbf16>,
    %c416_510 = arith.constant 416 : index
    %c0_511 = arith.constant 0 : index
    %301 = vector.load %arg13[%c416_510, %c0_511] : memref<512x32xbf16, #tpu.memory_space<vmem>>, vector<8x32xbf16>
    %c16_512 = arith.constant 16 : index
    %c256_513 = arith.constant 256 : index
    %302 = vector.load %arg14[%c16_512, %c256_513] : memref<24x512xbf16, #tpu.memory_space<vmem>>, vector<8x32xbf16>
    tpu.vector_store %arg14[%c16_512, %c256_513], %301 {strides = array<i32>} : memref<24x512xbf16, #tpu.memory_space<vmem>>, vector<8x32xbf16>,
    %c424_514 = arith.constant 424 : index
    %c0_515 = arith.constant 0 : index
    %303 = vector.load %arg13[%c424_514, %c0_515] : memref<512x32xbf16, #tpu.memory_space<vmem>>, vector<8x32xbf16>
    %c16_516 = arith.constant 16 : index
    %c288_517 = arith.constant 288 : index
    %304 = vector.load %arg14[%c16_516, %c288_517] : memref<24x512xbf16, #tpu.memory_space<vmem>>, vector<8x32xbf16>
    tpu.vector_store %arg14[%c16_516, %c288_517], %303 {strides = array<i32>} : memref<24x512xbf16, #tpu.memory_space<vmem>>, vector<8x32xbf16>,
    %c432 = arith.constant 432 : index
    %c0_518 = arith.constant 0 : index
    %305 = vector.load %arg13[%c432, %c0_518] : memref<512x32xbf16, #tpu.memory_space<vmem>>, vector<8x32xbf16>
    %c16_519 = arith.constant 16 : index
    %c320_520 = arith.constant 320 : index
    %306 = vector.load %arg14[%c16_519, %c320_520] : memref<24x512xbf16, #tpu.memory_space<vmem>>, vector<8x32xbf16>
    tpu.vector_store %arg14[%c16_519, %c320_520], %305 {strides = array<i32>} : memref<24x512xbf16, #tpu.memory_space<vmem>>, vector<8x32xbf16>,
    %c440 = arith.constant 440 : index
    %c0_521 = arith.constant 0 : index
    %307 = vector.load %arg13[%c440, %c0_521] : memref<512x32xbf16, #tpu.memory_space<vmem>>, vector<8x32xbf16>
    %c16_522 = arith.constant 16 : index
    %c352_523 = arith.constant 352 : index
    %308 = vector.load %arg14[%c16_522, %c352_523] : memref<24x512xbf16, #tpu.memory_space<vmem>>, vector<8x32xbf16>
    tpu.vector_store %arg14[%c16_522, %c352_523], %307 {strides = array<i32>} : memref<24x512xbf16, #tpu.memory_space<vmem>>, vector<8x32xbf16>,
    %c480_524 = arith.constant 480 : index
    %c0_525 = arith.constant 0 : index
    %309 = vector.load %arg13[%c480_524, %c0_525] : memref<512x32xbf16, #tpu.memory_space<vmem>>, vector<8x32xbf16>
    %c16_526 = arith.constant 16 : index
    %c384_527 = arith.constant 384 : index
    %310 = vector.load %arg14[%c16_526, %c384_527] : memref<24x512xbf16, #tpu.memory_space<vmem>>, vector<8x32xbf16>
    tpu.vector_store %arg14[%c16_526, %c384_527], %309 {strides = array<i32>} : memref<24x512xbf16, #tpu.memory_space<vmem>>, vector<8x32xbf16>,
    %c488_528 = arith.constant 488 : index
    %c0_529 = arith.constant 0 : index
    %311 = vector.load %arg13[%c488_528, %c0_529] : memref<512x32xbf16, #tpu.memory_space<vmem>>, vector<8x32xbf16>
    %c16_530 = arith.constant 16 : index
    %c416_531 = arith.constant 416 : index
    %312 = vector.load %arg14[%c16_530, %c416_531] : memref<24x512xbf16, #tpu.memory_space<vmem>>, vector<8x32xbf16>
    tpu.vector_store %arg14[%c16_530, %c416_531], %311 {strides = array<i32>} : memref<24x512xbf16, #tpu.memory_space<vmem>>, vector<8x32xbf16>,
    %c496 = arith.constant 496 : index
    %c0_532 = arith.constant 0 : index
    %313 = vector.load %arg13[%c496, %c0_532] : memref<512x32xbf16, #tpu.memory_space<vmem>>, vector<8x32xbf16>
    %c16_533 = arith.constant 16 : index
    %c448_534 = arith.constant 448 : index
    %314 = vector.load %arg14[%c16_533, %c448_534] : memref<24x512xbf16, #tpu.memory_space<vmem>>, vector<8x32xbf16>
    tpu.vector_store %arg14[%c16_533, %c448_534], %313 {strides = array<i32>} : memref<24x512xbf16, #tpu.memory_space<vmem>>, vector<8x32xbf16>,
    %c504 = arith.constant 504 : index
    %c0_535 = arith.constant 0 : index
    %315 = vector.load %arg13[%c504, %c0_535] : memref<512x32xbf16, #tpu.memory_space<vmem>>, vector<8x32xbf16>
    %c16_536 = arith.constant 16 : index
    %c480_537 = arith.constant 480 : index
    %316 = vector.load %arg14[%c16_536, %c480_537] : memref<24x512xbf16, #tpu.memory_space<vmem>>, vector<8x32xbf16>
    tpu.vector_store %arg14[%c16_536, %c480_537], %315 {strides = array<i32>} : memref<24x512xbf16, #tpu.memory_space<vmem>>, vector<8x32xbf16>,
    %c0_538 = arith.constant 0 : index
    %c0_539 = arith.constant 0 : index
    %317 = vector.load %arg14[%c0_538, %c0_539] : memref<24x512xbf16, #tpu.memory_space<vmem>>, vector<24x512xbf16>
    %cst_540 = arith.constant dense<0.000000e+00> : vector<24x64xf32>
    %318 = tpu.matmul %317, %11, %cst_540 {dimension_numbers = #tpu.dot_dimension_numbers<[1], [0], [0], [1], [0, 0, 1, 1], [], []>} : vector<24x512xbf16>, vector<512x64xbf16>, vector<24x64xf32> -> vector<24x64xf32>
    %319 = vector.broadcast %12 : vector<1x64xf32> to vector<24x64xf32>
    %320 = arith.addf %318, %319 : vector<24x64xf32>
    %cst_541 = arith.constant 0.000000e+00 : f32
    %321 = vector.broadcast %cst_541 : f32 to vector<24x64xf32>
    %322 = arith.maximumf %320, %321 : vector<24x64xf32>
    %323 = arith.truncf %322 : vector<24x64xf32> to vector<24x64xbf16>
    %c48_542 = arith.constant 48 : index
    %c0_543 = arith.constant 0 : index
    %324 = vector.load %arg15[%c48_542, %c0_543] : memref<72x64xbf16, #tpu.memory_space<vmem>>, vector<24x64xbf16>
    tpu.vector_store %arg15[%c48_542, %c0_543], %323 {strides = array<i32>} : memref<72x64xbf16, #tpu.memory_space<vmem>>, vector<24x64xbf16>,
    %cst_544 = arith.constant 0.000000e+00 : f32
    %325 = vector.broadcast %cst_544 : f32 to vector<8x64xf32>
    %c0_545 = arith.constant 0 : index
    %c0_546 = arith.constant 0 : index
    %326 = vector.load %arg15[%c0_545, %c0_546] : memref<72x64xbf16, #tpu.memory_space<vmem>>, vector<8x64xbf16>
    %c0_547 = arith.constant 0 : index
    %c0_548 = arith.constant 0 : index
    %c0_549 = arith.constant 0 : index
    %327 = vector.load %arg6[%c0_547, %c0_548, %c0_549] : memref<9x64x64xbf16, #tpu.memory_space<vmem>>, vector<1x64x64xbf16>
    %328 = vector.shape_cast %327 : vector<1x64x64xbf16> to vector<64x64xbf16>
    %cst_550 = arith.constant dense<0.000000e+00> : vector<8x64xf32>
    %329 = tpu.matmul %326, %328, %cst_550 {dimension_numbers = #tpu.dot_dimension_numbers<[1], [0], [0], [1], [0, 0, 1, 1], [], []>} : vector<8x64xbf16>, vector<64x64xbf16>, vector<8x64xf32> -> vector<8x64xf32>
    %330 = arith.addf %325, %329 : vector<8x64xf32>
    %c8_551 = arith.constant 8 : index
    %c0_552 = arith.constant 0 : index
    %331 = vector.load %arg15[%c8_551, %c0_552] : memref<72x64xbf16, #tpu.memory_space<vmem>>, vector<8x64xbf16>
    %c1 = arith.constant 1 : index
    %c0_553 = arith.constant 0 : index
    %c0_554 = arith.constant 0 : index
    %332 = vector.load %arg6[%c1, %c0_553, %c0_554] : memref<9x64x64xbf16, #tpu.memory_space<vmem>>, vector<1x64x64xbf16>
    %333 = vector.shape_cast %332 : vector<1x64x64xbf16> to vector<64x64xbf16>
    %cst_555 = arith.constant dense<0.000000e+00> : vector<8x64xf32>
    %334 = tpu.matmul %331, %333, %cst_555 {dimension_numbers = #tpu.dot_dimension_numbers<[1], [0], [0], [1], [0, 0, 1, 1], [], []>} : vector<8x64xbf16>, vector<64x64xbf16>, vector<8x64xf32> -> vector<8x64xf32>
    %335 = arith.addf %330, %334 : vector<8x64xf32>
    %c16_556 = arith.constant 16 : index
    %c0_557 = arith.constant 0 : index
    %336 = vector.load %arg15[%c16_556, %c0_557] : memref<72x64xbf16, #tpu.memory_space<vmem>>, vector<8x64xbf16>
    %c2 = arith.constant 2 : index
    %c0_558 = arith.constant 0 : index
    %c0_559 = arith.constant 0 : index
    %337 = vector.load %arg6[%c2, %c0_558, %c0_559] : memref<9x64x64xbf16, #tpu.memory_space<vmem>>, vector<1x64x64xbf16>
    %338 = vector.shape_cast %337 : vector<1x64x64xbf16> to vector<64x64xbf16>
    %cst_560 = arith.constant dense<0.000000e+00> : vector<8x64xf32>
    %339 = tpu.matmul %336, %338, %cst_560 {dimension_numbers = #tpu.dot_dimension_numbers<[1], [0], [0], [1], [0, 0, 1, 1], [], []>} : vector<8x64xbf16>, vector<64x64xbf16>, vector<8x64xf32> -> vector<8x64xf32>
    %340 = arith.addf %335, %339 : vector<8x64xf32>
    %c24_561 = arith.constant 24 : index
    %c0_562 = arith.constant 0 : index
    %341 = vector.load %arg15[%c24_561, %c0_562] : memref<72x64xbf16, #tpu.memory_space<vmem>>, vector<8x64xbf16>
    %c3 = arith.constant 3 : index
    %c0_563 = arith.constant 0 : index
    %c0_564 = arith.constant 0 : index
    %342 = vector.load %arg6[%c3, %c0_563, %c0_564] : memref<9x64x64xbf16, #tpu.memory_space<vmem>>, vector<1x64x64xbf16>
    %343 = vector.shape_cast %342 : vector<1x64x64xbf16> to vector<64x64xbf16>
    %cst_565 = arith.constant dense<0.000000e+00> : vector<8x64xf32>
    %344 = tpu.matmul %341, %343, %cst_565 {dimension_numbers = #tpu.dot_dimension_numbers<[1], [0], [0], [1], [0, 0, 1, 1], [], []>} : vector<8x64xbf16>, vector<64x64xbf16>, vector<8x64xf32> -> vector<8x64xf32>
    %345 = arith.addf %340, %344 : vector<8x64xf32>
    %c32_566 = arith.constant 32 : index
    %c0_567 = arith.constant 0 : index
    %346 = vector.load %arg15[%c32_566, %c0_567] : memref<72x64xbf16, #tpu.memory_space<vmem>>, vector<8x64xbf16>
    %c4 = arith.constant 4 : index
    %c0_568 = arith.constant 0 : index
    %c0_569 = arith.constant 0 : index
    %347 = vector.load %arg6[%c4, %c0_568, %c0_569] : memref<9x64x64xbf16, #tpu.memory_space<vmem>>, vector<1x64x64xbf16>
    %348 = vector.shape_cast %347 : vector<1x64x64xbf16> to vector<64x64xbf16>
    %cst_570 = arith.constant dense<0.000000e+00> : vector<8x64xf32>
    %349 = tpu.matmul %346, %348, %cst_570 {dimension_numbers = #tpu.dot_dimension_numbers<[1], [0], [0], [1], [0, 0, 1, 1], [], []>} : vector<8x64xbf16>, vector<64x64xbf16>, vector<8x64xf32> -> vector<8x64xf32>
    %350 = arith.addf %345, %349 : vector<8x64xf32>
    %c40_571 = arith.constant 40 : index
    %c0_572 = arith.constant 0 : index
    %351 = vector.load %arg15[%c40_571, %c0_572] : memref<72x64xbf16, #tpu.memory_space<vmem>>, vector<8x64xbf16>
    %c5 = arith.constant 5 : index
    %c0_573 = arith.constant 0 : index
    %c0_574 = arith.constant 0 : index
    %352 = vector.load %arg6[%c5, %c0_573, %c0_574] : memref<9x64x64xbf16, #tpu.memory_space<vmem>>, vector<1x64x64xbf16>
    %353 = vector.shape_cast %352 : vector<1x64x64xbf16> to vector<64x64xbf16>
    %cst_575 = arith.constant dense<0.000000e+00> : vector<8x64xf32>
    %354 = tpu.matmul %351, %353, %cst_575 {dimension_numbers = #tpu.dot_dimension_numbers<[1], [0], [0], [1], [0, 0, 1, 1], [], []>} : vector<8x64xbf16>, vector<64x64xbf16>, vector<8x64xf32> -> vector<8x64xf32>
    %355 = arith.addf %350, %354 : vector<8x64xf32>
    %c48_576 = arith.constant 48 : index
    %c0_577 = arith.constant 0 : index
    %356 = vector.load %arg15[%c48_576, %c0_577] : memref<72x64xbf16, #tpu.memory_space<vmem>>, vector<8x64xbf16>
    %c6 = arith.constant 6 : index
    %c0_578 = arith.constant 0 : index
    %c0_579 = arith.constant 0 : index
    %357 = vector.load %arg6[%c6, %c0_578, %c0_579] : memref<9x64x64xbf16, #tpu.memory_space<vmem>>, vector<1x64x64xbf16>
    %358 = vector.shape_cast %357 : vector<1x64x64xbf16> to vector<64x64xbf16>
    %cst_580 = arith.constant dense<0.000000e+00> : vector<8x64xf32>
    %359 = tpu.matmul %356, %358, %cst_580 {dimension_numbers = #tpu.dot_dimension_numbers<[1], [0], [0], [1], [0, 0, 1, 1], [], []>} : vector<8x64xbf16>, vector<64x64xbf16>, vector<8x64xf32> -> vector<8x64xf32>
    %360 = arith.addf %355, %359 : vector<8x64xf32>
    %c56_581 = arith.constant 56 : index
    %c0_582 = arith.constant 0 : index
    %361 = vector.load %arg15[%c56_581, %c0_582] : memref<72x64xbf16, #tpu.memory_space<vmem>>, vector<8x64xbf16>
    %c7 = arith.constant 7 : index
    %c0_583 = arith.constant 0 : index
    %c0_584 = arith.constant 0 : index
    %362 = vector.load %arg6[%c7, %c0_583, %c0_584] : memref<9x64x64xbf16, #tpu.memory_space<vmem>>, vector<1x64x64xbf16>
    %363 = vector.shape_cast %362 : vector<1x64x64xbf16> to vector<64x64xbf16>
    %cst_585 = arith.constant dense<0.000000e+00> : vector<8x64xf32>
    %364 = tpu.matmul %361, %363, %cst_585 {dimension_numbers = #tpu.dot_dimension_numbers<[1], [0], [0], [1], [0, 0, 1, 1], [], []>} : vector<8x64xbf16>, vector<64x64xbf16>, vector<8x64xf32> -> vector<8x64xf32>
    %365 = arith.addf %360, %364 : vector<8x64xf32>
    %c64_586 = arith.constant 64 : index
    %c0_587 = arith.constant 0 : index
    %366 = vector.load %arg15[%c64_586, %c0_587] : memref<72x64xbf16, #tpu.memory_space<vmem>>, vector<8x64xbf16>
    %c8_588 = arith.constant 8 : index
    %c0_589 = arith.constant 0 : index
    %c0_590 = arith.constant 0 : index
    %367 = vector.load %arg6[%c8_588, %c0_589, %c0_590] : memref<9x64x64xbf16, #tpu.memory_space<vmem>>, vector<1x64x64xbf16>
    %368 = vector.shape_cast %367 : vector<1x64x64xbf16> to vector<64x64xbf16>
    %cst_591 = arith.constant dense<0.000000e+00> : vector<8x64xf32>
    %369 = tpu.matmul %366, %368, %cst_591 {dimension_numbers = #tpu.dot_dimension_numbers<[1], [0], [0], [1], [0, 0, 1, 1], [], []>} : vector<8x64xbf16>, vector<64x64xbf16>, vector<8x64xf32> -> vector<8x64xf32>
    %370 = arith.addf %365, %369 : vector<8x64xf32>
    %c0_592 = arith.constant 0 : index
    %c0_593 = arith.constant 0 : index
    %371 = vector.load %arg7[%c0_592, %c0_593] : memref<1x64xf32, #tpu.memory_space<vmem>>, vector<1x64xf32>
    %372 = vector.broadcast %371 : vector<1x64xf32> to vector<8x64xf32>
    %373 = arith.addf %370, %372 : vector<8x64xf32>
    %cst_594 = arith.constant 0.000000e+00 : f32
    %374 = vector.broadcast %cst_594 : f32 to vector<8x64xf32>
    %375 = arith.maximumf %373, %374 : vector<8x64xf32>
    %376 = arith.truncf %375 : vector<8x64xf32> to vector<8x64xbf16>
    %cst_595 = arith.constant 0.000000e+00 : f32
    %377 = vector.broadcast %cst_595 : f32 to vector<8x128xf32>
    %c0_596 = arith.constant 0 : index
    %c0_597 = arith.constant 0 : index
    %378 = vector.load %arg8[%c0_596, %c0_597] : memref<64x1024xbf16, #tpu.memory_space<vmem>>, vector<64x256xbf16>
    %cst_598 = arith.constant dense<0.000000e+00> : vector<8x256xf32>
    %379 = tpu.matmul %376, %378, %cst_598 {dimension_numbers = #tpu.dot_dimension_numbers<[1], [0], [0], [1], [0, 0, 1, 1], [], []>} : vector<8x64xbf16>, vector<64x256xbf16>, vector<8x256xf32> -> vector<8x256xf32>
    %c0_599 = arith.constant 0 : index
    %c0_600 = arith.constant 0 : index
    %380 = vector.load %arg9[%c0_599, %c0_600] : memref<1x1024xf32, #tpu.memory_space<vmem>>, vector<1x256xf32>
    %381 = vector.broadcast %380 : vector<1x256xf32> to vector<8x256xf32>
    %382 = arith.addf %379, %381 : vector<8x256xf32>
    %cst_601 = arith.constant 0.000000e+00 : f32
    %383 = vector.broadcast %cst_601 : f32 to vector<8x256xf32>
    %384 = arith.maximumf %382, %383 : vector<8x256xf32>
    %385 = arith.truncf %384 : vector<8x256xf32> to vector<8x256xbf16>
    %c0_602 = arith.constant 0 : index
    %c0_603 = arith.constant 0 : index
    %386 = vector.load %arg10[%c0_602, %c0_603] : memref<1024x128xbf16, #tpu.memory_space<vmem>>, vector<256x128xbf16>
    %cst_604 = arith.constant dense<0.000000e+00> : vector<8x128xf32>
    %387 = tpu.matmul %385, %386, %cst_604 {dimension_numbers = #tpu.dot_dimension_numbers<[1], [0], [0], [1], [0, 0, 1, 1], [], []>} : vector<8x256xbf16>, vector<256x128xbf16>, vector<8x128xf32> -> vector<8x128xf32>
    %388 = arith.addf %377, %387 : vector<8x128xf32>
    %c0_605 = arith.constant 0 : index
    %c256_606 = arith.constant 256 : index
    %389 = vector.load %arg8[%c0_605, %c256_606] : memref<64x1024xbf16, #tpu.memory_space<vmem>>, vector<64x256xbf16>
    %cst_607 = arith.constant dense<0.000000e+00> : vector<8x256xf32>
    %390 = tpu.matmul %376, %389, %cst_607 {dimension_numbers = #tpu.dot_dimension_numbers<[1], [0], [0], [1], [0, 0, 1, 1], [], []>} : vector<8x64xbf16>, vector<64x256xbf16>, vector<8x256xf32> -> vector<8x256xf32>
    %c0_608 = arith.constant 0 : index
    %c256_609 = arith.constant 256 : index
    %391 = vector.load %arg9[%c0_608, %c256_609] : memref<1x1024xf32, #tpu.memory_space<vmem>>, vector<1x256xf32>
    %392 = vector.broadcast %391 : vector<1x256xf32> to vector<8x256xf32>
    %393 = arith.addf %390, %392 : vector<8x256xf32>
    %cst_610 = arith.constant 0.000000e+00 : f32
    %394 = vector.broadcast %cst_610 : f32 to vector<8x256xf32>
    %395 = arith.maximumf %393, %394 : vector<8x256xf32>
    %396 = arith.truncf %395 : vector<8x256xf32> to vector<8x256xbf16>
    %c256_611 = arith.constant 256 : index
    %c0_612 = arith.constant 0 : index
    %397 = vector.load %arg10[%c256_611, %c0_612] : memref<1024x128xbf16, #tpu.memory_space<vmem>>, vector<256x128xbf16>
    %cst_613 = arith.constant dense<0.000000e+00> : vector<8x128xf32>
    %398 = tpu.matmul %396, %397, %cst_613 {dimension_numbers = #tpu.dot_dimension_numbers<[1], [0], [0], [1], [0, 0, 1, 1], [], []>} : vector<8x256xbf16>, vector<256x128xbf16>, vector<8x128xf32> -> vector<8x128xf32>
    %399 = arith.addf %388, %398 : vector<8x128xf32>
    %c0_614 = arith.constant 0 : index
    %c512 = arith.constant 512 : index
    %400 = vector.load %arg8[%c0_614, %c512] : memref<64x1024xbf16, #tpu.memory_space<vmem>>, vector<64x256xbf16>
    %cst_615 = arith.constant dense<0.000000e+00> : vector<8x256xf32>
    %401 = tpu.matmul %376, %400, %cst_615 {dimension_numbers = #tpu.dot_dimension_numbers<[1], [0], [0], [1], [0, 0, 1, 1], [], []>} : vector<8x64xbf16>, vector<64x256xbf16>, vector<8x256xf32> -> vector<8x256xf32>
    %c0_616 = arith.constant 0 : index
    %c512_617 = arith.constant 512 : index
    %402 = vector.load %arg9[%c0_616, %c512_617] : memref<1x1024xf32, #tpu.memory_space<vmem>>, vector<1x256xf32>
    %403 = vector.broadcast %402 : vector<1x256xf32> to vector<8x256xf32>
    %404 = arith.addf %401, %403 : vector<8x256xf32>
    %cst_618 = arith.constant 0.000000e+00 : f32
    %405 = vector.broadcast %cst_618 : f32 to vector<8x256xf32>
    %406 = arith.maximumf %404, %405 : vector<8x256xf32>
    %407 = arith.truncf %406 : vector<8x256xf32> to vector<8x256xbf16>
    %c512_619 = arith.constant 512 : index
    %c0_620 = arith.constant 0 : index
    %408 = vector.load %arg10[%c512_619, %c0_620] : memref<1024x128xbf16, #tpu.memory_space<vmem>>, vector<256x128xbf16>
    %cst_621 = arith.constant dense<0.000000e+00> : vector<8x128xf32>
    %409 = tpu.matmul %407, %408, %cst_621 {dimension_numbers = #tpu.dot_dimension_numbers<[1], [0], [0], [1], [0, 0, 1, 1], [], []>} : vector<8x256xbf16>, vector<256x128xbf16>, vector<8x128xf32> -> vector<8x128xf32>
    %410 = arith.addf %399, %409 : vector<8x128xf32>
    %c0_622 = arith.constant 0 : index
    %c768 = arith.constant 768 : index
    %411 = vector.load %arg8[%c0_622, %c768] : memref<64x1024xbf16, #tpu.memory_space<vmem>>, vector<64x256xbf16>
    %cst_623 = arith.constant dense<0.000000e+00> : vector<8x256xf32>
    %412 = tpu.matmul %376, %411, %cst_623 {dimension_numbers = #tpu.dot_dimension_numbers<[1], [0], [0], [1], [0, 0, 1, 1], [], []>} : vector<8x64xbf16>, vector<64x256xbf16>, vector<8x256xf32> -> vector<8x256xf32>
    %c0_624 = arith.constant 0 : index
    %c768_625 = arith.constant 768 : index
    %413 = vector.load %arg9[%c0_624, %c768_625] : memref<1x1024xf32, #tpu.memory_space<vmem>>, vector<1x256xf32>
    %414 = vector.broadcast %413 : vector<1x256xf32> to vector<8x256xf32>
    %415 = arith.addf %412, %414 : vector<8x256xf32>
    %cst_626 = arith.constant 0.000000e+00 : f32
    %416 = vector.broadcast %cst_626 : f32 to vector<8x256xf32>
    %417 = arith.maximumf %415, %416 : vector<8x256xf32>
    %418 = arith.truncf %417 : vector<8x256xf32> to vector<8x256xbf16>
    %c768_627 = arith.constant 768 : index
    %c0_628 = arith.constant 0 : index
    %419 = vector.load %arg10[%c768_627, %c0_628] : memref<1024x128xbf16, #tpu.memory_space<vmem>>, vector<256x128xbf16>
    %cst_629 = arith.constant dense<0.000000e+00> : vector<8x128xf32>
    %420 = tpu.matmul %418, %419, %cst_629 {dimension_numbers = #tpu.dot_dimension_numbers<[1], [0], [0], [1], [0, 0, 1, 1], [], []>} : vector<8x256xbf16>, vector<256x128xbf16>, vector<8x128xf32> -> vector<8x128xf32>
    %421 = arith.addf %410, %420 : vector<8x128xf32>
    %c0_630 = arith.constant 0 : index
    %c0_631 = arith.constant 0 : index
    %422 = vector.load %arg11[%c0_630, %c0_631] : memref<1x128xf32, #tpu.memory_space<vmem>>, vector<1x128xf32>
    %423 = vector.broadcast %422 : vector<1x128xf32> to vector<8x128xf32>
    %424 = arith.addf %421, %423 : vector<8x128xf32>
    %c0_632 = arith.constant 0 : index
    %c0_633 = arith.constant 0 : index
    %425 = vector.load %arg12[%c0_632, %c0_633] : memref<8x128xf32, #tpu.memory_space<vmem>>, vector<8x128xf32>
    tpu.vector_store %arg12[%c0_632, %c0_633], %424 {strides = array<i32>} : memref<8x128xf32, #tpu.memory_space<vmem>>, vector<8x128xf32>,
    return
  }
  func.func @transform_0(%arg0: i32) -> (i32, i32, i32) {
    %c0_i32 = arith.constant 0 : i32
    %c0_i32_0 = arith.constant 0 : i32
    %c0_i32_1 = arith.constant 0 : i32
    return %arg0, %c0_i32, %c0_i32_0 : i32, i32, i32
  }
  func.func @transform_1(%arg0: i32) -> (i32, i32) {
    %c0_i32 = arith.constant 0 : i32
    %c0_i32_0 = arith.constant 0 : i32
    %c0_i32_1 = arith.constant 0 : i32
    return %c0_i32, %c0_i32_0 : i32, i32
  }
  func.func @transform_2(%arg0: i32) -> (i32, i32) {
    %c0_i32 = arith.constant 0 : i32
    %c0_i32_0 = arith.constant 0 : i32
    %c0_i32_1 = arith.constant 0 : i32
    return %c0_i32, %c0_i32_0 : i32, i32
  }
  func.func @transform_3(%arg0: i32) -> (i32, i32) {
    %c0_i32 = arith.constant 0 : i32
    %c0_i32_0 = arith.constant 0 : i32
    %c0_i32_1 = arith.constant 0 : i32
    return %c0_i32, %c0_i32_0 : i32, i32
  }
  func.func @transform_4(%arg0: i32) -> (i32, i32) {
    %c0_i32 = arith.constant 0 : i32
    %c0_i32_0 = arith.constant 0 : i32
    %c0_i32_1 = arith.constant 0 : i32
    return %c0_i32, %c0_i32_0 : i32, i32
  }
  func.func @transform_5(%arg0: i32) -> (i32, i32, i32) {
    %c0_i32 = arith.constant 0 : i32
    %c0_i32_0 = arith.constant 0 : i32
    %c0_i32_1 = arith.constant 0 : i32
    %c0_i32_2 = arith.constant 0 : i32
    return %c0_i32, %c0_i32_0, %c0_i32_1 : i32, i32, i32
  }
  func.func @transform_6(%arg0: i32) -> (i32, i32) {
    %c0_i32 = arith.constant 0 : i32
    %c0_i32_0 = arith.constant 0 : i32
    %c0_i32_1 = arith.constant 0 : i32
    return %c0_i32, %c0_i32_0 : i32, i32
  }
  func.func @transform_7(%arg0: i32) -> (i32, i32) {
    %c0_i32 = arith.constant 0 : i32
    %c0_i32_0 = arith.constant 0 : i32
    %c0_i32_1 = arith.constant 0 : i32
    return %c0_i32, %c0_i32_0 : i32, i32
  }
  func.func @transform_8(%arg0: i32) -> (i32, i32) {
    %c0_i32 = arith.constant 0 : i32
    %c0_i32_0 = arith.constant 0 : i32
    %c0_i32_1 = arith.constant 0 : i32
    return %c0_i32, %c0_i32_0 : i32, i32
  }
  func.func @transform_9(%arg0: i32) -> (i32, i32) {
    %c0_i32 = arith.constant 0 : i32
    %c0_i32_0 = arith.constant 0 : i32
    %c0_i32_1 = arith.constant 0 : i32
    return %c0_i32, %c0_i32_0 : i32, i32
  }
  func.func @transform_10(%arg0: i32) -> (i32, i32) {
    %c0_i32 = arith.constant 0 : i32
    %c0_i32_0 = arith.constant 0 : i32
    %c0_i32_1 = arith.constant 0 : i32
    return %c0_i32, %c0_i32_0 : i32, i32
  }
  func.func @transform_11(%arg0: i32) -> (i32, i32) {
    %c0_i32 = arith.constant 0 : i32
    %c0_i32_0 = arith.constant 0 : i32
    return %arg0, %c0_i32 : i32, i32
  }
}

</mosaic_0001>

<bundles_post_ra>
// kernel: atari_a2c_forward.1
= control target key start
LH: loop header
LB: loop body
LE: loop exit
PB: predicated region body
PF: predicated region fallthrough
CT: control target
= control target key end

     0   :  { %v5737_v0 = vmov 0   ;;  %vm943_vm0 = vcmask 261120   ;;  %vm1042_vm1 = vcmask 257024   ;;  %s5738_s13 = smov 32   ;;  %s5739_s21 = smov 64   ;;  %vm1051_vm2 = vcmask 519424   ;;  %s7259_s1 = inlined_call_operand.vmem [shape: bf16[256,32], index: 1, kind: input, shape index: {}]   ;;  %s7260_s0 = inlined_call_operand.vmem [shape: bf16[1,512,256], index: 0, kind: input, shape index: {}]   ;;  %s7261_s2 = inlined_call_operand.vmem [shape: f32[1,32], index: 2, kind: input, shape index: {}]   ;;  %s7262_s3 = inlined_call_operand.vmem [shape: bf16[512,64], index: 3, kind: input, shape index: {}]   ;;  %s7263_s5 = inlined_call_operand.vmem [shape: bf16[9,64,64], index: 5, kind: input, shape index: {}]   ;;  %s7264_s4 = inlined_call_operand.vmem [shape: f32[1,64], index: 4, kind: input, shape index: {}]   ;;  %s7265_s7 = inlined_call_operand.vmem [shape: bf16[64,1024], index: 7, kind: input, shape index: {}]   ;;  %s7266_s9 = inlined_call_operand.vmem [shape: bf16[1024,128], index: 9, kind: input, shape index: {}]   ;;  %s7267_s6 = inlined_call_operand.vmem [shape: f32[1,64], index: 6, kind: input, shape index: {}]   ;;  %s7268_s8 = inlined_call_operand.vmem [shape: f32[1,1024], index: 8, kind: input, shape index: {}]   ;;  %s7269_s10 = inlined_call_operand.vmem [shape: f32[1,128], index: 10, kind: input, shape index: {}]   ;;  %s7270_s11 = inlined_call_operand.vmem [shape: f32[8,128], index: 11, kind: output, shape index: {}]  }
   0x1   :  { %558 = vmatprep.subr.bf16.mxu0 %v5737_v0  ;;  %v5355_v1 = vld [vmem:[%s7259_s1] sm:$0xff]   ;;  %v5356_v2 = vld [vmem:[%s7259_s1 + $0x8] sm:$0xff]   ;;  %v5357_v3 = vld [vmem:[%s7259_s1 + $0x10] sm:$0xff]   ;;  %s5740_s22 = smov 96   ;;  %vm1060_vm3 = vcmask 781824   ;;  %vm1069_vm4 = vcmask 1044224  }
   0x2   :  { %559 = vmatpush1.bf16.msra.mxu0 %v5355_v1  ;;  %v5358_v4 = vld [vmem:[%s7259_s1 + $0x18] sm:$0xff]   ;;  %v5359_v5 = vld [vmem:[%s7259_s1 + $0x20] sm:$0xff]   ;;  %v5360_v7 = vld [vmem:[%s7259_s1 + $0x28] sm:$0xff]   ;;  %vm5742_vm5 = vmmov 0   ;;  %vm1707_vm6 = vcmask 519168   ;;  %vm2688_vm7 = vcmask 523264  }
   0x3   :  { %560 = vmatprep.subr.bf16.mxu0 %v5737_v0  ;;  %v5373_v6 = vld [vmem:[%s7260_s0 + $0x4] ss:$8 sps:$4 sm:$0xff]   ;;  %v5361_v8 = vld [vmem:[%s7259_s1 + $0x30] sm:$0xff]   ;;  %v5362_v9 = vld [vmem:[%s7259_s1 + $0x38] sm:$0xff]  }
   0x4   :  { %590 = vmatprep.mubr.bf16.mxu0 %v5373_v6  ;;  %v5363_v10 = vld [vmem:[%s7259_s1 + $0x40] sm:$0xff]   ;;  %v5364_v11 = vld [vmem:[%s7259_s1 + $0x48] sm:$0xff]   ;;  %v5365_v12 = vld [vmem:[%s7259_s1 + $0x50] sm:$0xff]  }
   0x5   :  { %v5366_v13 = vld [vmem:[%s7259_s1 + $0x58] sm:$0xff]   ;;  %v5367_v14 = vld [vmem:[%s7259_s1 + $0x60] sm:$0xff]   ;;  %v5368_v15 = vld [vmem:[%s7259_s1 + $0x68] sm:$0xff]  }
   0x6   :  { %561 = vmatpush1.bf16.msra.mxu0 %v5356_v2  ;;  %v5369_v16 = vld [vmem:[%s7259_s1 + $0x70] sm:$0xff]   ;;  %v5370_v17 = vld [vmem:[%s7259_s1 + $0x78] sm:$0xff]   ;;  %v5371_v18 = vld [vmem:[%s7260_s0] ss:$8 sps:$4 sm:$0xff]  }
   0x7   :  { %562 = vmatprep.subr.bf16.mxu0 %v5737_v0  ;;  %v5374_v19 = vld [vmem:[%s7260_s0 + $0x14] ss:$8 sps:$4 sm:$0xff]   ;;  %v5376_v20 = vld [vmem:[%s7260_s0 + $0x10] ss:$8 sps:$4 sm:$0xff]   ;;  %v5377_v21 = vld [vmem:[%s7260_s0 + $0x24] ss:$8 sps:$4 sm:$0xff]  }
   0x8   :  { %v5379_v22 = vld [vmem:[%s7260_s0 + $0x20] ss:$8 sps:$4 sm:$0xff]   ;;  %v5380_v23 = vld [vmem:[%s7260_s0 + $0x34] ss:$8 sps:$4 sm:$0xff]   ;;  %v5382_v24 = vld [vmem:[%s7260_s0 + $0x30] ss:$8 sps:$4 sm:$0xff]  }
   0x9   :  { %v5383_v25 = vld [vmem:[%s7260_s0 + $0x44] ss:$8 sps:$4 sm:$0xff]   ;;  %v5385_v26 = vld [vmem:[%s7260_s0 + $0x40] ss:$8 sps:$4 sm:$0xff]   ;;  %v5386_v27 = vld [vmem:[%s7260_s0 + $0x54] ss:$8 sps:$4 sm:$0xff]  }
   0xa   :  { %563 = vmatpush1.bf16.msra.mxu0 %v5357_v3  ;;  %v5388_v28 = vld [vmem:[%s7260_s0 + $0x50] ss:$8 sps:$4 sm:$0xff]   ;;  %v5389_v29 = vld [vmem:[%s7260_s0 + $0x64] ss:$8 sps:$4 sm:$0xff]   ;;  %v5391_v30 = vld [vmem:[%s7260_s0 + $0x60] ss:$8 sps:$4 sm:$0xff]  }
   0xb   :  { %564 = vmatprep.subr.bf16.mxu0 %v5737_v0  ;;  %v5392_v31 = vld [vmem:[%s7260_s0 + $0x74] ss:$8 sps:$4 sm:$0xff]   ;;  %v5394_v32 = vld [vmem:[%s7260_s0 + $0x70] ss:$8 sps:$4 sm:$0xff]   ;;  %v5395_v33 = vld [vmem:[%s7260_s0 + $0x84] ss:$8 sps:$4 sm:$0xff]  }
   0xc   :  { %v5397_v34 = vld [vmem:[%s7260_s0 + $0x80] ss:$8 sps:$4 sm:$0xff]   ;;  %v5398_v35 = vld [vmem:[%s7260_s0 + $0x94] ss:$8 sps:$4 sm:$0xff]   ;;  %v5400_v36 = vld [vmem:[%s7260_s0 + $0x90] ss:$8 sps:$4 sm:$0xff]  }
   0xd   :  { %v5401_v37 = vld [vmem:[%s7260_s0 + $0xa4] ss:$8 sps:$4 sm:$0xff]   ;;  %v5403_v38 = vld [vmem:[%s7260_s0 + $0xa0] ss:$8 sps:$4 sm:$0xff]   ;;  %v5404_v39 = vld [vmem:[%s7260_s0 + $0xb4] ss:$8 sps:$4 sm:$0xff]  }
   0xe   :  { %565 = vmatpush1.bf16.msra.mxu0 %v5358_v4  ;;  %v5406_v40 = vld [vmem:[%s7260_s0 + $0xb0] ss:$8 sps:$4 sm:$0xff]   ;;  %v5407_v41 = vld [vmem:[%s7260_s0 + $0xc4] ss:$8 sps:$4 sm:$0xff]   ;;  %v5409_v42 = vld [vmem:[%s7260_s0 + $0xc0] ss:$8 sps:$4 sm:$0xff]  }
   0xf   :  { %566 = vmatprep.subr.bf16.mxu0 %v5737_v0  ;;  %v5410_v43 = vld [vmem:[%s7260_s0 + $0xd4] ss:$8 sps:$4 sm:$0xff]   ;;  %v5412_v44 = vld [vmem:[%s7260_s0 + $0xd0] ss:$8 sps:$4 sm:$0xff]   ;;  %v5413_v45 = vld [vmem:[%s7260_s0 + $0xe4] ss:$8 sps:$4 sm:$0xff]  }
  0x10   :  { %v5415_v46 = vld [vmem:[%s7260_s0 + $0xe0] ss:$8 sps:$4 sm:$0xff]   ;;  %v5416_v47 = vld [vmem:[%s7260_s0 + $0xf4] ss:$8 sps:$4 sm:$0xff]   ;;  %v5418_v48 = vld [vmem:[%s7260_s0 + $0xf0] ss:$8 sps:$4 sm:$0xff]  }
  0x11   :  { %v5419_v49 = vld [vmem:[%s7260_s0 + $0x104] ss:$8 sps:$4 sm:$0xff]   ;;  %v5421_v50 = vld [vmem:[%s7260_s0 + $0x100] ss:$8 sps:$4 sm:$0xff]   ;;  %v5422_v51 = vld [vmem:[%s7260_s0 + $0x114] ss:$8 sps:$4 sm:$0xff]  }
  0x12   :  { %567 = vmatpush1.bf16.msra.mxu0 %v5359_v5  ;;  %v5424_v52 = vld [vmem:[%s7260_s0 + $0x110] ss:$8 sps:$4 sm:$0xff]   ;;  %v5425_v53 = vld [vmem:[%s7260_s0 + $0x124] ss:$8 sps:$4 sm:$0xff]   ;;  %v5427_v54 = vld [vmem:[%s7260_s0 + $0x120] ss:$8 sps:$4 sm:$0xff]  }
  0x13   :  { %568 = vmatprep.subr.bf16.mxu0 %v5737_v0  ;;  %v5428_v55 = vld [vmem:[%s7260_s0 + $0x134] ss:$8 sps:$4 sm:$0xff]   ;;  %v5430_v56 = vld [vmem:[%s7260_s0 + $0x130] ss:$8 sps:$4 sm:$0xff]   ;;  %v5431_v57 = vld [vmem:[%s7260_s0 + $0x144] ss:$8 sps:$4 sm:$0xff]  }
  0x14   :  { %v5433_v58 = vld [vmem:[%s7260_s0 + $0x140] ss:$8 sps:$4 sm:$0xff]   ;;  %v5434_v59 = vld [vmem:[%s7260_s0 + $0x154] ss:$8 sps:$4 sm:$0xff]   ;;  %v5436_v60 = vld [vmem:[%s7260_s0 + $0x150] ss:$8 sps:$4 sm:$0xff]  }
  0x15   :  { %v5437_v61 = vld [vmem:[%s7260_s0 + $0x164] ss:$8 sps:$4 sm:$0xff]   ;;  %v5439_v62 = vld [vmem:[%s7260_s0 + $0x160] ss:$8 sps:$4 sm:$0xff]   ;;  %v5440_v63 = vld [vmem:[%s7260_s0 + $0x174] ss:$8 sps:$4 sm:$0xff]  }
  0x16   :  { %569 = vmatpush1.bf16.msra.mxu0 %v5360_v7  ;;  %v5442_v1 = vld [vmem:[%s7260_s0 + $0x170] ss:$8 sps:$4 sm:$0xff]   ;;  %v5443_v2 = vld [vmem:[%s7260_s0 + $0x184] ss:$8 sps:$4 sm:$0xff]   ;;  %v5445_v3 = vld [vmem:[%s7260_s0 + $0x180] ss:$8 sps:$4 sm:$0xff]  }
  0x17   :  { %570 = vmatprep.subr.bf16.mxu0 %v5737_v0  ;;  %v5446_v4 = vld [vmem:[%s7260_s0 + $0x194] ss:$8 sps:$4 sm:$0xff]   ;;  %v5448_v5 = vld [vmem:[%s7260_s0 + $0x190] ss:$8 sps:$4 sm:$0xff]   ;;  %v5449_v6 = vld [vmem:[%s7260_s0 + $0x1a4] ss:$8 sps:$4 sm:$0xff]  }
  0x18   :  { %v5451_v7 = vld [vmem:[%s7260_s0 + $0x1a0] ss:$8 sps:$4 sm:$0xff]  }
  0x1a   :  { %571 = vmatpush1.bf16.msra.mxu0 %v5361_v8  ;;  %v5452_v8 = vld [vmem:[%s7260_s0 + $0x1b4] ss:$8 sps:$4 sm:$0xff]  }
  0x1b   :  { %572 = vmatprep.subr.bf16.mxu0 %v5737_v0 }
  0x1e   :  { %573 = vmatpush1.bf16.msra.mxu0 %v5362_v9  ;;  %v6035_v9 = vld [vmem:[%s7261_s2] ss:$0 sm:$0xff] }
  0x1f   :  { %574 = vmatprep.subr.bf16.mxu0 %v5737_v0 }
  0x22   :  { %575 = vmatpush1.bf16.msra.mxu0 %v5363_v10 }
  0x23   :  { %576 = vmatprep.subr.bf16.mxu0 %v5737_v0 }
  0x26   :  { %577 = vmatpush1.bf16.msra.mxu0 %v5364_v11 }
  0x27   :  { %578 = vmatprep.subr.bf16.mxu0 %v5737_v0 }
  0x2a   :  { %579 = vmatpush1.bf16.msra.mxu0 %v5365_v12 }
  0x2b   :  { %580 = vmatprep.subr.bf16.mxu0 %v5737_v0 }
  0x2e   :  { %581 = vmatpush1.bf16.msra.mxu0 %v5366_v13  ;;  %v5454_v13 = vld [vmem:[%s7260_s0 + $0x1b0] ss:$8 sps:$4 sm:$0xff]  }
  0x2f   :  { %582 = vmatprep.subr.bf16.mxu0 %v5737_v0 }
  0x32   :  { %583 = vmatpush1.bf16.msra.mxu0 %v5367_v14 }
  0x33   :  { %584 = vmatprep.subr.bf16.mxu0 %v5737_v0 }
  0x36   :  { %585 = vmatpush1.bf16.msra.mxu0 %v5368_v15  ;;  %v5456_v15 = vld [vmem:[%s7260_s0 + $0x1c4] ss:$8 sps:$4 sm:$0xff]  }
  0x37   :  { %586 = vmatprep.subr.bf16.mxu0 %v5737_v0 }
  0x3a   :  { %587 = vmatpush1.bf16.msra.mxu0 %v5369_v16 }
  0x3b   :  { %588 = vmatprep.subr.bf16.mxu0 %v5737_v0 }
  0x3e   :  { %589 = vmatpush1.bf16.msra.mxu0 %v5370_v17 }
  0x41   :  { %591 = vmatmul.mubr.bf16.vlgmr.msra.gmra.mrb[0].mxu0 %v5371_v18 }
  0x42   :  { %598 = vmatprep.mubr.bf16.mxu0 %v5374_v19 }
  0x49   :  { %599 = vmatmul.mubr.bf16.gmra.mrb[4].mxu0 %v5376_v20 }
  0x4a   :  { %606 = vmatprep.mubr.bf16.mxu0 %v5377_v21 }
  0x51   :  { %607 = vmatmul.mubr.bf16.gmra.mrb[8].mxu0 %v5379_v22 }
  0x52   :  { %614 = vmatprep.mubr.bf16.mxu0 %v5380_v23 }
  0x59   :  { %615 = vmatmul.mubr.bf16.gmra.mrb[12].mxu0 %v5382_v24  ;;  %v5458_v24 = vld [vmem:[%s7260_s0 + $0x1c0] ss:$8 sps:$4 sm:$0xff]  }
  0x5a   :  { %622 = vmatprep.mubr.bf16.mxu0 %v5383_v25 }
  0x61   :  { %623 = vmatmul.mubr.bf16.gmra.mrb[16].mxu0 %v5385_v26  ;;  %v5461_v26 = vld [vmem:[%s7260_s0 + $0x1d4] ss:$8 sps:$4 sm:$0xff]  }
  0x62   :  { %630 = vmatprep.mubr.bf16.mxu0 %v5386_v27 }
  0x69   :  { %631 = vmatmul.mubr.bf16.gmra.mrb[20].mxu0 %v5388_v28 }
  0x6a   :  { %638 = vmatprep.mubr.bf16.mxu0 %v5389_v29 }
  0x71   :  { %639 = vmatmul.mubr.bf16.gmra.mrb[24].mxu0 %v5391_v30 }
  0x72   :  { %646 = vmatprep.mubr.bf16.mxu0 %v5392_v31 }
  0x79   :  { %647 = vmatmul.mubr.bf16.gmra.mrb[28].mxu0 %v5394_v32 }
  0x7a   :  { %654 = vmatprep.mubr.bf16.mxu0 %v5395_v33 }
  0x81   :  { %655 = vmatmul.mubr.bf16.gmra.mrb[32].mxu0 %v5397_v34 }
  0x82   :  { %662 = vmatprep.mubr.bf16.mxu0 %v5398_v35 }
  0x89   :  { %663 = vmatmul.mubr.bf16.gmra.mrb[36].mxu0 %v5400_v36  ;;  %v5463_v36 = vld [vmem:[%s7260_s0 + $0x1d0] ss:$8 sps:$4 sm:$0xff]  }
  0x8a   :  { %670 = vmatprep.mubr.bf16.mxu0 %v5401_v37 }
  0x91   :  { %671 = vmatmul.mubr.bf16.gmra.mrb[40].mxu0 %v5403_v38 }
  0x92   :  { %678 = vmatprep.mubr.bf16.mxu0 %v5404_v39  ;;  %v5467_v39 = vld [vmem:[%s7260_s0 + $0x1e4] ss:$8 sps:$4 sm:$0xff]  }
  0x99   :  { %679 = vmatmul.mubr.bf16.gmra.mrb[44].mxu0 %v5406_v40 }
  0x9a   :  { %686 = vmatprep.mubr.bf16.mxu0 %v5407_v41 }
  0xa1   :  { %687 = vmatmul.mubr.bf16.gmra.mrb[48].mxu0 %v5409_v42 }
  0xa2   :  { %694 = vmatprep.mubr.bf16.mxu0 %v5410_v43 }
  0xa9   :  { %695 = vmatmul.mubr.bf16.gmra.mrb[52].mxu0 %v5412_v44  ;;  %v132_v44 = vld [vmem:[%s7260_s0 + $0x1e0] sm:$0xff] }
  0xaa   :  { %702 = vmatprep.mubr.bf16.mxu0 %v5413_v45  ;;  %v133_v45 = vld [vmem:[%s7260_s0 + $0x1e8] sm:$0xff] }
  0xb1   :  { %703 = vmatmul.mubr.bf16.gmra.mrb[56].mxu0 %v5415_v46 }
  0xb2   :  { %710 = vmatprep.mubr.bf16.mxu0 %v5416_v47 }
  0xb9   :  { %711 = vmatmul.mubr.bf16.gmra.mrb[60].mxu0 %v5418_v48 }
  0xba   :  { %718 = vmatprep.mubr.bf16.mxu0 %v5419_v49 }
  0xc1   :  { %719 = vmatmul.mubr.bf16.gmra.mrb[64].mxu0 %v5421_v50 }
  0xc2   :  { %726 = vmatprep.mubr.bf16.mxu0 %v5422_v51 }
  0xc9   :  { %727 = vmatmul.mubr.bf16.gmra.mrb[68].mxu0 %v5424_v52  ;;  %v4526_v52 = vcombine.low %v132_v44, %v133_v45  ;;  %v5533_v45 = vld [vmem:[%s7262_s3 + $0x18] sm:$0xff]  }
  0xca   :  { %734 = vmatprep.mubr.bf16.mxu0 %v5425_v53 }
  0xd1   :  { %735 = vmatmul.mubr.bf16.gmra.mrb[72].mxu0 %v5427_v54  ;;  %v5473_v54 = vld [vmem:[%s7260_s0 + $0x1f4] ss:$8 sps:$4 sm:$0xff]  }
  0xd2   :  { %742 = vmatprep.mubr.bf16.mxu0 %v5428_v55 }
  0xd9   :  { %743 = vmatmul.mubr.bf16.gmra.mrb[76].mxu0 %v5430_v56 }
  0xda   :  { %750 = vmatprep.mubr.bf16.mxu0 %v5431_v57 }
  0xe1   :  { %751 = vmatmul.mubr.bf16.gmra.mrb[80].mxu0 %v5433_v58 }
  0xe2   :  { %758 = vmatprep.mubr.bf16.mxu0 %v5434_v59 }
  0xe9   :  { %759 = vmatmul.mubr.bf16.gmra.mrb[84].mxu0 %v5436_v60 }
  0xea   :  { %766 = vmatprep.mubr.bf16.mxu0 %v5437_v61 }
  0xf1   :  { %767 = vmatmul.mubr.bf16.gmra.mrb[88].mxu0 %v5439_v62 }
  0xf2   :  { %774 = vmatprep.mubr.bf16.mxu0 %v5440_v63 }
  0xf9   :  { %775 = vmatmul.mubr.bf16.gmra.mrb[92].mxu0 %v5442_v1 }
  0xfa   :  { %782 = vmatprep.mubr.bf16.mxu0 %v5443_v2 }
 0x101   :  { %783 = vmatmul.mubr.bf16.gmra.mrb[96].mxu0 %v5445_v3  ;;  %v5475_v3 = vld [vmem:[%s7260_s0 + $0x1f0] ss:$8 sps:$4 sm:$0xff]  }
 0x102   :  { %790 = vmatprep.mubr.bf16.mxu0 %v5446_v4 }
 0x109   :  { %791 = vmatmul.mubr.bf16.gmra.mrb[100].mxu0 %v5448_v5 }
 0x10a   :  { %798 = vmatprep.mubr.bf16.mxu0 %v5449_v6 }
 0x111   :  { %799 = vmatmul.mubr.bf16.gmra.mrb[104].mxu0 %v5451_v7 }
 0x112   :  { %806 = vmatprep.mubr.bf16.mxu0 %v5452_v8 }
 0x114   :  { %v592_v10 = vpop.f32.mrb[0].mxu0 }
 0x115   :  { %v593_v11 = vadd.f32 %v6035_v9, %v592_v10  ;;  %v594_v12 = vpop.f32.mrb[1].mxu0 }
 0x116   :  { %v595_v14 = vpop.f32.mrb[2].mxu0 }
 0x117   :  { %v596_v16 = vadd.f32 %v6035_v9, %v595_v14  ;;  %v597_v17 = vpop.f32.mrb[3].mxu0  ;;  %v847_v18 = vmax.f32 %v593_v11, 0.0 }
 0x119   :  { %v848_v19 = vmax.f32 %v596_v16, 0.0  ;;  %807 = vmatmul.mubr.bf16.gmra.mrb[108].mxu0 %v5454_v13 }
 0x11a   :  { %814 = vmatprep.mubr.bf16.mxu0 %v5456_v15 }
 0x11b   :  { %v911_v20 = vpack.c.bf16 %v848_v19, %v847_v18  ;;  %v5520_v18 = vld [vmem:[%s7262_s3 + $0x40] sm:$0xff]  }
 0x11c   :  { %v600_v21 = vpop.f32.mrb[4].mxu0  ;;  %4940 = vmatprep.subr.bf16.mxu1 %v5520_v18 }
 0x11d   :  { %944 = vst.msk [vmem:[#allocation2] sm:$0xff] %vm943_vm0, %v911_v20  ;;  %v601_v22 = vadd.f32 %v6035_v9, %v600_v21  ;;  %v602_v23 = vpop.f32.mrb[5].mxu0 }
 0x11e   :  { %v603_v25 = vpop.f32.mrb[6].mxu0  ;;  %v5521_v23 = vld [vmem:[%s7262_s3] sm:$0xff]  }
 0x11f   :  { %v604_v27 = vadd.f32 %v6035_v9, %v603_v25  ;;  %v605_v28 = vpop.f32.mrb[7].mxu0  ;;  %v849_v29 = vmax.f32 %v601_v22, 0.0  ;;  %v5524_v25 = vld [vmem:[%s7262_s3 + $0x48] sm:$0xff]   ;;  %4941 = vmatpush3.bf16.msra.mxu1 %v5521_v23 }
 0x120   :  { %4942 = vmatprep.subr.bf16.mxu1 %v5524_v25 }
 0x121   :  { %v850_v30 = vmax.f32 %v604_v27, 0.0  ;;  %815 = vmatmul.mubr.bf16.gmra.mrb[112].mxu0 %v5458_v24 }
 0x122   :  { %822 = vmatprep.mubr.bf16.mxu0 %v5461_v26  ;;  %v5525_v26 = vld [vmem:[%s7262_s3 + $0x8] sm:$0xff]  }
 0x123   :  { %v912_v31 = vpack.c.bf16 %v850_v30, %v849_v29  ;;  %4943 = vmatpush3.bf16.msra.mxu1 %v5525_v26 }
 0x124   :  { %v608_v32 = vpop.f32.mrb[8].mxu0  ;;  %v5455_v33 = vld [vmem:[#allocation2 + $0x4] ss:$0 sps:$4 sm:$0xff]   ;;  %v1041_v37 = vld [vmem:[#allocation2] sm:$0xf] }
 0x125   :  { %945 = vst.msk [vmem:[#allocation2 + $0x8] sm:$0xff] %vm943_vm0, %v912_v31  ;;  %v609_v34 = vadd.f32 %v6035_v9, %v608_v32  ;;  %v610_v35 = vpop.f32.mrb[9].mxu0  ;;  %1048 = vrot.lane.b32.xlu0 %v5455_v33, %s5738_s13  ;;  %v5528_v33 = vld [vmem:[%s7262_s3 + $0x50] sm:$0xff]  }
 0x126   :  { %v611_v38 = vpop.f32.mrb[10].mxu0  ;;  %1043 = vst.msk [vmem:[#allocation3] sm:$0xf] %vm1042_vm1, %v1041_v37  ;;  %v5529_v35 = vld [vmem:[%s7262_s3 + $0x10] sm:$0xff]   ;;  %4944 = vmatprep.subr.bf16.mxu1 %v5528_v33 }
 0x127   :  { %v612_v40 = vadd.f32 %v6035_v9, %v611_v38  ;;  %v613_v41 = vpop.f32.mrb[11].mxu0  ;;  %v851_v42 = vmax.f32 %v609_v34, 0.0  ;;  %4945 = vmatpush3.bf16.msra.mxu1 %v5529_v35 }
 0x129   :  { %v852_v43 = vmax.f32 %v612_v40, 0.0  ;;  %823 = vmatmul.mubr.bf16.gmra.mrb[116].mxu0 %v5463_v36 }
 0x12a   :  { %830 = vmatprep.mubr.bf16.mxu0 %v5467_v39  ;;  %v5532_v39 = vld [vmem:[%s7262_s3 + $0x58] sm:$0xff]  }
 0x12b   :  { %v913_v46 = vpack.c.bf16 %v852_v43, %v851_v42  ;;  %4946 = vmatprep.subr.bf16.mxu1 %v5532_v39 }
 0x12c   :  { %v616_v47 = vpop.f32.mrb[12].mxu0  ;;  %v5459_v48 = vld [vmem:[#allocation2 + $0xc] ss:$0 sps:$4 sm:$0xff]   ;;  %v5460_v51 = vld [vmem:[#allocation2 + $0x8] ss:$0 sps:$4 sm:$0xff]   ;;  %4947 = vmatpush3.bf16.msra.mxu1 %v5533_v45 }
 0x12d   :  { %946 = vst.msk [vmem:[#allocation2 + $0x10] sm:$0xff] %vm943_vm0, %v913_v46  ;;  %v617_v49 = vadd.f32 %v6035_v9, %v616_v47  ;;  %v618_v50 = vpop.f32.mrb[13].mxu0  ;;  %1155 = vrot.lane.b32.xlu1 %v5459_v48, %s5738_s13  ;;  %1057 = vrot.lane.b32.xlu0 %v5460_v51, %s5739_s21  ;;  %v1149_v57 = vld [vmem:[#allocation2 + $0x8] sm:$0xf]  ;;  %v5464_v60 = vld [vmem:[#allocation2 + $0xc] ss:$0 sps:$4 sm:$0xff]  }
 0x12e   :  { %v619_v53 = vpop.f32.mrb[14].mxu0  ;;  %1150 = vst.msk [vmem:[#allocation3 + $0x10] sm:$0xf] %vm1042_vm1, %v1149_v57  ;;  %v5540_v57 = vld [vmem:[%s7262_s3 + $0x68] sm:$0xff]  }
 0x12f   :  { %v620_v55 = vadd.f32 %v6035_v9, %v619_v53  ;;  %v621_v56 = vpop.f32.mrb[15].mxu0  ;;  %v853_v58 = vmax.f32 %v617_v49, 0.0  ;;  %v5536_v53 = vld [vmem:[%s7262_s3 + $0x60] sm:$0xff]  }
 0x130   :  { %4948 = vmatprep.subr.bf16.mxu1 %v5536_v53 }
 0x131   :  { %v854_v59 = vmax.f32 %v620_v55, 0.0  ;;  %831 = vmatmul.mubr.bf16.gmra.mrb[120].mxu0 %v4526_v52  ;;  %1066 = vrot.lane.b32.xlu0 %v5464_v60, %s5740_s22  ;;  %v5537_v55 = vld [vmem:[%s7262_s3 + $0x20] sm:$0xff]  }
 0x132   :  { %838 = vmatprep.mubr.bf16.mxu0 %v5473_v54  ;;  %4949 = vmatpush3.bf16.msra.mxu1 %v5537_v55 }
 0x133   :  { %v914_v61 = vpack.c.bf16 %v854_v59, %v853_v58  ;;  %4950 = vmatprep.subr.bf16.mxu1 %v5540_v57 }
 0x134   :  { %v624_v62 = vpop.f32.mrb[16].mxu0  ;;  %v5465_v63 = vld [vmem:[#allocation2 + $0x10] ss:$0 sps:$4 sm:$0xff]   ;;  %v5466_v11 = vld [vmem:[#allocation2 + $0x14] ss:$0 sps:$4 sm:$0xff]  }
 0x135   :  { %947 = vst.msk [vmem:[#allocation2 + $0x18] sm:$0xff] %vm943_vm0, %v914_v61  ;;  %v625_v1 = vadd.f32 %v6035_v9, %v624_v62  ;;  %v626_v2 = vpop.f32.mrb[17].mxu0  ;;  %1163 = vrot.lane.b32.xlu0 %v5465_v63, %s5739_s21  ;;  %v1253_v7 = vld [vmem:[#allocation2 + $0x10] sm:$0xf]  ;;  %v5469_v16 = vld [vmem:[#allocation2 + $0x14] ss:$0 sps:$4 sm:$0xff]  }
 0x136   :  { %v627_v4 = vpop.f32.mrb[18].mxu0  ;;  %1254 = vst.msk [vmem:[#allocation3 + $0x20] sm:$0xf] %vm1042_vm1, %v1253_v7  ;;  %v5541_v61 = vld [vmem:[%s7262_s3 + $0x28] sm:$0xff]   ;;  %v5545_v7 = vld [vmem:[%s7262_s3 + $0x30] sm:$0xff]  }
 0x137   :  { %v628_v5 = vadd.f32 %v6035_v9, %v627_v4  ;;  %v629_v6 = vpop.f32.mrb[19].mxu0  ;;  %v855_v8 = vmax.f32 %v625_v1, 0.0  ;;  %4951 = vmatpush3.bf16.msra.mxu1 %v5541_v61 }
 0x139   :  { %v856_v10 = vmax.f32 %v628_v5, 0.0  ;;  %839 = vmatmul.mubr.bf16.gmra.mrb[124].mxu0 %v5475_v3  ;;  %1171 = vrot.lane.b32.xlu0 %v5466_v11, %s5740_s22  ;;  %v5544_v5 = vld [vmem:[%s7262_s3 + $0x70] sm:$0xff]   ;;  %v5548_v11 = vld [vmem:[%s7262_s3 + $0x78] sm:$0xff]  }
 0x13a   :  { %3450 = vmatprep.mubr.bf16.mxu0 %v5737_v0  ;;  %4952 = vmatprep.subr.bf16.mxu1 %v5544_v5 }
 0x13b   :  { %v915_v12 = vpack.c.bf16 %v856_v10, %v855_v8  ;;  %4953 = vmatpush3.bf16.msra.mxu1 %v5545_v7 }
 0x13c   :  { %v632_v13 = vpop.f32.mrb[20].mxu0  ;;  %v5470_v21 = vld [vmem:[#allocation2 + $0x18] ss:$0 sps:$4 sm:$0xff]   ;;  %v5471_v31 = vld [vmem:[#allocation2 + $0x1c] ss:$0 sps:$4 sm:$0xff]   ;;  %4954 = vmatprep.subr.bf16.mxu1 %v5548_v11 }
 0x13d   :  { %948 = vst.msk [vmem:[#allocation2 + $0x20] sm:$0xff] %vm943_vm0, %v915_v12  ;;  %v633_v14 = vadd.f32 %v6035_v9, %v632_v13  ;;  %v634_v15 = vpop.f32.mrb[21].mxu0  ;;  %1259 = vrot.lane.b32.xlu0 %v5469_v16, %s5738_s13  ;;  %v5549_v12 = vld [vmem:[%s7262_s3 + $0x38] sm:$0xff]  }
 0x13e   :  { %v635_v17 = vpop.f32.mrb[22].mxu0 }
 0x13f   :  { %v636_v19 = vadd.f32 %v6035_v9, %v635_v17  ;;  %v637_v20 = vpop.f32.mrb[23].mxu0  ;;  %v857_v22 = vmax.f32 %v633_v14, 0.0  ;;  %4955 = vmatpush3.bf16.msra.mxu1 %v5549_v12 }
 0x141   :  { %v858_v24 = vmax.f32 %v636_v19, 0.0  ;;  %1267 = vrot.lane.b32.xlu0 %v5470_v21, %s5739_s21 }
 0x143   :  { %v916_v27 = vpack.c.bf16 %v858_v24, %v857_v22 }
 0x144   :  { %v640_v28 = vpop.f32.mrb[24].mxu0  ;;  %v1071_v32 = vld [vmem:[#allocation2 + $0x20] sm:$0xf]  ;;  %v5472_v38 = vld [vmem:[#allocation2 + $0x24] ss:$0 sps:$4 sm:$0xff]  }
 0x145   :  { %949 = vst.msk [vmem:[#allocation2 + $0x28] sm:$0xff] %vm943_vm0, %v916_v27  ;;  %v641_v29 = vadd.f32 %v6035_v9, %v640_v28  ;;  %v642_v30 = vpop.f32.mrb[25].mxu0  ;;  %1275 = vrot.lane.b32.xlu0 %v5471_v31, %s5740_s22 }
 0x146   :  { %v643_v34 = vpop.f32.mrb[26].mxu0  ;;  %1072 = vst.msk [vmem:[#allocation3 + $0x4] sm:$0xf] %vm1042_vm1, %v1071_v32 }
 0x147   :  { %v644_v36 = vadd.f32 %v6035_v9, %v643_v34  ;;  %v645_v37 = vpop.f32.mrb[27].mxu0  ;;  %v859_v40 = vmax.f32 %v641_v29, 0.0 }
 0x149   :  { %v860_v41 = vmax.f32 %v644_v36, 0.0  ;;  %1077 = vrot.lane.b32.xlu0 %v5472_v38, %s5738_s13 }
 0x14b   :  { %v917_v42 = vpack.c.bf16 %v860_v41, %v859_v40 }
 0x14c   :  { %v648_v43 = vpop.f32.mrb[28].mxu0  ;;  %v5476_v44 = vld [vmem:[#allocation2 + $0x2c] ss:$0 sps:$4 sm:$0xff]   ;;  %v5477_v51 = vld [vmem:[#allocation2 + $0x28] ss:$0 sps:$4 sm:$0xff]  }
 0x14d   :  { %950 = vst.msk [vmem:[#allocation2 + $0x30] sm:$0xff] %vm943_vm0, %v917_v42  ;;  %v649_v46 = vadd.f32 %v6035_v9, %v648_v43  ;;  %v650_v47 = vpop.f32.mrb[29].mxu0  ;;  %1181 = vrot.lane.b32.xlu1 %v5476_v44, %s5738_s13  ;;  %v1175_v52 = vld [vmem:[#allocation2 + $0x28] sm:$0xf]  ;;  %v5478_v60 = vld [vmem:[#allocation2 + $0x2c] ss:$0 sps:$4 sm:$0xff]  }
 0x14e   :  { %v651_v48 = vpop.f32.mrb[30].mxu0  ;;  %1176 = vst.msk [vmem:[#allocation3 + $0x14] sm:$0xf] %vm1042_vm1, %v1175_v52 }
 0x14f   :  { %v652_v49 = vadd.f32 %v6035_v9, %v651_v48  ;;  %v653_v50 = vpop.f32.mrb[31].mxu0  ;;  %v861_v54 = vmax.f32 %v649_v46, 0.0 }
 0x151   :  { %v862_v56 = vmax.f32 %v652_v49, 0.0  ;;  %1085 = vrot.lane.b32.xlu1 %v5477_v51, %s5739_s21 }
 0x153   :  { %v918_v58 = vpack.c.bf16 %v862_v56, %v861_v54 }
 0x154   :  { %v656_v59 = vpop.f32.mrb[32].mxu0  ;;  %v5479_v4 = vld [vmem:[#allocation2 + $0x30] ss:$0 sps:$4 sm:$0xff]   ;;  %v5480_v15 = vld [vmem:[#allocation2 + $0x34] ss:$0 sps:$4 sm:$0xff]  }
 0x155   :  { %951 = vst.msk [vmem:[#allocation2 + $0x38] sm:$0xff] %vm943_vm0, %v918_v58  ;;  %v657_v62 = vadd.f32 %v6035_v9, %v656_v59  ;;  %v658_v63 = vpop.f32.mrb[33].mxu0  ;;  %1093 = vrot.lane.b32.xlu1 %v5478_v60, %s5740_s22  ;;  %v1279_v6 = vld [vmem:[#allocation2 + $0x30] sm:$0xf]  ;;  %v5481_v19 = vld [vmem:[#allocation2 + $0x34] ss:$0 sps:$4 sm:$0xff]  }
 0x156   :  { %v659_v1 = vpop.f32.mrb[34].mxu0  ;;  %1280 = vst.msk [vmem:[#allocation3 + $0x24] sm:$0xf] %vm1042_vm1, %v1279_v6 }
 0x157   :  { %v660_v2 = vadd.f32 %v6035_v9, %v659_v1  ;;  %v661_v3 = vpop.f32.mrb[35].mxu0  ;;  %v863_v8 = vmax.f32 %v657_v62, 0.0 }
 0x159   :  { %v864_v10 = vmax.f32 %v660_v2, 0.0  ;;  %1189 = vrot.lane.b32.xlu1 %v5479_v4, %s5739_s21 }
 0x15b   :  { %v919_v13 = vpack.c.bf16 %v864_v10, %v863_v8 }
 0x15c   :  { %v664_v14 = vpop.f32.mrb[36].mxu0  ;;  %v5482_v24 = vld [vmem:[#allocation2 + $0x38] ss:$0 sps:$4 sm:$0xff]   ;;  %v5484_v34 = vld [vmem:[#allocation2 + $0x3c] ss:$0 sps:$4 sm:$0xff]  }
 0x15d   :  { %952 = vst.msk [vmem:[#allocation2 + $0x40] sm:$0xff] %vm943_vm0, %v919_v13  ;;  %v665_v16 = vadd.f32 %v6035_v9, %v664_v14  ;;  %v666_v17 = vpop.f32.mrb[37].mxu0  ;;  %1197 = vrot.lane.b32.xlu1 %v5480_v15, %s5740_s22 }
 0x15e   :  { %v667_v18 = vpop.f32.mrb[38].mxu0 }
 0x15f   :  { %v668_v20 = vadd.f32 %v6035_v9, %v667_v18  ;;  %v669_v21 = vpop.f32.mrb[39].mxu0  ;;  %v865_v22 = vmax.f32 %v665_v16, 0.0 }
 0x161   :  { %v866_v23 = vmax.f32 %v668_v20, 0.0  ;;  %1285 = vrot.lane.b32.xlu1 %v5481_v19, %s5738_s13  ;;  %v5574_v19 = vld [vmem:[%s7262_s3 + $0xc0] sm:$0xff]  }
 0x162   :  { %4968 = vmatprep.subr.bf16.mxu1 %v5574_v19 }
 0x163   :  { %v920_v25 = vpack.c.bf16 %v866_v23, %v865_v22 }
 0x164   :  { %v672_v26 = vpop.f32.mrb[40].mxu0  ;;  %v5483_v27 = vld [vmem:[#allocation2 + $0x44] ss:$0 sps:$4 sm:$0xff]   ;;  %v1097_v31 = vld [vmem:[#allocation2 + $0x40] sm:$0xf] }
 0x165   :  { %953 = vst.msk [vmem:[#allocation2 + $0x48] sm:$0xff] %vm943_vm0, %v920_v25  ;;  %v673_v28 = vadd.f32 %v6035_v9, %v672_v26  ;;  %v674_v29 = vpop.f32.mrb[41].mxu0  ;;  %1293 = vrot.lane.b32.xlu1 %v5482_v24, %s5739_s21  ;;  %1103 = vrot.lane.b32.xlu0 %v5483_v27, %s5738_s13  ;;  %v5485_v35 = vld [vmem:[#allocation2 + $0x44] ss:$0 sps:$4 sm:$0xff]  }
 0x166   :  { %v675_v30 = vpop.f32.mrb[42].mxu0  ;;  %1098 = vst.msk [vmem:[#allocation3 + $0x8] sm:$0xf] %vm1042_vm1, %v1097_v31 }
 0x167   :  { %v676_v32 = vadd.f32 %v6035_v9, %v675_v30  ;;  %v677_v33 = vpop.f32.mrb[43].mxu0  ;;  %v867_v36 = vmax.f32 %v673_v28, 0.0 }
 0x169   :  { %v868_v37 = vmax.f32 %v676_v32, 0.0  ;;  %1301 = vrot.lane.b32.xlu1 %v5484_v34, %s5740_s22  ;;  %1717 = vrot.lane.b32.xlu0 %v5485_v35, %s5738_s13 }
 0x16b   :  { %v921_v38 = vpack.c.bf16 %v868_v37, %v867_v36 }
 0x16c   :  { %v680_v39 = vpop.f32.mrb[44].mxu0  ;;  %v5486_v40 = vld [vmem:[#allocation2 + $0x4c] ss:$0 sps:$4 sm:$0xff]   ;;  %v5487_v46 = vld [vmem:[#allocation2 + $0x48] ss:$0 sps:$4 sm:$0xff]  }
 0x16d   :  { %954 = vst.msk [vmem:[#allocation2 + $0x50] sm:$0xff] %vm943_vm0, %v921_v38  ;;  %v681_v41 = vadd.f32 %v6035_v9, %v680_v39  ;;  %v682_v42 = vpop.f32.mrb[45].mxu0  ;;  %1207 = vrot.lane.b32.xlu0 %v5486_v40, %s5738_s13  ;;  %v1201_v49 = vld [vmem:[#allocation2 + $0x48] sm:$0xf]  ;;  %v5488_v52 = vld [vmem:[#allocation2 + $0x4c] ss:$0 sps:$4 sm:$0xff]  }
 0x16e   :  { %v683_v43 = vpop.f32.mrb[46].mxu0  ;;  %1202 = vst.msk [vmem:[#allocation3 + $0x18] sm:$0xf] %vm1042_vm1, %v1201_v49  ;;  %v5489_v58 = vld [vmem:[#allocation2 + $0x4c] ss:$0 sps:$4 sm:$0xff]  }
 0x16f   :  { %v684_v44 = vadd.f32 %v6035_v9, %v683_v43  ;;  %v685_v45 = vpop.f32.mrb[47].mxu0  ;;  %v869_v47 = vmax.f32 %v681_v41, 0.0  ;;  %v5490_v1 = vld [vmem:[#allocation2 + $0x48] ss:$0 sps:$4 sm:$0xff]   ;;  %v5491_v7 = vld [vmem:[#allocation2 + $0x4c] ss:$0 sps:$4 sm:$0xff]  }
 0x171   :  { %v870_v48 = vmax.f32 %v684_v44, 0.0  ;;  %1111 = vrot.lane.b32.xlu0 %v5487_v46, %s5739_s21 }
 0x173   :  { %v922_v50 = vpack.c.bf16 %v870_v48, %v869_v47 }
 0x174   :  { %v688_v51 = vpop.f32.mrb[48].mxu0  ;;  %v1305_v61 = vld [vmem:[#allocation2 + $0x50] sm:$0xf]  ;;  %v5495_v24 = vld [vmem:[#allocation2 + $0x54] ss:$0 sps:$4 sm:$0xff]  }
 0x175   :  { %955 = vst.msk [vmem:[#allocation2 + $0x58] sm:$0xff] %vm943_vm0, %v922_v50  ;;  %v689_v53 = vadd.f32 %v6035_v9, %v688_v51  ;;  %v690_v54 = vpop.f32.mrb[49].mxu0  ;;  %1119 = vrot.lane.b32.xlu0 %v5488_v52, %s5740_s22  ;;  %v5493_v12 = vld [vmem:[#allocation2 + $0x50] ss:$0 sps:$4 sm:$0xff]   ;;  %v5497_v27 = vld [vmem:[#allocation2 + $0x54] ss:$0 sps:$4 sm:$0xff]  }
 0x176   :  { %v691_v55 = vpop.f32.mrb[50].mxu0  ;;  %1306 = vst.msk [vmem:[#allocation3 + $0x28] sm:$0xf] %vm1042_vm1, %v1305_v61  ;;  %v5499_v35 = vld [vmem:[#allocation2 + $0x50] ss:$0 sps:$4 sm:$0xff]  }
 0x177   :  { %v692_v56 = vadd.f32 %v6035_v9, %v691_v55  ;;  %v693_v57 = vpop.f32.mrb[51].mxu0  ;;  %v871_v59 = vmax.f32 %v689_v53, 0.0  ;;  %v5501_v41 = vld [vmem:[#allocation2 + $0x54] ss:$0 sps:$4 sm:$0xff]  }
 0x178   :  { %v5503_v49 = vld [vmem:[#allocation2 + $0x54] ss:$0 sps:$4 sm:$0xff]  }
 0x179   :  { %v872_v60 = vmax.f32 %v692_v56, 0.0  ;;  %1821 = vrot.lane.b32.xlu0 %v5489_v58, %s5738_s13 }
 0x17b   :  { %v923_v62 = vpack.c.bf16 %v872_v60, %v871_v59 }
 0x17c   :  { %v696_v63 = vpop.f32.mrb[52].mxu0  ;;  %v5505_v56 = vld [vmem:[#allocation2 + $0x58] ss:$0 sps:$4 sm:$0xff]  }
 0x17d   :  { %956 = vst.msk [vmem:[#allocation2 + $0x60] sm:$0xff] %vm943_vm0, %v923_v62  ;;  %v697_v2 = vadd.f32 %v6035_v9, %v696_v63  ;;  %v698_v3 = vpop.f32.mrb[53].mxu0  ;;  %1725 = vrot.lane.b32.xlu0 %v5490_v1, %s5739_s21 }
 0x17e   :  { %v699_v4 = vpop.f32.mrb[54].mxu0 }
 0x17f   :  { %v700_v5 = vadd.f32 %v6035_v9, %v699_v4  ;;  %v701_v6 = vpop.f32.mrb[55].mxu0  ;;  %v873_v8 = vmax.f32 %v697_v2, 0.0  ;;  %v5507_v4 = vld [vmem:[#allocation2 + $0x5c] ss:$0 sps:$4 sm:$0xff]  }
 0x181   :  { %v874_v10 = vmax.f32 %v700_v5, 0.0  ;;  %1733 = vrot.lane.b32.xlu0 %v5491_v7, %s5740_s22 }
 0x183   :  { %v924_v11 = vpack.c.bf16 %v874_v10, %v873_v8  ;;  %v5509_v8 = vld [vmem:[#allocation2 + $0x58] ss:$0 sps:$4 sm:$0xff]  }
 0x184   :  { %v5492_v13 = vld [vmem:[#allocation2 + $0x64] ss:$0 sps:$4 sm:$0xff]   ;;  %v704_v14 = vpop.f32.mrb[56].mxu0  ;;  %v1123_v18 = vld [vmem:[#allocation2 + $0x60] sm:$0xf] }
 0x185   :  { %957 = vst.msk [vmem:[#allocation2 + $0x68] sm:$0xff] %vm943_vm0, %v924_v11  ;;  %v705_v15 = vadd.f32 %v6035_v9, %v704_v14  ;;  %v706_v16 = vpop.f32.mrb[57].mxu0  ;;  %1129 = vrot.lane.b32.xlu1 %v5492_v13, %s5738_s13  ;;  %1215 = vrot.lane.b32.xlu0 %v5493_v12, %s5739_s21  ;;  %v5494_v23 = vld [vmem:[#allocation2 + $0x64] ss:$0 sps:$4 sm:$0xff]  }
 0x186   :  { %v707_v17 = vpop.f32.mrb[58].mxu0  ;;  %1124 = vst.msk [vmem:[#allocation3 + $0xc] sm:$0xf] %vm1042_vm1, %v1123_v18 }
 0x187   :  { %v875_v20 = vmax.f32 %v705_v15, 0.0  ;;  %v708_v21 = vadd.f32 %v6035_v9, %v707_v17  ;;  %v709_v22 = vpop.f32.mrb[59].mxu0 }
 0x189   :  { %v876_v25 = vmax.f32 %v708_v21, 0.0  ;;  %1743 = vrot.lane.b32.xlu1 %v5494_v23, %s5738_s13  ;;  %1223 = vrot.lane.b32.xlu0 %v5495_v24, %s5740_s22 }
 0x18b   :  { %v925_v26 = vpack.c.bf16 %v876_v25, %v875_v20  ;;  %v5511_v20 = vld [vmem:[#allocation2 + $0x5c] ss:$0 sps:$4 sm:$0xff]  }
 0x18c   :  { %v5496_v28 = vld [vmem:[#allocation2 + $0x6c] ss:$0 sps:$4 sm:$0xff]   ;;  %v712_v29 = vpop.f32.mrb[60].mxu0  ;;  %v5498_v37 = vld [vmem:[#allocation2 + $0x68] ss:$0 sps:$4 sm:$0xff]  }
 0x18d   :  { %958 = vst.msk [vmem:[#allocation2 + $0x70] sm:$0xff] %vm943_vm0, %v925_v26  ;;  %v713_v30 = vadd.f32 %v6035_v9, %v712_v29  ;;  %v714_v31 = vpop.f32.mrb[61].mxu0  ;;  %1233 = vrot.lane.b32.xlu1 %v5496_v28, %s5738_s13  ;;  %1311 = vrot.lane.b32.xlu0 %v5497_v27, %s5738_s13  ;;  %v1227_v39 = vld [vmem:[#allocation2 + $0x68] sm:$0xf]  ;;  %v5500_v42 = vld [vmem:[#allocation2 + $0x6c] ss:$0 sps:$4 sm:$0xff]  }
 0x18e   :  { %v715_v32 = vpop.f32.mrb[62].mxu0  ;;  %1228 = vst.msk [vmem:[#allocation3 + $0x1c] sm:$0xf] %vm1042_vm1, %v1227_v39  ;;  %v5502_v52 = vld [vmem:[#allocation2 + $0x6c] ss:$0 sps:$4 sm:$0xff]  }
 0x18f   :  { %v877_v33 = vmax.f32 %v713_v30, 0.0  ;;  %v716_v34 = vadd.f32 %v6035_v9, %v715_v32  ;;  %v717_v36 = vpop.f32.mrb[63].mxu0  ;;  %v5504_v57 = vld [vmem:[#allocation2 + $0x68] ss:$0 sps:$4 sm:$0xff]   ;;  %v5506_v3 = vld [vmem:[#allocation2 + $0x6c] ss:$0 sps:$4 sm:$0xff]  }
 0x190   :  { %v6246_v32 = vld [vmem:[%s7261_s2] ss:$0 sm:$0xff] }
 0x191   :  { %v878_v38 = vmax.f32 %v716_v34, 0.0  ;;  %1137 = vrot.lane.b32.xlu1 %v5498_v37, %s5739_s21  ;;  %1829 = vrot.lane.b32.xlu0 %v5499_v35, %s5739_s21 }
 0x193   :  { %v926_v40 = vpack.c.bf16 %v878_v38, %v877_v33 }
 0x194   :  { %v720_v43 = vpop.f32.mrb[64].mxu0  ;;  %v1331_v54 = vld [vmem:[#allocation2 + $0x70] sm:$0xf]  ;;  %v5510_v19 = vld [vmem:[#allocation2 + $0x74] ss:$0 sps:$4 sm:$0xff]  }
 0x195   :  { %959 = vst.msk [vmem:[#allocation2 + $0x78] sm:$0xff] %vm943_vm0, %v926_v40  ;;  %v721_v44 = vadd.f32 %v6035_v9, %v720_v43  ;;  %v722_v45 = vpop.f32.mrb[65].mxu0  ;;  %1145 = vrot.lane.b32.xlu1 %v5500_v42, %s5740_s22  ;;  %1837 = vrot.lane.b32.xlu0 %v5501_v41, %s5740_s22  ;;  %v5508_v10 = vld [vmem:[#allocation2 + $0x70] ss:$0 sps:$4 sm:$0xff]   ;;  %v5512_v24 = vld [vmem:[#allocation2 + $0x74] ss:$0 sps:$4 sm:$0xff]  }
 0x196   :  { %v723_v46 = vpop.f32.mrb[66].mxu0  ;;  %1332 = vst.msk [vmem:[#allocation3 + $0x2c] sm:$0xf] %vm1042_vm1, %v1331_v54  ;;  %v5514_v34 = vld [vmem:[#allocation2 + $0x70] ss:$0 sps:$4 sm:$0xff]  }
 0x197   :  { %v879_v47 = vmax.f32 %v721_v44, 0.0  ;;  %v724_v48 = vadd.f32 %v6035_v9, %v723_v46  ;;  %v725_v50 = vpop.f32.mrb[67].mxu0  ;;  %v1049_v51 = vpop.permute.xlu0 %1048  ;;  %v5516_v39 = vld [vmem:[#allocation2 + $0x74] ss:$0 sps:$4 sm:$0xff]  }
 0x198   :  { %1052 = vst.msk [vmem:[#allocation3] sm:$0xf] %vm1051_vm2, %v1049_v51 }
 0x199   :  { %v880_v53 = vmax.f32 %v724_v48, 0.0  ;;  %1847 = vrot.lane.b32.xlu1 %v5502_v52, %s5738_s13  ;;  %1925 = vrot.lane.b32.xlu0 %v5503_v49, %s5738_s13  ;;  %v5518_v48 = vld [vmem:[#allocation2 + $0x74] ss:$0 sps:$4 sm:$0xff]  }
 0x19b   :  { %v927_v55 = vpack.c.bf16 %v880_v53, %v879_v47 }
 0x19c   :  { %v728_v58 = vpop.f32.mrb[68].mxu0  ;;  %v5522_v54 = vld [vmem:[#allocation2 + $0x78] ss:$0 sps:$4 sm:$0xff]  }
 0x19d   :  { %960 = vst.msk [vmem:[#allocation2 + $0x80] sm:$0xff] %vm943_vm0, %v927_v55  ;;  %v729_v59 = vadd.f32 %v6035_v9, %v728_v58  ;;  %v730_v60 = vpop.f32.mrb[69].mxu0  ;;  %1751 = vrot.lane.b32.xlu1 %v5504_v57, %s5739_s21  ;;  %1319 = vrot.lane.b32.xlu0 %v5505_v56, %s5739_s21 }
 0x19e   :  { %v731_v61 = vpop.f32.mrb[70].mxu0 }
 0x19f   :  { %v881_v62 = vmax.f32 %v729_v59, 0.0  ;;  %v732_v63 = vadd.f32 %v6035_v9, %v731_v61  ;;  %v733_v1 = vpop.f32.mrb[71].mxu0  ;;  %v1156_v2 = vpop.permute.xlu1 %1155 }
 0x1a0   :  { %1158 = vst.msk [vmem:[#allocation3 + $0x10] sm:$0xf] %vm1051_vm2, %v1156_v2  ;;  %v1058_v5 = vpop.permute.xlu0 %1057  ;;  %v5526_v2 = vld [vmem:[#allocation2 + $0x7c] ss:$0 sps:$4 sm:$0xff]  }
 0x1a1   :  { %v882_v6 = vmax.f32 %v732_v63, 0.0  ;;  %1061 = vst.msk [vmem:[#allocation3] sm:$0xf] %vm1060_vm3, %v1058_v5  ;;  %1759 = vrot.lane.b32.xlu1 %v5506_v3, %s5740_s22  ;;  %1327 = vrot.lane.b32.xlu0 %v5507_v4, %s5740_s22 }
 0x1a3   :  { %v928_v7 = vpack.c.bf16 %v882_v6, %v881_v62  ;;  %v5530_v6 = vld [vmem:[#allocation2 + $0x78] ss:$0 sps:$4 sm:$0xff]  }
 0x1a4   :  { %v736_v11 = vpop.f32.mrb[72].mxu0  ;;  %v1067_v12 = vpop.permute.xlu0 %1066  ;;  %v5513_v25 = vld [vmem:[#allocation2 + $0x84] ss:$0 sps:$4 sm:$0xff]  }
 0x1a5   :  { %961 = vst.msk [vmem:[#allocation2 + $0x88] sm:$0xff] %vm943_vm0, %v928_v7  ;;  %v737_v13 = vadd.f32 %v6035_v9, %v736_v11  ;;  %v738_v14 = vpop.f32.mrb[73].mxu0  ;;  %1241 = vrot.lane.b32.xlu1 %v5508_v10, %s5739_s21  ;;  %1933 = vrot.lane.b32.xlu0 %v5509_v8, %s5739_s21  ;;  %v5515_v36 = vld [vmem:[#allocation2 + $0x84] ss:$0 sps:$4 sm:$0xff]  }
 0x1a6   :  { %1070 = vst.msk [vmem:[#allocation3] sm:$0xf] %vm1069_vm4, %v1067_v12  ;;  %v739_v15 = vpop.f32.mrb[74].mxu0 }
 0x1a7   :  { %v883_v16 = vmax.f32 %v737_v13, 0.0  ;;  %v740_v17 = vadd.f32 %v6035_v9, %v739_v15  ;;  %v741_v18 = vpop.f32.mrb[75].mxu0 }
 0x1a8   :  { %v1164_v21 = vpop.permute.xlu0 %1163  ;;  %v5534_v18 = vld [vmem:[#allocation2 + $0x7c] ss:$0 sps:$4 sm:$0xff]  }
 0x1a9   :  { %v884_v22 = vmax.f32 %v740_v17, 0.0  ;;  %1166 = vst.msk [vmem:[#allocation3 + $0x10] sm:$0xf] %vm1060_vm3, %v1164_v21  ;;  %1249 = vrot.lane.b32.xlu1 %v5510_v19, %s5740_s22  ;;  %1941 = vrot.lane.b32.xlu0 %v5511_v20, %s5740_s22 }
 0x1ab   :  { %v929_v23 = vpack.c.bf16 %v884_v22, %v883_v16 }
 0x1ac   :  { %v744_v26 = vpop.f32.mrb[76].mxu0  ;;  %v1172_v27 = vpop.permute.xlu0 %1171  ;;  %v5517_v40 = vld [vmem:[#allocation2 + $0x8c] ss:$0 sps:$4 sm:$0xff]   ;;  %v5519_v50 = vld [vmem:[#allocation2 + $0x88] ss:$0 sps:$4 sm:$0xff]  }
 0x1ad   :  { %962 = vst.msk [vmem:[#allocation2 + $0x90] sm:$0xff] %vm943_vm0, %v929_v23  ;;  %v745_v28 = vadd.f32 %v6035_v9, %v744_v26  ;;  %v746_v29 = vpop.f32.mrb[77].mxu0  ;;  %1337 = vrot.lane.b32.xlu1 %v5512_v24, %s5738_s13  ;;  %1769 = vrot.lane.b32.xlu0 %v5513_v25, %s5738_s13  ;;  %v5523_v55 = vld [vmem:[#allocation2 + $0x8c] ss:$0 sps:$4 sm:$0xff]   ;;  %v5539_v22 = vld [vmem:[#allocation2 + $0x88] ss:$0 sps:$4 sm:$0xff]  }
 0x1ae   :  { %1174 = vst.msk [vmem:[#allocation3 + $0x10] sm:$0xf] %vm1069_vm4, %v1172_v27  ;;  %v747_v30 = vpop.f32.mrb[78].mxu0  ;;  %v5527_v3 = vld [vmem:[#allocation2 + $0x8c] ss:$0 sps:$4 sm:$0xff]  }
 0x1af   :  { %v885_v31 = vmax.f32 %v745_v28, 0.0  ;;  %v748_v33 = vadd.f32 %v6246_v32, %v747_v30  ;;  %v749_v35 = vpop.f32.mrb[79].mxu0  ;;  %v1737_v28 = vld [vmem:[#allocation2 + $0x60] sm:$0xf] }
 0x1b0   :  { %v1260_v9 = vpop.permute.xlu0 %1259  ;;  %v1711_v30 = vld [vmem:[#allocation2 + $0x40] sm:$0xf] }
 0x1b1   :  { %v886_v37 = vmax.f32 %v748_v33, 0.0  ;;  %1262 = vst.msk [vmem:[#allocation3 + $0x20] sm:$0xf] %vm1051_vm2, %v1260_v9  ;;  %1855 = vrot.lane.b32.xlu1 %v5514_v34, %s5739_s21  ;;  %2184 = vrot.lane.b32.xlu0 %v5515_v36, %s5738_s13 }
 0x1b3   :  { %v930_v38 = vpack.c.bf16 %v886_v37, %v885_v31 }
 0x1b4   :  { %v752_v41 = vpop.f32.mrb[80].mxu0  ;;  %v1268_v42 = vpop.permute.xlu0 %1267  ;;  %v5531_v8 = vld [vmem:[#allocation2 + $0x90] ss:$0 sps:$4 sm:$0xff]   ;;  %v5535_v19 = vld [vmem:[#allocation2 + $0x94] ss:$0 sps:$4 sm:$0xff]  }
 0x1b5   :  { %963 = vst.msk [vmem:[#allocation2 + $0x98] sm:$0xff] %vm943_vm0, %v930_v38  ;;  %v753_v43 = vadd.f32 %v6246_v32, %v752_v41  ;;  %v754_v44 = vpop.f32.mrb[81].mxu0  ;;  %1863 = vrot.lane.b32.xlu1 %v5516_v39, %s5740_s22  ;;  %1873 = vrot.lane.b32.xlu0 %v5517_v40, %s5738_s13  ;;  %v5543_v31 = vld [vmem:[#allocation2 + $0x94] ss:$0 sps:$4 sm:$0xff]  }
 0x1b6   :  { %1270 = vst.msk [vmem:[#allocation3 + $0x20] sm:$0xf] %vm1060_vm3, %v1268_v42  ;;  %v755_v45 = vpop.f32.mrb[82].mxu0 }
 0x1b7   :  { %v887_v46 = vmax.f32 %v753_v43, 0.0  ;;  %v756_v47 = vadd.f32 %v6246_v32, %v755_v45  ;;  %v757_v49 = vpop.f32.mrb[83].mxu0 }
 0x1b8   :  { %v1276_v51 = vpop.permute.xlu0 %1275 }
 0x1b9   :  { %v888_v52 = vmax.f32 %v756_v47, 0.0  ;;  %1278 = vst.msk [vmem:[#allocation3 + $0x20] sm:$0xf] %vm1069_vm4, %v1276_v51  ;;  %1951 = vrot.lane.b32.xlu1 %v5518_v48, %s5738_s13  ;;  %1777 = vrot.lane.b32.xlu0 %v5519_v50, %s5739_s21  ;;  %v1815_v48 = vld [vmem:[#allocation2 + $0x48] sm:$0xf] }
 0x1bb   :  { %v931_v53 = vpack.c.bf16 %v888_v52, %v887_v46  ;;  %v1841_v46 = vld [vmem:[#allocation2 + $0x68] sm:$0xf] }
 0x1bc   :  { %v760_v56 = vpop.f32.mrb[84].mxu0  ;;  %v1078_v57 = vpop.permute.xlu0 %1077  ;;  %v5547_v40 = vld [vmem:[#allocation2 + $0x98] ss:$0 sps:$4 sm:$0xff]   ;;  %v5551_v49 = vld [vmem:[#allocation2 + $0x9c] ss:$0 sps:$4 sm:$0xff]  }
 0x1bd   :  { %964 = vst.msk [vmem:[#allocation2 + $0xa0] sm:$0xff] %vm943_vm0, %v931_v53  ;;  %v761_v58 = vadd.f32 %v6246_v32, %v760_v56  ;;  %v762_v59 = vpop.f32.mrb[85].mxu0  ;;  %1345 = vrot.lane.b32.xlu1 %v5522_v54, %s5739_s21  ;;  %1785 = vrot.lane.b32.xlu0 %v5523_v55, %s5740_s22 }
 0x1be   :  { %1080 = vst.msk [vmem:[#allocation3 + $0x4] sm:$0xf] %vm1051_vm2, %v1078_v57  ;;  %v763_v60 = vpop.f32.mrb[86].mxu0 }
 0x1bf   :  { %v889_v61 = vmax.f32 %v761_v58, 0.0  ;;  %v764_v62 = vadd.f32 %v6246_v32, %v763_v60  ;;  %v765_v63 = vpop.f32.mrb[87].mxu0  ;;  %v1182_v1 = vpop.permute.xlu1 %1181  ;;  %v6303_v60 = vld [vmem:[%s7262_s3 + $0x80] sm:$0xff]  }
 0x1c0   :  { %1184 = vst.msk [vmem:[#allocation3 + $0x14] sm:$0xf] %vm1051_vm2, %v1182_v1  ;;  %v6310_v63 = vld [vmem:[%s7262_s3 + $0xc8] sm:$0xff]  }
 0x1c1   :  { %v890_v4 = vmax.f32 %v764_v62, 0.0  ;;  %1353 = vrot.lane.b32.xlu1 %v5526_v2, %s5740_s22  ;;  %2288 = vrot.lane.b32.xlu0 %v5527_v3, %s5738_s13  ;;  %v5553_v62 = vld [vmem:[#allocation2 + $0x90] ss:$0 sps:$4 sm:$0xff]  }
 0x1c3   :  { %v932_v5 = vpack.c.bf16 %v890_v4, %v889_v61  ;;  %v1086_v7 = vpop.permute.xlu1 %1085 }
 0x1c4   :  { %v768_v10 = vpop.f32.mrb[88].mxu0  ;;  %1088 = vst.msk [vmem:[#allocation3 + $0x4] sm:$0xf] %vm1060_vm3, %v1086_v7  ;;  %v5538_v24 = vld [vmem:[#allocation2 + $0xa4] ss:$0 sps:$4 sm:$0xff]  }
 0x1c5   :  { %965 = vst.msk [vmem:[#allocation2 + $0xa8] sm:$0xff] %vm943_vm0, %v932_v5  ;;  %v769_v11 = vadd.f32 %v6246_v32, %v768_v10  ;;  %v770_v12 = vpop.f32.mrb[89].mxu0  ;;  %1959 = vrot.lane.b32.xlu1 %v5530_v6, %s5739_s21  ;;  %1881 = vrot.lane.b32.xlu0 %v5531_v8, %s5739_s21  ;;  %v5542_v37 = vld [vmem:[#allocation2 + $0xa4] ss:$0 sps:$4 sm:$0xff]   ;;  %v6319_v5 = vld [vmem:[%s7262_s3 + $0x88] sm:$0xff]   ;;  %v6328_v10 = vld [vmem:[%s7262_s3 + $0xd0] sm:$0xff]  }
 0x1c6   :  { %v771_v13 = vpop.f32.mrb[90].mxu0 }
 0x1c7   :  { %v891_v14 = vmax.f32 %v769_v11, 0.0  ;;  %v772_v15 = vadd.f32 %v6246_v32, %v771_v13  ;;  %v773_v16 = vpop.f32.mrb[91].mxu0  ;;  %v1094_v17 = vpop.permute.xlu1 %1093  ;;  %v5555_v13 = vld [vmem:[#allocation2 + $0x8c] ss:$0 sps:$4 sm:$0xff]  }
 0x1c8   :  { %1096 = vst.msk [vmem:[#allocation3 + $0x4] sm:$0xf] %vm1069_vm4, %v1094_v17  ;;  %v6336_v17 = vld [vmem:[%s7262_s3 + $0x90] sm:$0xff]  }
 0x1c9   :  { %v892_v20 = vmax.f32 %v772_v15, 0.0  ;;  %1967 = vrot.lane.b32.xlu1 %v5534_v18, %s5740_s22  ;;  %1889 = vrot.lane.b32.xlu0 %v5535_v19, %s5740_s22  ;;  %v1919_v19 = vld [vmem:[#allocation2 + $0x50] sm:$0xf] }
 0x1cb   :  { %v933_v21 = vpack.c.bf16 %v892_v20, %v891_v14  ;;  %v1190_v23 = vpop.permute.xlu1 %1189  ;;  %v1945_v20 = vld [vmem:[#allocation2 + $0x70] sm:$0xf] }
 0x1cc   :  { %v776_v25 = vpop.f32.mrb[92].mxu0  ;;  %1192 = vst.msk [vmem:[#allocation3 + $0x14] sm:$0xf] %vm1060_vm3, %v1190_v23  ;;  %v5546_v42 = vld [vmem:[#allocation2 + $0xac] ss:$0 sps:$4 sm:$0xff]  }
 0x1cd   :  { %966 = vst.msk [vmem:[#allocation2 + $0xb0] sm:$0xff] %vm943_vm0, %v933_v21  ;;  %v777_v26 = vadd.f32 %v6246_v32, %v776_v25  ;;  %v778_v27 = vpop.f32.mrb[93].mxu0  ;;  %1795 = vrot.lane.b32.xlu1 %v5538_v24, %s5738_s13  ;;  %2192 = vrot.lane.b32.xlu0 %v5539_v22, %s5739_s21  ;;  %v5550_v56 = vld [vmem:[#allocation2 + $0xa8] ss:$0 sps:$4 sm:$0xff]   ;;  %v5552_v3 = vld [vmem:[#allocation2 + $0xac] ss:$0 sps:$4 sm:$0xff]  }
 0x1ce   :  { %v779_v29 = vpop.f32.mrb[94].mxu0  ;;  %v5554_v12 = vld [vmem:[#allocation2 + $0xac] ss:$0 sps:$4 sm:$0xff]   ;;  %v5557_v21 = vld [vmem:[#allocation2 + $0x94] ss:$0 sps:$4 sm:$0xff]   ;;  %v6344_v22 = vld [vmem:[%s7262_s3 + $0xd8] sm:$0xff]  }
 0x1cf   :  { %v893_v33 = vmax.f32 %v777_v26, 0.0  ;;  %v780_v34 = vadd.f32 %v6246_v32, %v779_v29  ;;  %v781_v35 = vpop.f32.mrb[95].mxu0  ;;  %v1357_v36 = vld [vmem:[#allocation3] sm:$0xff]  ;;  %v1198_v9 = vpop.permute.xlu1 %1197 }
 0x1d0   :  { %1738 = vst.msk [vmem:[#allocation3 + $0x4] sm:$0xf] %vm1042_vm1, %v1737_v28  ;;  %1712 = vst.msk [vmem:[#allocation3] sm:$0xf] %vm1042_vm1, %v1711_v30 }
 0x1d1   :  { %1200 = vst.msk [vmem:[#allocation3 + $0x14] sm:$0xf] %vm1069_vm4, %v1198_v9  ;;  %v894_v38 = vmax.f32 %v780_v34, 0.0  ;;  %2210 = vrot.lane.b32.xlu1 %v5542_v37, %s5738_s13  ;;  %1977 = vrot.lane.b32.xlu0 %v5543_v31, %s5738_s13  ;;  %v6364_v37 = vld [vmem:[%s7262_s3 + $0xe0] sm:$0xff]  }
 0x1d3   :  { %v934_v39 = vpack.c.bf16 %v894_v38, %v893_v33  ;;  %v1286_v41 = vpop.permute.xlu1 %1285  ;;  %v6354_v33 = vld [vmem:[%s7262_s3 + $0x98] sm:$0xff]  }
 0x1d4   :  { %v784_v43 = vpop.f32.mrb[96].mxu0  ;;  %1288 = vst.msk [vmem:[#allocation3 + $0x24] sm:$0xf] %vm1051_vm2, %v1286_v41  ;;  %v5556_v26 = vld [vmem:[#allocation2 + $0xb0] ss:$0 sps:$4 sm:$0xff]  }
 0x1d5   :  { %967 = vst.msk [vmem:[#allocation2 + $0xb8] sm:$0xff] %vm943_vm0, %v934_v39  ;;  %v785_v44 = vadd.f32 %v6246_v32, %v784_v43  ;;  %v786_v45 = vpop.f32.mrb[97].mxu0  ;;  %1899 = vrot.lane.b32.xlu1 %v5546_v42, %s5738_s13  ;;  %1985 = vrot.lane.b32.xlu0 %v5547_v40, %s5739_s21  ;;  %v5558_v39 = vld [vmem:[#allocation2 + $0xb4] ss:$0 sps:$4 sm:$0xff]   ;;  %v6371_v42 = vld [vmem:[%s7262_s3 + $0xa0] sm:$0xff]  }
 0x1d6   :  { %v787_v47 = vpop.f32.mrb[98].mxu0  ;;  %v5559_v40 = vld [vmem:[#allocation2 + $0x94] ss:$0 sps:$4 sm:$0xff]  }
 0x1d7   :  { %v895_v50 = vmax.f32 %v785_v44, 0.0  ;;  %v788_v51 = vadd.f32 %v6246_v32, %v787_v47  ;;  %v789_v52 = vpop.f32.mrb[99].mxu0  ;;  %v1294_v54 = vpop.permute.xlu1 %1293  ;;  %v6379_v44 = vld [vmem:[%s7262_s3 + $0xe8] sm:$0xff]   ;;  %v5561_v47 = vld [vmem:[#allocation2 + $0x98] ss:$0 sps:$4 sm:$0xff]  }
 0x1d8   :  { %v1359_v53 = vld [vmem:[#allocation3 + $0x10] sm:$0xff]  ;;  %v1104_v55 = vpop.permute.xlu0 %1103  ;;  %1296 = vst.msk [vmem:[#allocation3 + $0x24] sm:$0xf] %vm1060_vm3, %v1294_v54 }
 0x1d9   :  { %1842 = vst.msk [vmem:[#allocation3 + $0x14] sm:$0xf] %vm1042_vm1, %v1841_v46  ;;  %v4584_v57 = vcombine.high %v1357_v36, %v1359_v53  ;;  %v4583_v58 = vcombine.low %v1357_v36, %v1359_v53  ;;  %v896_v59 = vmax.f32 %v788_v51, 0.0  ;;  %1816 = vst.msk [vmem:[#allocation3 + $0x10] sm:$0xf] %vm1042_vm1, %v1815_v48  ;;  %1803 = vrot.lane.b32.xlu1 %v5550_v56, %s5739_s21  ;;  %1993 = vrot.lane.b32.xlu0 %v5551_v49, %s5740_s22  ;;  %v6388_v51 = vld [vmem:[%s7262_s3 + $0xa8] sm:$0xff]  }
 0x1da   :  { %1106 = vst.msk [vmem:[#allocation3 + $0x8] sm:$0xf] %vm1051_vm2, %v1104_v55  ;;  %v5560_v46 = vld [vmem:[#allocation2 + $0xa8] ss:$0 sps:$4 sm:$0xff]   ;;  %v6397_v56 = vld [vmem:[%s7262_s3 + $0xf0] sm:$0xff]  }
 0x1db   :  { %1627 = vmatprep.mubr.bf16.mxu1 %v4584_v57  ;;  %v935_v61 = vpack.c.bf16 %v896_v59, %v895_v50  ;;  %v1302_v1 = vpop.permute.xlu1 %1301  ;;  %v5563_v59 = vld [vmem:[#allocation2 + $0x9c] ss:$0 sps:$4 sm:$0xff]  }
 0x1dc   :  { %v1718_v2 = vpop.permute.xlu0 %1717  ;;  %1628 = vmatmul.mubr.bf16.vlgmr.msra.gmra.mrb[0].mxu1 %v4583_v58  ;;  %1304 = vst.msk [vmem:[#allocation3 + $0x24] sm:$0xf] %vm1069_vm4, %v1302_v1  ;;  %v792_v4 = vpop.f32.mrb[100].mxu0  ;;  %v5562_v58 = vld [vmem:[#allocation2 + $0xac] ss:$0 sps:$4 sm:$0xff]  }
 0x1dd   :  { %1720 = vst.msk [vmem:[#allocation3] sm:$0xf] %vm1051_vm2, %v1718_v2  ;;  %4969 = vmatpush3.bf16.msra.mxu1 %v6303_v60  ;;  %1811 = vrot.lane.b32.xlu1 %v5552_v3, %s5740_s22  ;;  %v793_v6 = vadd.f32 %v6246_v32, %v792_v4  ;;  %v794_v7 = vpop.f32.mrb[101].mxu0  ;;  %v5564_v2 = vld [vmem:[#allocation2 + $0xb4] ss:$0 sps:$4 sm:$0xff]   ;;  %v6412_v3 = vld [vmem:[%s7262_s3 + $0xf8] sm:$0xff]  }
 0x1de   :  { %968 = vst.msk [vmem:[#allocation2 + $0xc0] sm:$0xff] %vm943_vm0, %v935_v61  ;;  %2296 = vrot.lane.b32.xlu0 %v5553_v62, %s5739_s21  ;;  %v795_v8 = vpop.f32.mrb[102].mxu0  ;;  %4970 = vmatprep.subr.bf16.mxu1 %v6310_v63  ;;  %v6404_v62 = vld [vmem:[%s7262_s3 + $0xb0] sm:$0xff]  }
 0x1df   :  { %v897_v14 = vmax.f32 %v793_v6, 0.0  ;;  %v796_v15 = vadd.f32 %v6246_v32, %v795_v8  ;;  %v797_v16 = vpop.f32.mrb[103].mxu0 }
 0x1e0   :  { %v1208_v11 = vpop.permute.xlu0 %1207 }
 0x1e1   :  { %1210 = vst.msk [vmem:[#allocation3 + $0x18] sm:$0xf] %vm1051_vm2, %v1208_v11  ;;  %4971 = vmatpush3.bf16.msra.mxu1 %v6319_v5  ;;  %2314 = vrot.lane.b32.xlu1 %v5554_v12, %s5738_s13  ;;  %v898_v18 = vmax.f32 %v796_v15, 0.0  ;;  %v6421_v12 = vld [vmem:[%s7262_s3 + $0xb8] sm:$0xff]  }
 0x1e2   :  { %2200 = vrot.lane.b32.xlu0 %v5555_v13, %s5740_s22  ;;  %4972 = vmatprep.subr.bf16.mxu1 %v6328_v10 }
 0x1e3   :  { %v1361_v23 = vld [vmem:[#allocation3 + $0x20] sm:$0xff]  ;;  %v936_v25 = vpack.c.bf16 %v898_v18, %v897_v14 }
 0x1e4   :  { %v1112_v24 = vpop.permute.xlu0 %1111  ;;  %v800_v27 = vpop.f32.mrb[104].mxu0  ;;  %1946 = vst.msk [vmem:[#allocation3 + $0x24] sm:$0xf] %vm1042_vm1, %v1945_v20  ;;  %v4588_v28 = vcombine.high %v1361_v23, %v1361_v23  ;;  %v4587_v29 = vcombine.low %v1361_v23, %v1361_v23  ;;  %1920 = vst.msk [vmem:[#allocation3 + $0x20] sm:$0xf] %vm1042_vm1, %v1919_v19 }
 0x1e5   :  { %1114 = vst.msk [vmem:[#allocation3 + $0x8] sm:$0xf] %vm1060_vm3, %v1112_v24  ;;  %v801_v30 = vadd.f32 %v6246_v32, %v800_v27  ;;  %v802_v31 = vpop.f32.mrb[105].mxu0  ;;  %4973 = vmatpush3.bf16.msra.mxu1 %v6336_v17  ;;  %1907 = vrot.lane.b32.xlu1 %v5556_v26, %s5739_s21  ;;  %v5565_v6 = vld [vmem:[#allocation2 + $0xc4] ss:$0 sps:$4 sm:$0xff]  }
 0x1e6   :  { %969 = vst.msk [vmem:[#allocation2 + $0xc8] sm:$0xff] %vm943_vm0, %v936_v25  ;;  %2304 = vrot.lane.b32.xlu0 %v5557_v21, %s5740_s22  ;;  %v803_v34 = vpop.f32.mrb[106].mxu0  ;;  %1635 = vmatprep.mubr.bf16.mxu1 %v4588_v28  ;;  %v5566_v20 = vld [vmem:[#allocation2 + $0xb0] ss:$0 sps:$4 sm:$0xff]   ;;  %v5568_v25 = vld [vmem:[#allocation2 + $0xb8] ss:$0 sps:$4 sm:$0xff]  }
 0x1e7   :  { %v899_v35 = vmax.f32 %v801_v30, 0.0  ;;  %v804_v36 = vadd.f32 %v6246_v32, %v803_v34  ;;  %v805_v9 = vpop.f32.mrb[107].mxu0  ;;  %4974 = vmatprep.subr.bf16.mxu1 %v6344_v22  ;;  %1636 = vmatmul.mubr.bf16.gmra.mrb[4].mxu1 %v4587_v29  ;;  %v6435_v26 = vld [vmem:[%s7262_s3 + $0x40] sm:$0xff]  }
 0x1e8   :  { %v1120_v38 = vpop.permute.xlu0 %1119 }
 0x1e9   :  { %1122 = vst.msk [vmem:[#allocation3 + $0x8] sm:$0xf] %vm1069_vm4, %v1120_v38  ;;  %v900_v41 = vmax.f32 %v804_v36, 0.0  ;;  %4975 = vmatpush3.bf16.msra.mxu1 %v6354_v33  ;;  %1915 = vrot.lane.b32.xlu1 %v5558_v39, %s5740_s22  ;;  %v5570_v38 = vld [vmem:[#allocation2 + $0xbc] ss:$0 sps:$4 sm:$0xff]  }
 0x1ea   :  { %2392 = vrot.lane.b32.xlu0 %v5559_v40, %s5738_s13  ;;  %4976 = vmatprep.subr.bf16.mxu1 %v6364_v37 }
 0x1eb   :  { %v937_v43 = vpack.c.bf16 %v900_v41, %v899_v35 }
 0x1ec   :  { %v1822_v45 = vpop.permute.xlu0 %1821  ;;  %v808_v48 = vpop.f32.mrb[108].mxu0 }
 0x1ed   :  { %1824 = vst.msk [vmem:[#allocation3 + $0x10] sm:$0xf] %vm1051_vm2, %v1822_v45  ;;  %v809_v49 = vadd.f32 %v6246_v32, %v808_v48  ;;  %v810_v50 = vpop.f32.mrb[109].mxu0  ;;  %4977 = vmatpush3.bf16.msra.mxu1 %v6371_v42  ;;  %2218 = vrot.lane.b32.xlu1 %v5560_v46, %s5739_s21  ;;  %v5567_v21 = vld [vmem:[#allocation2 + $0xcc] ss:$0 sps:$4 sm:$0xff]  }
 0x1ee   :  { %970 = vst.msk [vmem:[#allocation2 + $0xd0] sm:$0xff] %vm943_vm0, %v937_v43  ;;  %2400 = vrot.lane.b32.xlu0 %v5561_v47, %s5739_s21  ;;  %v811_v52 = vpop.f32.mrb[110].mxu0  ;;  %4978 = vmatprep.subr.bf16.mxu1 %v6379_v44  ;;  %v5569_v29 = vld [vmem:[#allocation2 + $0xc8] ss:$0 sps:$4 sm:$0xff]   ;;  %v5571_v39 = vld [vmem:[#allocation2 + $0xcc] ss:$0 sps:$4 sm:$0xff]  }
 0x1ef   :  { %v901_v53 = vmax.f32 %v809_v49, 0.0  ;;  %v812_v54 = vadd.f32 %v6246_v32, %v811_v52  ;;  %v813_v55 = vpop.f32.mrb[111].mxu0  ;;  %v5572_v49 = vld [vmem:[#allocation2 + $0xb4] ss:$0 sps:$4 sm:$0xff]  }
 0x1f0   :  { %v1726_v57 = vpop.permute.xlu0 %1725 }
 0x1f1   :  { %1728 = vst.msk [vmem:[#allocation3] sm:$0xf] %vm1060_vm3, %v1726_v57  ;;  %v902_v61 = vmax.f32 %v812_v54, 0.0  ;;  %4979 = vmatpush3.bf16.msra.mxu1 %v6388_v51  ;;  %2226 = vrot.lane.b32.xlu1 %v5562_v58, %s5740_s22 }
 0x1f2   :  { %2408 = vrot.lane.b32.xlu0 %v5563_v59, %s5740_s22  ;;  %4980 = vmatprep.subr.bf16.mxu1 %v6397_v56  ;;  %v5576_v59 = vld [vmem:[#allocation2 + $0xb4] ss:$0 sps:$4 sm:$0xff]  }
 0x1f3   :  { %v938_v1 = vpack.c.bf16 %v902_v61, %v901_v53 }
 0x1f4   :  { %v1734_v4 = vpop.permute.xlu0 %1733  ;;  %v816_v7 = vpop.f32.mrb[112].mxu0 }
 0x1f5   :  { %1736 = vst.msk [vmem:[#allocation3] sm:$0xf] %vm1069_vm4, %v1734_v4  ;;  %v817_v8 = vadd.f32 %v6246_v32, %v816_v7  ;;  %v818_v11 = vpop.f32.mrb[113].mxu0  ;;  %4981 = vmatpush3.bf16.msra.mxu1 %v6404_v62  ;;  %2003 = vrot.lane.b32.xlu1 %v5564_v2, %s5738_s13  ;;  %v5573_v50 = vld [vmem:[#allocation2 + $0xd0] ss:$0 sps:$4 sm:$0xff]  }
 0x1f6   :  { %971 = vst.msk [vmem:[#allocation2 + $0xd8] sm:$0xff] %vm943_vm0, %v938_v1  ;;  %2236 = vrot.lane.b32.xlu0 %v5565_v6, %s5738_s13  ;;  %v819_v13 = vpop.f32.mrb[114].mxu0  ;;  %4982 = vmatprep.subr.bf16.mxu1 %v6412_v3  ;;  %v5577_v61 = vld [vmem:[#allocation2 + $0xd4] ss:$0 sps:$4 sm:$0xff]   ;;  %v5580_v11 = vld [vmem:[#allocation2 + $0xb8] ss:$0 sps:$4 sm:$0xff]  }
 0x1f7   :  { %v903_v14 = vmax.f32 %v817_v8, 0.0  ;;  %v820_v15 = vadd.f32 %v6246_v32, %v819_v13  ;;  %v821_v16 = vpop.f32.mrb[115].mxu0  ;;  %v1130_v18 = vpop.permute.xlu1 %1129  ;;  %v5581_v13 = vld [vmem:[#allocation2 + $0xd4] ss:$0 sps:$4 sm:$0xff]  }
 0x1f8   :  { %v1216_v19 = vpop.permute.xlu0 %1215  ;;  %1132 = vst.msk [vmem:[#allocation3 + $0xc] sm:$0xf] %vm1051_vm2, %v1130_v18  ;;  %v1789_v16 = vld [vmem:[#allocation2 + $0xa0] sm:$0xf] }
 0x1f9   :  { %1218 = vst.msk [vmem:[#allocation3 + $0x18] sm:$0xf] %vm1060_vm3, %v1216_v19  ;;  %v904_v23 = vmax.f32 %v820_v15, 0.0  ;;  %4983 = vmatpush3.bf16.msra.mxu1 %v6421_v12  ;;  %2322 = vrot.lane.b32.xlu1 %v5566_v20, %s5739_s21  ;;  %v1763_v20 = vld [vmem:[#allocation2 + $0x80] sm:$0xf] }
 0x1fa   :  { %2340 = vrot.lane.b32.xlu0 %v5567_v21, %s5738_s13  ;;  %4996 = vmatprep.subr.bf16.mxu1 %v6435_v26 }
 0x1fb   :  { %v939_v24 = vpack.c.bf16 %v904_v23, %v903_v14  ;;  %v1744_v27 = vpop.permute.xlu1 %1743 }
 0x1fc   :  { %v1224_v28 = vpop.permute.xlu0 %1223  ;;  %1746 = vst.msk [vmem:[#allocation3 + $0x4] sm:$0xf] %vm1051_vm2, %v1744_v27  ;;  %v824_v30 = vpop.f32.mrb[116].mxu0 }
 0x1fd   :  { %1226 = vst.msk [vmem:[#allocation3 + $0x18] sm:$0xf] %vm1069_vm4, %v1224_v28  ;;  %2011 = vrot.lane.b32.xlu1 %v5568_v25, %s5739_s21  ;;  %v825_v31 = vadd.f32 %v6246_v32, %v824_v30  ;;  %v826_v34 = vpop.f32.mrb[117].mxu0  ;;  %v5584_v25 = vld [vmem:[#allocation2 + $0xbc] ss:$0 sps:$4 sm:$0xff]  }
 0x1fe   :  { %972 = vst.msk [vmem:[#allocation2 + $0xe0] sm:$0xff] %vm943_vm0, %v939_v24  ;;  %2244 = vrot.lane.b32.xlu0 %v5569_v29, %s5739_s21  ;;  %v827_v35 = vpop.f32.mrb[118].mxu0  ;;  %v5585_v27 = vld [vmem:[#allocation2 + $0xd8] ss:$0 sps:$4 sm:$0xff]  }
 0x1ff   :  { %v1234_v36 = vpop.permute.xlu1 %1233  ;;  %v905_v40 = vmax.f32 %v825_v31, 0.0  ;;  %v828_v41 = vadd.f32 %v6246_v32, %v827_v35  ;;  %v829_v43 = vpop.f32.mrb[119].mxu0 }
 0x200   :  { %v1312_v9 = vpop.permute.xlu0 %1311  ;;  %1236 = vst.msk [vmem:[#allocation3 + $0x1c] sm:$0xf] %vm1051_vm2, %v1234_v36 }
 0x201   :  { %1314 = vst.msk [vmem:[#allocation3 + $0x28] sm:$0xf] %vm1051_vm2, %v1312_v9  ;;  %2019 = vrot.lane.b32.xlu1 %v5570_v38, %s5740_s22  ;;  %v906_v45 = vmax.f32 %v828_v41, 0.0  ;;  %v5589_v9 = vld [vmem:[#allocation2 + $0xdc] ss:$0 sps:$4 sm:$0xff]  }
 0x202   :  { %2252 = vrot.lane.b32.xlu0 %v5571_v39, %s5740_s22 }
 0x203   :  { %v1138_v46 = vpop.permute.xlu1 %1137  ;;  %v940_v48 = vpack.c.bf16 %v906_v45, %v905_v40  ;;  %v2204_v45 = vld [vmem:[#allocation2 + $0xa0] sm:$0xf] }
 0x204   :  { %v1830_v47 = vpop.permute.xlu0 %1829  ;;  %1140 = vst.msk [vmem:[#allocation3 + $0xc] sm:$0xf] %vm1060_vm3, %v1138_v46  ;;  %v832_v52 = vpop.f32.mrb[120].mxu0 }
 0x205   :  { %1832 = vst.msk [vmem:[#allocation3 + $0x10] sm:$0xf] %vm1060_vm3, %v1830_v47  ;;  %2330 = vrot.lane.b32.xlu1 %v5572_v49, %s5740_s22  ;;  %v833_v53 = vadd.f32 %v6246_v32, %v832_v52  ;;  %v834_v54 = vpop.f32.mrb[121].mxu0  ;;  %v5588_v36 = vld [vmem:[#allocation2 + $0xe4] ss:$0 sps:$4 sm:$0xff]  }
 0x206   :  { %973 = vst.msk [vmem:[#allocation2 + $0xe8] sm:$0xff] %vm943_vm0, %v940_v48  ;;  %2348 = vrot.lane.b32.xlu0 %v5573_v50, %s5739_s21  ;;  %v835_v55 = vpop.f32.mrb[122].mxu0  ;;  %v1867_v54 = vld [vmem:[#allocation2 + $0x88] sm:$0xf] }
 0x207   :  { %v1146_v57 = vpop.permute.xlu1 %1145  ;;  %v907_v1 = vmax.f32 %v833_v53, 0.0  ;;  %v836_v2 = vadd.f32 %v6246_v32, %v835_v55  ;;  %v837_v4 = vpop.f32.mrb[123].mxu0  ;;  %v1893_v55 = vld [vmem:[#allocation2 + $0xa8] sm:$0xf] }
 0x208   :  { %v1838_v58 = vpop.permute.xlu0 %1837  ;;  %1148 = vst.msk [vmem:[#allocation3 + $0xc] sm:$0xf] %vm1069_vm4, %v1146_v57 }
 0x209   :  { %1840 = vst.msk [vmem:[#allocation3 + $0x10] sm:$0xf] %vm1069_vm4, %v1838_v58  ;;  %2418 = vrot.lane.b32.xlu1 %v5576_v59, %s5738_s13  ;;  %v908_v6 = vmax.f32 %v836_v2, 0.0 }
 0x20a   :  { %2356 = vrot.lane.b32.xlu0 %v5577_v61, %s5740_s22 }
 0x20b   :  { %v1848_v7 = vpop.permute.xlu1 %1847  ;;  %v941_v14 = vpack.c.bf16 %v908_v6, %v907_v1 }
 0x20c   :  { %v1926_v8 = vpop.permute.xlu0 %1925  ;;  %1850 = vst.msk [vmem:[#allocation3 + $0x14] sm:$0xf] %vm1051_vm2, %v1848_v7  ;;  %v840_v15 = vpop.f32.mrb[124].mxu0 }
 0x20d   :  { %1928 = vst.msk [vmem:[#allocation3 + $0x20] sm:$0xf] %vm1051_vm2, %v1926_v8  ;;  %2426 = vrot.lane.b32.xlu1 %v5580_v11, %s5739_s21  ;;  %v841_v18 = vadd.f32 %v6246_v32, %v840_v15  ;;  %v842_v19 = vpop.f32.mrb[125].mxu0  ;;  %v5592_v43 = vld [vmem:[#allocation2 + $0xec] ss:$0 sps:$4 sm:$0xff]   ;;  %v6505_v8 = vld [vmem:[%s7262_s3] sm:$0xff]  }
 0x20e   :  { %2444 = vrot.lane.b32.xlu0 %v5581_v13, %s5738_s13  ;;  %974 = vst.msk [vmem:[#allocation2 + $0xf0] sm:$0xff] %vm943_vm0, %v941_v14  ;;  %v843_v28 = vpop.f32.mrb[126].mxu0  ;;  %v5595_v49 = vld [vmem:[#allocation2 + $0xe8] ss:$0 sps:$4 sm:$0xff]   ;;  %v5598_v53 = vld [vmem:[#allocation2 + $0xec] ss:$0 sps:$4 sm:$0xff]  }
 0x20f   :  { %v6466_v21 = vld [vmem:[#allocation3 + $0x8] sm:$0xff]  ;;  %v1752_v23 = vpop.permute.xlu1 %1751  ;;  %v909_v29 = vmax.f32 %v841_v18, 0.0  ;;  %v844_v30 = vadd.f32 %v6246_v32, %v843_v28  ;;  %v845_v31 = vpop.f32.mrb[127].mxu0  ;;  %v2178_v32 = vld [vmem:[#allocation2 + $0x80] sm:$0xf]  ;;  %v6527_v18 = vld [vmem:[%s7262_s3 + $0x50] sm:$0xff]  }
 0x210   :  { %v1320_v24 = vpop.permute.xlu0 %1319  ;;  %1790 = vst.msk [vmem:[#allocation3 + $0xc] sm:$0xf] %vm1042_vm1, %v1789_v16  ;;  %1764 = vst.msk [vmem:[#allocation3 + $0x8] sm:$0xf] %vm1042_vm1, %v1763_v20  ;;  %v6512_v11 = vld [vmem:[%s7262_s3 + $0x48] sm:$0xff]   ;;  %v6546_v28 = vld [vmem:[%s7262_s3 + $0x58] sm:$0xff]  }
 0x211   :  { %1754 = vst.msk [vmem:[#allocation3 + $0x4] sm:$0xf] %vm1060_vm3, %v1752_v23  ;;  %1322 = vst.msk [vmem:[#allocation3 + $0x28] sm:$0xf] %vm1060_vm3, %v1320_v24  ;;  %2434 = vrot.lane.b32.xlu1 %v5584_v25, %s5740_s22  ;;  %v910_v38 = vmax.f32 %v844_v30, 0.0  ;;  %v6520_v16 = vld [vmem:[%s7262_s3 + $0x8] sm:$0xff]  }
 0x212   :  { %2452 = vrot.lane.b32.xlu0 %v5585_v27, %s5739_s21  ;;  %v2308_v20 = vld [vmem:[#allocation2 + $0xa8] sm:$0xf]  ;;  %v6538_v27 = vld [vmem:[%s7262_s3 + $0x10] sm:$0xff]  }
 0x213   :  { %v1760_v34 = vpop.permute.xlu1 %1759  ;;  %v942_v39 = vpack.c.bf16 %v910_v38, %v909_v29  ;;  %v2282_v25 = vld [vmem:[#allocation2 + $0x88] sm:$0xf]  ;;  %v6569_v38 = vld [vmem:[%s7262_s3 + $0x20] sm:$0xff]  }
 0x214   :  { %v1328_v35 = vpop.permute.xlu0 %1327  ;;  %1762 = vst.msk [vmem:[#allocation3 + $0x4] sm:$0xf] %vm1069_vm4, %v1760_v34  ;;  %v6554_v34 = vld [vmem:[%s7262_s3 + $0x18] sm:$0xff]  }
 0x215   :  { %1330 = vst.msk [vmem:[#allocation3 + $0x28] sm:$0xf] %vm1069_vm4, %v1328_v35  ;;  %2262 = vrot.lane.b32.xlu1 %v5588_v36, %s5738_s13  ;;  %v5601_v61 = vld [vmem:[#allocation2 + $0xf0] ss:$0 sps:$4 sm:$0xff]   ;;  %v5602_v7 = vld [vmem:[#allocation2 + $0xf4] ss:$0 sps:$4 sm:$0xff]  }
 0x216   :  { %2460 = vrot.lane.b32.xlu0 %v5589_v9, %s5740_s22  ;;  %975 = vst.msk [vmem:[#allocation2 + $0xf8] sm:$0xff] %vm943_vm0, %v942_v39  ;;  %v5603_v15 = vld [vmem:[#allocation2 + $0xf4] ss:$0 sps:$4 sm:$0xff]   ;;  %v6561_v35 = vld [vmem:[%s7262_s3 + $0x60] sm:$0xff]   ;;  %v6575_v39 = vld [vmem:[%s7262_s3 + $0x68] sm:$0xff]  }
 0x217   :  { %v1242_v40 = vpop.permute.xlu1 %1241 }
 0x218   :  { %v1934_v41 = vpop.permute.xlu0 %1933  ;;  %1244 = vst.msk [vmem:[#allocation3 + $0x1c] sm:$0xf] %vm1060_vm3, %v1242_v40  ;;  %v1997_v40 = vld [vmem:[#allocation2 + $0xb0] sm:$0xf] }
 0x219   :  { %1936 = vst.msk [vmem:[#allocation3 + $0x20] sm:$0xf] %vm1060_vm3, %v1934_v41  ;;  %2366 = vrot.lane.b32.xlu1 %v5592_v43, %s5738_s13 }
 0x21b   :  { %v6483_v46 = vld [vmem:[#allocation3] sm:$0xff]  ;;  %v1250_v47 = vpop.permute.xlu1 %1249 }
 0x21c   :  { %v1942_v48 = vpop.permute.xlu0 %1941  ;;  %2205 = vst.msk [vmem:[#allocation3 + $0x4] sm:$0xf] %vm1042_vm1, %v2204_v45  ;;  %2179 = vst.msk [vmem:[#allocation3] sm:$0xf] %vm1042_vm1, %v2178_v32  ;;  %v1971_v45 = vld [vmem:[#allocation2 + $0x90] sm:$0xf] }
 0x21d   :  { %1252 = vst.msk [vmem:[#allocation3 + $0x1c] sm:$0xf] %vm1069_vm4, %v1250_v47  ;;  %1944 = vst.msk [vmem:[#allocation3 + $0x20] sm:$0xf] %vm1069_vm4, %v1942_v48  ;;  %2270 = vrot.lane.b32.xlu1 %v5595_v49, %s5739_s21  ;;  %v5604_v19 = vld [vmem:[#allocation2 + $0xf8] ss:$0 sps:$4 sm:$0xff]  }
 0x21e   :  { %v5605_v29 = vld [vmem:[#allocation2 + $0xfc] ss:$0 sps:$4 sm:$0xff]   ;;  %v6584_v47 = vld [vmem:[%s7262_s3 + $0x28] sm:$0xff]  }
 0x21f   :  { %v1338_v50 = vpop.permute.xlu1 %1337 }
 0x220   :  { %v1770_v52 = vpop.permute.xlu0 %1769  ;;  %1340 = vst.msk [vmem:[#allocation3 + $0x2c] sm:$0xf] %vm1051_vm2, %v1338_v50  ;;  %v6591_v50 = vld [vmem:[%s7262_s3 + $0x70] sm:$0xff]  }
 0x221   :  { %1772 = vst.msk [vmem:[#allocation3 + $0x8] sm:$0xf] %vm1051_vm2, %v1770_v52  ;;  %2278 = vrot.lane.b32.xlu1 %v5598_v53, %s5740_s22 }
 0x223   :  { %v1856_v58 = vpop.permute.xlu1 %1855 }
 0x224   :  { %v1360_v57 = vld [vmem:[#allocation3 + $0x18] sm:$0xff]  ;;  %v2185_v59 = vpop.permute.xlu0 %2184  ;;  %1858 = vst.msk [vmem:[#allocation3 + $0x14] sm:$0xf] %vm1060_vm3, %v1856_v58  ;;  %v2412_v58 = vld [vmem:[#allocation2 + $0xb0] sm:$0xf] }
 0x225   :  { %1894 = vst.msk [vmem:[#allocation3 + $0x1c] sm:$0xf] %vm1042_vm1, %v1893_v55  ;;  %v4586_v1 = vcombine.high %v6466_v21, %v1360_v57  ;;  %1868 = vst.msk [vmem:[#allocation3 + $0x18] sm:$0xf] %vm1042_vm1, %v1867_v54  ;;  %v4585_v2 = vcombine.low %v6466_v21, %v1360_v57  ;;  %2374 = vrot.lane.b32.xlu1 %v5601_v61, %s5739_s21  ;;  %v6601_v55 = vld [vmem:[%s7262_s3 + $0x30] sm:$0xff]   ;;  %v6607_v57 = vld [vmem:[%s7262_s3 + $0x78] sm:$0xff]  }
 0x226   :  { %2187 = vst.msk [vmem:[#allocation3] sm:$0xf] %vm1051_vm2, %v2185_v59 }
 0x227   :  { %1675 = vmatprep.mubr.bf16.mxu1 %v4586_v1  ;;  %v1864_v4 = vpop.permute.xlu1 %1863 }
 0x228   :  { %v1874_v6 = vpop.permute.xlu0 %1873  ;;  %1676 = vmatmul.mubr.bf16.vlgmr.msra.gmra.mrb[8].mxu1 %v4585_v2  ;;  %1866 = vst.msk [vmem:[#allocation3 + $0x14] sm:$0xf] %vm1069_vm4, %v1864_v4  ;;  %v2386_v2 = vld [vmem:[#allocation2 + $0x90] sm:$0xf]  ;;  %v6616_v4 = vld [vmem:[%s7262_s3 + $0x38] sm:$0xff]  }
 0x229   :  { %1876 = vst.msk [vmem:[#allocation3 + $0x18] sm:$0xf] %vm1051_vm2, %v1874_v6  ;;  %4997 = vmatpush3.bf16.msra.mxu1 %v6505_v8  ;;  %2382 = vrot.lane.b32.xlu1 %v5602_v7, %s5740_s22  ;;  %v6625_v7 = vld [vmem:[%s7262_s3 + $0xc0] sm:$0xff]  }
 0x22a   :  { %4998 = vmatprep.subr.bf16.mxu1 %v6512_v11 }
 0x22b   :  { %v1952_v13 = vpop.permute.xlu1 %1951 }
 0x22c   :  { %v1778_v14 = vpop.permute.xlu0 %1777  ;;  %1954 = vst.msk [vmem:[#allocation3 + $0x24] sm:$0xf] %vm1051_vm2, %v1952_v13 }
 0x22d   :  { %1780 = vst.msk [vmem:[#allocation3 + $0x8] sm:$0xf] %vm1060_vm3, %v1778_v14  ;;  %4999 = vmatpush3.bf16.msra.mxu1 %v6520_v16  ;;  %2470 = vrot.lane.b32.xlu1 %v5603_v15, %s5738_s13 }
 0x22e   :  { %5000 = vmatprep.subr.bf16.mxu1 %v6527_v18 }
 0x22f   :  { %v6530_v21 = vld [vmem:[#allocation3 + $0x10] sm:$0xff]  ;;  %v1346_v23 = vpop.permute.xlu1 %1345 }
 0x230   :  { %v1786_v24 = vpop.permute.xlu0 %1785  ;;  %2309 = vst.msk [vmem:[#allocation3 + $0x14] sm:$0xf] %vm1042_vm1, %v2308_v20  ;;  %2283 = vst.msk [vmem:[#allocation3 + $0x10] sm:$0xf] %vm1042_vm1, %v2282_v25  ;;  %v4663_v52 = vcombine.high %v6483_v46, %v6530_v21  ;;  %v4662_v6 = vcombine.low %v6483_v46, %v6530_v21 }
 0x231   :  { %1348 = vst.msk [vmem:[#allocation3 + $0x2c] sm:$0xf] %vm1060_vm3, %v1346_v23  ;;  %5001 = vmatpush3.bf16.msra.mxu1 %v6538_v27  ;;  %2478 = vrot.lane.b32.xlu1 %v5604_v19, %s5739_s21 }
 0x232   :  { %1788 = vst.msk [vmem:[#allocation3 + $0x8] sm:$0xf] %vm1069_vm4, %v1786_v24  ;;  %5002 = vmatprep.subr.bf16.mxu1 %v6546_v28 }
 0x233   :  { %v1354_v30 = vpop.permute.xlu1 %1353 }
 0x234   :  { %v2289_v31 = vpop.permute.xlu0 %2288  ;;  %1356 = vst.msk [vmem:[#allocation3 + $0x2c] sm:$0xf] %vm1069_vm4, %v1354_v30  ;;  %v2230_v30 = vld [vmem:[#allocation2 + $0xc0] sm:$0xf] }
 0x235   :  { %2291 = vst.msk [vmem:[#allocation3 + $0x10] sm:$0xf] %vm1051_vm2, %v2289_v31  ;;  %5003 = vmatpush3.bf16.msra.mxu1 %v6554_v34  ;;  %2486 = vrot.lane.b32.xlu1 %v5605_v29, %s5740_s22 }
 0x236   :  { %5004 = vmatprep.subr.bf16.mxu1 %v6561_v35 }
 0x237   :  { %v1960_v36 = vpop.permute.xlu1 %1959 }
 0x238   :  { %v1882_v9 = vpop.permute.xlu0 %1881  ;;  %1962 = vst.msk [vmem:[#allocation3 + $0x24] sm:$0xf] %vm1060_vm3, %v1960_v36 }
 0x239   :  { %1884 = vst.msk [vmem:[#allocation3 + $0x18] sm:$0xf] %vm1060_vm3, %v1882_v9  ;;  %5005 = vmatpush3.bf16.msra.mxu1 %v6569_v38 }
 0x23a   :  { %5006 = vmatprep.subr.bf16.mxu1 %v6575_v39 }
 0x23b   :  { %v1362_v41 = vld [vmem:[#allocation3 + $0x28] sm:$0xff]  ;;  %v1968_v43 = vpop.permute.xlu1 %1967 }
 0x23c   :  { %v1890_v32 = vpop.permute.xlu0 %1889  ;;  %1998 = vst.msk [vmem:[#allocation3 + $0x2c] sm:$0xf] %vm1042_vm1, %v1997_v40  ;;  %v4590_v48 = vcombine.high %v1362_v41, %v1362_v41  ;;  %v4589_v49 = vcombine.low %v1362_v41, %v1362_v41  ;;  %1972 = vst.msk [vmem:[#allocation3 + $0x28] sm:$0xf] %vm1042_vm1, %v1971_v45  ;;  %v2360_v40 = vld [vmem:[#allocation2 + $0xe8] sm:$0xf] }
 0x23d   :  { %1970 = vst.msk [vmem:[#allocation3 + $0x24] sm:$0xf] %vm1069_vm4, %v1968_v43  ;;  %1892 = vst.msk [vmem:[#allocation3 + $0x18] sm:$0xf] %vm1069_vm4, %v1890_v32  ;;  %5007 = vmatpush3.bf16.msra.mxu1 %v6584_v47  ;;  %v2334_v45 = vld [vmem:[#allocation2 + $0xc8] sm:$0xf] }
 0x23e   :  { %5008 = vmatprep.subr.bf16.mxu1 %v6591_v50  ;;  %1683 = vmatprep.mubr.bf16.mxu1 %v4590_v48 }
 0x23f   :  { %v1796_v53 = vpop.permute.xlu1 %1795  ;;  %1684 = vmatmul.mubr.bf16.gmra.mrb[12].mxu1 %v4589_v49 }
 0x240   :  { %v2193_v54 = vpop.permute.xlu0 %2192  ;;  %1798 = vst.msk [vmem:[#allocation3 + $0xc] sm:$0xf] %vm1051_vm2, %v1796_v53  ;;  %2095 = vmatprep.mubr.bf16.mxu1 %v4663_v52 }
 0x241   :  { %2195 = vst.msk [vmem:[#allocation3] sm:$0xf] %vm1060_vm3, %v2193_v54  ;;  %5009 = vmatpush3.bf16.msra.mxu1 %v6601_v55 }
 0x242   :  { %5010 = vmatprep.subr.bf16.mxu1 %v6607_v57 }
 0x243   :  { %v2211_v61 = vpop.permute.xlu1 %2210 }
 0x244   :  { %v2027_v59 = vld [vmem:[#allocation3 + $0x20] sm:$0xff]  ;;  %v1978_v1 = vpop.permute.xlu0 %1977  ;;  %2213 = vst.msk [vmem:[#allocation3 + $0x4] sm:$0xf] %vm1051_vm2, %v2211_v61 }
 0x245   :  { %2413 = vst.msk [vmem:[#allocation3 + $0x24] sm:$0xf] %vm1042_vm1, %v2412_v58  ;;  %5011 = vmatpush3.bf16.msra.mxu1 %v6616_v4  ;;  %2387 = vst.msk [vmem:[#allocation3 + $0x20] sm:$0xf] %vm1042_vm1, %v2386_v2  ;;  %v4667_v13 = vcombine.high %v2027_v59, %v2027_v59  ;;  %v4666_v20 = vcombine.low %v2027_v59, %v2027_v59  ;;  %v2438_v2 = vld [vmem:[#allocation2 + $0xd0] sm:$0xf] }
 0x246   :  { %1980 = vst.msk [vmem:[#allocation3 + $0x28] sm:$0xf] %vm1051_vm2, %v1978_v1  ;;  %5024 = vmatprep.subr.bf16.mxu1 %v6625_v7 }
 0x247   :  { %v1900_v14 = vpop.permute.xlu1 %1899 }
 0x248   :  { %v1986_v15 = vpop.permute.xlu0 %1985  ;;  %2096 = vmatmul.mubr.bf16.vlgmr.msra.gmra.mrb[16].mxu1 %v4662_v6  ;;  %1902 = vst.msk [vmem:[#allocation3 + $0x1c] sm:$0xf] %vm1051_vm2, %v1900_v14 }
 0x249   :  { %1988 = vst.msk [vmem:[#allocation3 + $0x28] sm:$0xf] %vm1060_vm3, %v1986_v15  ;;  %2103 = vmatprep.mubr.bf16.mxu1 %v4667_v13  ;;  %5025 = vmatpush3.bf16.msra.mxu1 %v6303_v60 }
 0x24a   :  { %5026 = vmatprep.subr.bf16.mxu1 %v6310_v63 }
 0x24b   :  { %v1804_v46 = vpop.permute.xlu1 %1803 }
 0x24c   :  { %v1994_v19 = vpop.permute.xlu0 %1993  ;;  %1806 = vst.msk [vmem:[#allocation3 + $0xc] sm:$0xf] %vm1060_vm3, %v1804_v46 }
 0x24d   :  { %1996 = vst.msk [vmem:[#allocation3 + $0x28] sm:$0xf] %vm1069_vm4, %v1994_v19  ;;  %5027 = vmatpush3.bf16.msra.mxu1 %v6319_v5  ;;  %v2256_v5 = vld [vmem:[#allocation2 + $0xe0] sm:$0xf] }
 0x24e   :  { %5028 = vmatprep.subr.bf16.mxu1 %v6328_v10 }
 0x24f   :  { %v1812_v21 = vpop.permute.xlu1 %1811 }
 0x250   :  { %v2297_v23 = vpop.permute.xlu0 %2296  ;;  %2104 = vmatmul.mubr.bf16.gmra.mrb[20].mxu1 %v4666_v20  ;;  %1814 = vst.msk [vmem:[#allocation3 + $0xc] sm:$0xf] %vm1069_vm4, %v1812_v21 }
 0x251   :  { %2299 = vst.msk [vmem:[#allocation3 + $0x10] sm:$0xf] %vm1060_vm3, %v2297_v23  ;;  %5029 = vmatpush3.bf16.msra.mxu1 %v6336_v17  ;;  %v5736_v23 = vld [vmem:[%s7262_s3 + $0x90] sm:$0xff]  }
 0x252   :  { %5030 = vmatprep.subr.bf16.mxu1 %v6344_v22 }
 0x253   :  { %v2315_v60 = vpop.permute.xlu1 %2314 }
 0x254   :  { %v2201_v63 = vpop.permute.xlu0 %2200  ;;  %2317 = vst.msk [vmem:[#allocation3 + $0x14] sm:$0xf] %vm1051_vm2, %v2315_v60 }
 0x255   :  { %2203 = vst.msk [vmem:[#allocation3] sm:$0xf] %vm1069_vm4, %v2201_v63  ;;  %5031 = vmatpush3.bf16.msra.mxu1 %v6354_v33 }
 0x256   :  { %5032 = vmatprep.subr.bf16.mxu1 %v6364_v37 }
 0x257   :  { %v2024_v24 = vld [vmem:[#allocation3 + $0x8] sm:$0xff]  ;;  %v1908_v25 = vpop.permute.xlu1 %1907 }
 0x258   :  { %v2305_v29 = vpop.permute.xlu0 %2304  ;;  %2257 = vst.msk [vmem:[#allocation3 + $0xc] sm:$0xf] %vm1042_vm1, %v2256_v5  ;;  %2231 = vst.msk [vmem:[#allocation3 + $0x8] sm:$0xf] %vm1042_vm1, %v2230_v30 }
 0x259   :  { %1910 = vst.msk [vmem:[#allocation3 + $0x1c] sm:$0xf] %vm1060_vm3, %v1908_v25  ;;  %5033 = vmatpush3.bf16.msra.mxu1 %v6371_v42 }
 0x25a   :  { %2307 = vst.msk [vmem:[#allocation3 + $0x10] sm:$0xf] %vm1069_vm4, %v2305_v29  ;;  %5034 = vmatprep.subr.bf16.mxu1 %v6379_v44 }
 0x25b   :  { %v1916_v17 = vpop.permute.xlu1 %1915 }
 0x25c   :  { %v2393_v31 = vpop.permute.xlu0 %2392  ;;  %1918 = vst.msk [vmem:[#allocation3 + $0x1c] sm:$0xf] %vm1069_vm4, %v1916_v17 }
 0x25d   :  { %2395 = vst.msk [vmem:[#allocation3 + $0x20] sm:$0xf] %vm1051_vm2, %v2393_v31  ;;  %5035 = vmatpush3.bf16.msra.mxu1 %v6388_v51  ;;  %v5618_v31 = vld [vmem:[%s7263_s5 + $0x38] sm:$0xff]  }
 0x25e   :  { %5036 = vmatprep.subr.bf16.mxu1 %v6397_v56 }
 0x25f   :  { %v2219_v36 = vpop.permute.xlu1 %2218 }
 0x260   :  { %v2401_v9 = vpop.permute.xlu0 %2400  ;;  %2221 = vst.msk [vmem:[#allocation3 + $0x4] sm:$0xf] %vm1060_vm3, %v2219_v36 }
 0x261   :  { %2403 = vst.msk [vmem:[#allocation3 + $0x20] sm:$0xf] %vm1060_vm3, %v2401_v9  ;;  %5037 = vmatpush3.bf16.msra.mxu1 %v6404_v62 }
 0x262   :  { %5038 = vmatprep.subr.bf16.mxu1 %v6412_v3 }
 0x263   :  { %v2026_v41 = vld [vmem:[#allocation3 + $0x18] sm:$0xff]  ;;  %v2227_v43 = vpop.permute.xlu1 %2226 }
 0x264   :  { %v2409_v32 = vpop.permute.xlu0 %2408  ;;  %2361 = vst.msk [vmem:[#allocation3 + $0x1c] sm:$0xf] %vm1042_vm1, %v2360_v40  ;;  %v4665_v48 = vcombine.high %v2024_v24, %v2026_v41  ;;  %v4664_v49 = vcombine.low %v2024_v24, %v2026_v41  ;;  %2335 = vst.msk [vmem:[#allocation3 + $0x18] sm:$0xf] %vm1042_vm1, %v2334_v45 }
 0x265   :  { %2229 = vst.msk [vmem:[#allocation3 + $0x4] sm:$0xf] %vm1069_vm4, %v2227_v43  ;;  %2411 = vst.msk [vmem:[#allocation3 + $0x20] sm:$0xf] %vm1069_vm4, %v2409_v32  ;;  %5039 = vmatpush3.bf16.msra.mxu1 %v6421_v12 }
 0x266   :  { %5052 = vmatprep.subr.bf16.mxu1 %v6435_v26  ;;  %2143 = vmatprep.mubr.bf16.mxu1 %v4665_v48  ;;  %v6753_v48 = vld [vmem:[%s7264_s4] ss:$0 sm:$0xff] }
 0x267   :  { %v2004_v52 = vpop.permute.xlu1 %2003 }
 0x268   :  { %v2237_v53 = vpop.permute.xlu0 %2236  ;;  %2144 = vmatmul.mubr.bf16.vlgmr.msra.gmra.mrb[24].mxu1 %v4664_v49  ;;  %2006 = vst.msk [vmem:[#allocation3 + $0x2c] sm:$0xf] %vm1051_vm2, %v2004_v52 }
 0x269   :  { %2239 = vst.msk [vmem:[#allocation3 + $0x8] sm:$0xf] %vm1051_vm2, %v2237_v53  ;;  %5053 = vmatpush3.bf16.msra.mxu1 %v6505_v8 }
 0x26a   :  { %5054 = vmatprep.subr.bf16.mxu1 %v6512_v11 }
 0x26b   :  { %v2323_v54 = vpop.permute.xlu1 %2322 }
 0x26c   :  { %v2341_v58 = vpop.permute.xlu0 %2340  ;;  %2325 = vst.msk [vmem:[#allocation3 + $0x14] sm:$0xf] %vm1060_vm3, %v2323_v54 }
 0x26d   :  { %2343 = vst.msk [vmem:[#allocation3 + $0x18] sm:$0xf] %vm1051_vm2, %v2341_v58  ;;  %5055 = vmatpush3.bf16.msra.mxu1 %v6520_v16 }
 0x26e   :  { %5056 = vmatprep.subr.bf16.mxu1 %v6527_v18 }
 0x26f   :  { %v2012_v26 = vpop.permute.xlu1 %2011 }
 0x270   :  { %v2245_v59 = vpop.permute.xlu0 %2244  ;;  %2014 = vst.msk [vmem:[#allocation3 + $0x2c] sm:$0xf] %vm1060_vm3, %v2012_v26 }
 0x271   :  { %2247 = vst.msk [vmem:[#allocation3 + $0x8] sm:$0xf] %vm1060_vm3, %v2245_v59  ;;  %5057 = vmatpush3.bf16.msra.mxu1 %v6538_v27  ;;  %v2464_v27 = vld [vmem:[#allocation2 + $0xf0] sm:$0xf] }
 0x272   :  { %5058 = vmatprep.subr.bf16.mxu1 %v6546_v28 }
 0x273   :  { %v2020_v8 = vpop.permute.xlu1 %2019 }
 0x274   :  { %v2253_v11 = vpop.permute.xlu0 %2252  ;;  %2022 = vst.msk [vmem:[#allocation3 + $0x2c] sm:$0xf] %vm1069_vm4, %v2020_v8 }
 0x275   :  { %2255 = vst.msk [vmem:[#allocation3 + $0x8] sm:$0xf] %vm1069_vm4, %v2253_v11  ;;  %5059 = vmatpush3.bf16.msra.mxu1 %v6554_v34 }
 0x276   :  { %5060 = vmatprep.subr.bf16.mxu1 %v6561_v35 }
 0x277   :  { %v2331_v16 = vpop.permute.xlu1 %2330 }
 0x278   :  { %v2349_v18 = vpop.permute.xlu0 %2348  ;;  %2333 = vst.msk [vmem:[#allocation3 + $0x14] sm:$0xf] %vm1069_vm4, %v2331_v16 }
 0x279   :  { %2351 = vst.msk [vmem:[#allocation3 + $0x18] sm:$0xf] %vm1060_vm3, %v2349_v18  ;;  %5061 = vmatpush3.bf16.msra.mxu1 %v6569_v38 }
 0x27a   :  { %5062 = vmatprep.subr.bf16.mxu1 %v6575_v39 }
 0x27b   :  { %v2028_v28 = vld [vmem:[#allocation3 + $0x28] sm:$0xff]  ;;  %v2419_v61 = vpop.permute.xlu1 %2418 }
 0x27c   :  { %v2357_v1 = vpop.permute.xlu0 %2356  ;;  %2465 = vst.msk [vmem:[#allocation3 + $0x2c] sm:$0xf] %vm1042_vm1, %v2464_v27  ;;  %v4669_v34 = vcombine.high %v2028_v28, %v2028_v28  ;;  %2439 = vst.msk [vmem:[#allocation3 + $0x28] sm:$0xf] %vm1042_vm1, %v2438_v2  ;;  %v4668_v35 = vcombine.low %v2028_v28, %v2028_v28 }
 0x27d   :  { %2421 = vst.msk [vmem:[#allocation3 + $0x24] sm:$0xf] %vm1051_vm2, %v2419_v61  ;;  %5063 = vmatpush3.bf16.msra.mxu1 %v6584_v47  ;;  %v5606_v47 = vld [vmem:[#allocation3] ss:$16 sps:$4 sm:$0xff]  }
 0x27e   :  { %2359 = vst.msk [vmem:[#allocation3 + $0x18] sm:$0xf] %vm1069_vm4, %v2357_v1  ;;  %5064 = vmatprep.subr.bf16.mxu1 %v6591_v50  ;;  %2151 = vmatprep.mubr.bf16.mxu1 %v4669_v34  ;;  %v5619_v1 = vld [vmem:[%s7263_s5] sm:$0xff]   ;;  %v5620_v34 = vld [vmem:[%s7263_s5 + $0x8] sm:$0xff]  }
 0x27f   :  { %v2427_v38 = vpop.permute.xlu1 %2426  ;;  %2152 = vmatmul.mubr.bf16.gmra.mrb[28].mxu1 %v4668_v35  ;;  %v5608_v6 = vld [vmem:[#allocation3 + $0x4] ss:$16 sps:$4 sm:$0xff]  }
 0x280   :  { %v2445_v39 = vpop.permute.xlu0 %2444  ;;  %2429 = vst.msk [vmem:[#allocation3 + $0x24] sm:$0xf] %vm1060_vm3, %v2427_v38  ;;  %2562 = vmatprep.mubr.bf16.mxu1 %v5608_v6 }
 0x281   :  { %2447 = vst.msk [vmem:[#allocation3 + $0x28] sm:$0xf] %vm1051_vm2, %v2445_v39  ;;  %5065 = vmatpush3.bf16.msra.mxu1 %v6601_v55  ;;  %v5733_v55 = vld [vmem:[%s7262_s3 + $0x80] sm:$0xff]   ;;  %v5621_v39 = vld [vmem:[%s7263_s5 + $0x10] sm:$0xff]  }
 0x282   :  { %5066 = vmatprep.subr.bf16.mxu1 %v6607_v57  ;;  %v5734_v57 = vld [vmem:[%s7262_s3 + $0xc8] sm:$0xff]  }
 0x283   :  { %v2435_v13 = vpop.permute.xlu1 %2434 }
 0x284   :  { %v2453_v14 = vpop.permute.xlu0 %2452  ;;  %2437 = vst.msk [vmem:[#allocation3 + $0x24] sm:$0xf] %vm1069_vm4, %v2435_v13 }
 0x285   :  { %2455 = vst.msk [vmem:[#allocation3 + $0x28] sm:$0xf] %vm1060_vm3, %v2453_v14  ;;  %5067 = vmatpush3.bf16.msra.mxu1 %v6616_v4 }
 0x286   :  { %5080 = vmatprep.subr.bf16.mxu1 %v6625_v7  ;;  %v5735_v7 = vld [vmem:[%s7262_s3 + $0x88] sm:$0xff]  }
 0x287   :  { %v2263_v50 = vpop.permute.xlu1 %2262 }
 0x288   :  { %v2461_v15 = vpop.permute.xlu0 %2460  ;;  %2563 = vmatmul.mubr.bf16.vlgmr.msra.gmra.mrb[32].mxu1 %v5606_v47  ;;  %2265 = vst.msk [vmem:[#allocation3 + $0xc] sm:$0xf] %vm1051_vm2, %v2263_v50 }
 0x289   :  { %2463 = vst.msk [vmem:[#allocation3 + $0x28] sm:$0xf] %vm1069_vm4, %v2461_v15  ;;  %5081 = vmatpush3.bf16.msra.mxu1 %v5733_v55  ;;  %v5622_v15 = vld [vmem:[%s7263_s5 + $0x18] sm:$0xff]  }
 0x28a   :  { %5082 = vmatprep.subr.bf16.mxu1 %v5734_v57 }
 0x28b   :  { %v2367_v4 = vpop.permute.xlu1 %2366  ;;  %v2494_v46 = vld [vmem:[#allocation3 + $0x20] sm:$0xff] }
 0x28c   :  { %2369 = vst.msk [vmem:[#allocation3 + $0x1c] sm:$0xf] %vm1051_vm2, %v2367_v4  ;;  %v4714_v19 = vcombine.high %v2494_v46, %v2494_v46  ;;  %v4713_v20 = vcombine.low %v2494_v46, %v2494_v46 }
 0x28d   :  { %5083 = vmatpush3.bf16.msra.mxu1 %v5735_v7  ;;  %v5623_v7 = vld [vmem:[%s7263_s5 + $0x40] sm:$0xff]  }
 0x28e   :  { %5084 = vmatprep.subr.bf16.mxu1 %v6328_v10  ;;  %2570 = vmatprep.mubr.bf16.mxu1 %v4714_v19 }
 0x28f   :  { %v2271_v21 = vpop.permute.xlu1 %2270 }
 0x290   :  { %2571 = vmatmul.mubr.bf16.gmra.mrb[36].mxu1 %v4713_v20  ;;  %2273 = vst.msk [vmem:[#allocation3 + $0xc] sm:$0xf] %vm1060_vm3, %v2271_v21 }
 0x291   :  { %5085 = vmatpush3.bf16.msra.mxu1 %v5736_v23 }
 0x292   :  { %5086 = vmatprep.subr.bf16.mxu1 %v6344_v22 }
 0x293   :  { %v2279_v60 = vpop.permute.xlu1 %2278 }
 0x294   :  { %2281 = vst.msk [vmem:[#allocation3 + $0xc] sm:$0xf] %vm1069_vm4, %v2279_v60 }
 0x295   :  { %5087 = vmatpush3.bf16.msra.mxu1 %v6354_v33 }
 0x296   :  { %5088 = vmatprep.subr.bf16.mxu1 %v6364_v37  ;;  %v5610_v37 = vld [vmem:[#allocation3 + $0x8] ss:$16 sps:$4 sm:$0xff]  }
 0x297   :  { %v2375_v10 = vpop.permute.xlu1 %2374 }
 0x298   :  { %2377 = vst.msk [vmem:[#allocation3 + $0x1c] sm:$0xf] %vm1060_vm3, %v2375_v10  ;;  %v5624_v10 = vld [vmem:[%s7263_s5 + $0x48] sm:$0xff]  }
 0x299   :  { %5089 = vmatpush3.bf16.msra.mxu1 %v6371_v42  ;;  %v5615_v42 = vld [vmem:[%s7263_s5 + $0x20] sm:$0xff]  }
 0x29a   :  { %5090 = vmatprep.subr.bf16.mxu1 %v6379_v44  ;;  %v5741_v44 = vmov 0.0  }
 0x29b   :  { %v2383_v63 = vpop.permute.xlu1 %2382 }
 0x29c   :  { %2385 = vst.msk [vmem:[#allocation3 + $0x1c] sm:$0xf] %vm1069_vm4, %v2383_v63 }
 0x29d   :  { %5091 = vmatpush3.bf16.msra.mxu1 %v6388_v51 }
 0x29e   :  { %5092 = vmatprep.subr.bf16.mxu1 %v6397_v56  ;;  %v5616_v56 = vld [vmem:[%s7263_s5 + $0x28] sm:$0xff]  }
 0x29f   :  { %v2471_v22 = vpop.permute.xlu1 %2470 }
 0x2a0   :  { %2473 = vst.msk [vmem:[#allocation3 + $0x2c] sm:$0xf] %vm1051_vm2, %v2471_v22 }
 0x2a1   :  { %5093 = vmatpush3.bf16.msra.mxu1 %v6404_v62  ;;  %v5617_v62 = vld [vmem:[%s7263_s5 + $0x30] sm:$0xff]  }
 0x2a2   :  { %5094 = vmatprep.subr.bf16.mxu1 %v6412_v3 }
 0x2a3   :  { %v2479_v33 = vpop.permute.xlu1 %2478  ;;  %v5612_v5 = vld [vmem:[#allocation3 + $0xc] ss:$16 sps:$4 sm:$0xff]  }
 0x2a4   :  { %2481 = vst.msk [vmem:[#allocation3 + $0x2c] sm:$0xf] %vm1060_vm3, %v2479_v33  ;;  %2610 = vmatprep.mubr.bf16.mxu1 %v5612_v5  ;;  %v5625_v33 = vld [vmem:[%s7263_s5 + $0x50] sm:$0xff]  }
 0x2a5   :  { %5095 = vmatpush3.bf16.msra.mxu1 %v6421_v12 }
 0x2a6   :  { %5241 = vmatprep.subr.bf16.mxu1 %v5741_v44 }
 0x2a7   :  { %v2487_v51 = vpop.permute.xlu1 %2486 }
 0x2a8   :  { %2611 = vmatmul.mubr.bf16.vlgmr.msra.gmra.mrb[40].mxu1 %v5610_v37  ;;  %2489 = vst.msk [vmem:[#allocation3 + $0x2c] sm:$0xf] %vm1069_vm4, %v2487_v51  ;;  %v5626_v51 = vld [vmem:[%s7263_s5 + $0x58] sm:$0xff]  }
 0x2a9   :  { %5242 = vmatpush3.bf16.msra.mxu1 %v5615_v42 }
 0x2aa   :  { %5243 = vmatprep.subr.bf16.mxu1 %v5741_v44 }
 0x2ad   :  { %5244 = vmatpush3.bf16.msra.mxu1 %v5616_v56  ;;  %v5627_v56 = vld [vmem:[%s7263_s5 + $0x60] sm:$0xff]  }
 0x2ae   :  { %5245 = vmatprep.subr.bf16.mxu1 %v5741_v44 }
 0x2af   :  { %v4956_v3 = vpop.f32.mrb[0].mxu1  ;;  %v2495_v24 = vld [vmem:[#allocation3 + $0x28] sm:$0xff] }
 0x2b0   :  { %v4957_v12 = vpop.f32.mrb[1].mxu1  ;;  %v4716_v30 = vcombine.high %v2495_v24, %v2495_v24  ;;  %v4715_v17 = vcombine.low %v2495_v24, %v2495_v24  ;;  %v5630_v24 = vld [vmem:[%s7263_s5 + $0x78] sm:$0xff]  }
 0x2b1   :  { %v4958_v25 = vadd.f32 %v4957_v12, %v4956_v3  ;;  %v4959_v29 = vpop.f32.mrb[2].mxu1  ;;  %5246 = vmatpush3.bf16.msra.mxu1 %v5617_v62  ;;  %v5628_v3 = vld [vmem:[%s7263_s5 + $0x68] sm:$0xff]   ;;  %v5629_v12 = vld [vmem:[%s7263_s5 + $0x70] sm:$0xff]  }
 0x2b2   :  { %v4960_v36 = vpop.f32.mrb[3].mxu1  ;;  %5247 = vmatprep.subr.bf16.mxu1 %v5741_v44  ;;  %2618 = vmatprep.mubr.bf16.mxu1 %v4716_v30 }
 0x2b3   :  { %v4961_v9 = vadd.f32 %v4960_v36, %v4959_v29  ;;  %2619 = vmatmul.mubr.bf16.gmra.mrb[44].mxu1 %v4715_v17  ;;  %v1630_v53 = vadd.f32 %v4958_v25, %v6753_v48 }
 0x2b4   :  { %5249 = vmatprep.mubr.msk.bf16.mxu1 %vm5742_vm5, %v5741_v44 }
 0x2b5   :  { %5248 = vmatpush3.bf16.msra.mxu1 %v5618_v31  ;;  %v1633_v59 = vadd.f32 %v4961_v9, %v6753_v48 }
 0x2b6   :  { %5253 = vmatprep.subr.bf16.mxu1 %v5741_v44 }
 0x2ba   :  { %v4962_v40 = vpop.f32.mrb[4].mxu1 }
 0x2bb   :  { %v4963_v41 = vpop.f32.mrb[5].mxu1 }
 0x2bc   :  { %v4964_v43 = vadd.f32 %v4963_v41, %v4962_v40  ;;  %v4965_v32 = vpop.f32.mrb[6].mxu1 }
 0x2bd   :  { %v4966_v45 = vpop.f32.mrb[7].mxu1 }
 0x2be   :  { %v1638_v6 = vadd.f32 %v4964_v43, %v6753_v48 }
 0x2fb   :  { %v4984_v49 = vpop.f32.mrb[8].mxu1 }
 0x2fc   :  { %v4985_v52 = vpop.f32.mrb[9].mxu1 }
 0x2fd   :  { %v4986_v54 = vadd.f32 %v4985_v52, %v4984_v49  ;;  %v4987_v58 = vpop.f32.mrb[10].mxu1 }
 0x2fe   :  { %v4988_v26 = vpop.f32.mrb[11].mxu1 }
 0x2ff   :  { %v1678_v8 = vadd.f32 %v4986_v54, %v1630_v53  ;;  %v4989_v11 = vadd.f32 %v4988_v26, %v4987_v58  ;;  %v5631_v53 = vld [vmem:[%s7263_s5 + $0x80] sm:$0xff]   ;;  %v5632_v58 = vld [vmem:[%s7263_s5 + $0x88] sm:$0xff]   ;;  %v5633_v26 = vld [vmem:[%s7263_s5 + $0x90] sm:$0xff]  }
 0x301   :  { %v1691_v16 = vmax.f32 %v1678_v8, 0.0  ;;  %v1681_v18 = vadd.f32 %v4989_v11, %v1633_v59 }
 0x303   :  { %v4931_v27 = vpack.c.bf16 %v1691_v16, %v1691_v16  ;;  %v1692_v28 = vmax.f32 %v1681_v18, 0.0 }
 0x305   :  { %1708 = vst.msk [vmem:[#allocation4] sm:$0xf] %vm1707_vm6, %v4931_v27  ;;  %v4932_v61 = vpack.c.bf16 %v1692_v28, %v1692_v28  ;;  %v5634_v28 = vld [vmem:[%s7263_s5 + $0x98] sm:$0xff]  }
 0x307   :  { %1709 = vst.msk [vmem:[#allocation4 + $0x4] sm:$0xf] %vm1707_vm6, %v4932_v61 }
 0x30c   :  { %v2645_v23 = vld [vmem:[#allocation4] sm:$0xf] }
 0x30e   :  { %v2654_v2 = vld [vmem:[#allocation4 + $0x4] sm:$0xf] }
 0x30f   :  { %5250 = vmatmul.mubr.msk.bf16.vlgmr.msra.gmra.mrb[48].mxu1 %vm2688_vm7, %v2654_v2  ;;  %v5635_v2 = vld [vmem:[%s7263_s5 + $0xa0] sm:$0xff]  }
 0x310   :  { %5254 = vmatpush3.bf16.msra.mxu1 %v5619_v1  ;;  %5261 = vmatprep.mubr.msk.bf16.mxu1 %vm5742_vm5, %v5741_v44 }
 0x311   :  { %5255 = vmatprep.subr.bf16.mxu1 %v5741_v44 }
 0x312   :  { %v4990_v35 = vpop.f32.mrb[12].mxu1 }
 0x313   :  { %v4991_v38 = vpop.f32.mrb[13].mxu1 }
 0x314   :  { %5256 = vmatpush3.bf16.msra.mxu1 %v5620_v34  ;;  %v4992_v47 = vadd.f32 %v4991_v38, %v4990_v35  ;;  %v4993_v13 = vpop.f32.mrb[14].mxu1 }
 0x315   :  { %5257 = vmatprep.subr.bf16.mxu1 %v5741_v44  ;;  %v4994_v14 = vpop.f32.mrb[15].mxu1 }
 0x316   :  { %v1686_v50 = vadd.f32 %v4992_v47, %v1638_v6  ;;  %v5636_v14 = vld [vmem:[%s7263_s5 + $0xa8] sm:$0xff]  }
 0x318   :  { %5258 = vmatpush3.bf16.msra.mxu1 %v5621_v39  ;;  %v1693_v55 = vmax.f32 %v1686_v50, 0.0 }
 0x319   :  { %5259 = vmatprep.subr.bf16.mxu1 %v5741_v44 }
 0x31a   :  { %v4933_v57 = vpack.c.bf16 %v1693_v55, %v1693_v55 }
 0x31b   :  { %v5012_v4 = vpop.f32.mrb[16].mxu1 }
 0x31c   :  { %5260 = vmatpush3.bf16.msra.mxu1 %v5622_v15  ;;  %v5013_v46 = vpop.f32.mrb[17].mxu1  ;;  %1710 = vst.msk [vmem:[#allocation4 + $0x8] sm:$0xf] %vm1707_vm6, %v4933_v57  ;;  %v5637_v15 = vld [vmem:[%s7263_s5 + $0xb0] sm:$0xff]  }
 0x31d   :  { %v5014_v19 = vadd.f32 %v5013_v46, %v5012_v4  ;;  %v5015_v20 = vpop.f32.mrb[18].mxu1  ;;  %5265 = vmatprep.subr.bf16.mxu1 %v5741_v44 }
 0x31e   :  { %v5016_v21 = vpop.f32.mrb[19].mxu1 }
 0x31f   :  { %v5017_v60 = vadd.f32 %v5016_v21, %v5015_v20  ;;  %5262 = vmatmul.mubr.msk.bf16.vlgmr.msra.gmra.mrb[52].mxu1 %vm2688_vm7, %v2645_v23  ;;  %v2098_v30 = vadd.f32 %v5014_v19, %v6753_v48  ;;  %v5638_v19 = vld [vmem:[%s7263_s5 + $0xb8] sm:$0xff]   ;;  %v5639_v20 = vld [vmem:[%s7263_s5 + $0xc0] sm:$0xff]   ;;  %v5640_v23 = vld [vmem:[%s7263_s5 + $0xc8] sm:$0xff]  }
 0x320   :  { %5266 = vmatpush3.bf16.msra.mxu1 %v5623_v7  ;;  %5273 = vmatprep.mubr.msk.bf16.mxu1 %vm5742_vm5, %v5741_v44 }
 0x321   :  { %5267 = vmatprep.subr.bf16.mxu1 %v5741_v44  ;;  %v2101_v9 = vadd.f32 %v5017_v60, %v6753_v48  ;;  %v5641_v60 = vld [vmem:[%s7263_s5 + $0xd0] sm:$0xff]  }
 0x323   :  { %v5018_v63 = vpop.f32.mrb[20].mxu1  ;;  %v2799_v62 = vld [vmem:[#allocation4 + $0x8] sm:$0xf] }
 0x324   :  { %5268 = vmatpush3.bf16.msra.mxu1 %v5624_v10  ;;  %v5019_v22 = vpop.f32.mrb[21].mxu1  ;;  %v5642_v10 = vld [vmem:[%s7263_s5 + $0xd8] sm:$0xff]  }
 0x325   :  { %v5020_v37 = vadd.f32 %v5019_v22, %v5018_v63  ;;  %v5021_v5 = vpop.f32.mrb[22].mxu1  ;;  %5269 = vmatprep.subr.bf16.mxu1 %v5741_v44 }
 0x326   :  { %v5022_v42 = vpop.f32.mrb[23].mxu1 }
 0x327   :  { %v2106_v11 = vadd.f32 %v5020_v37, %v6753_v48 }
 0x328   :  { %5270 = vmatpush3.bf16.msra.mxu1 %v5625_v33 }
 0x329   :  { %5271 = vmatprep.subr.bf16.mxu1 %v5741_v44 }
 0x32c   :  { %5272 = vmatpush3.bf16.msra.mxu1 %v5626_v51 }
 0x32d   :  { %5277 = vmatprep.subr.bf16.mxu1 %v5741_v44 }
 0x32f   :  { %5274 = vmatmul.mubr.msk.bf16.vlgmr.msra.gmra.mrb[56].mxu1 %vm2688_vm7, %v2799_v62 }
 0x330   :  { %5278 = vmatpush3.bf16.msra.mxu1 %v5627_v56  ;;  %5285 = vmatprep.mubr.msk.bf16.mxu1 %vm5742_vm5, %v5741_v44 }
 0x331   :  { %5279 = vmatprep.subr.bf16.mxu1 %v5741_v44 }
 0x334   :  { %5280 = vmatpush3.bf16.msra.mxu1 %v5628_v3 }
 0x335   :  { %5281 = vmatprep.subr.bf16.mxu1 %v5741_v44 }
 0x338   :  { %5282 = vmatpush3.bf16.msra.mxu1 %v5629_v12 }
 0x339   :  { %5283 = vmatprep.subr.bf16.mxu1 %v5741_v44 }
 0x33b   :  { %v5040_v25 = vpop.f32.mrb[24].mxu1 }
 0x33c   :  { %v5041_v29 = vpop.f32.mrb[25].mxu1  ;;  %5284 = vmatpush3.bf16.msra.mxu1 %v5630_v24 }
 0x33d   :  { %v5042_v17 = vadd.f32 %v5041_v29, %v5040_v25  ;;  %v5043_v31 = vpop.f32.mrb[26].mxu1  ;;  %5289 = vmatprep.subr.bf16.mxu1 %v5741_v44 }
 0x33e   :  { %v5044_v36 = vpop.f32.mrb[27].mxu1 }
 0x33f   :  { %v2146_v40 = vadd.f32 %v5042_v17, %v2098_v30  ;;  %v5045_v41 = vadd.f32 %v5044_v36, %v5043_v31 }
 0x341   :  { %v2159_v43 = vmax.f32 %v2146_v40, 0.0  ;;  %v2149_v32 = vadd.f32 %v5045_v41, %v2101_v9  ;;  %v5643_v41 = vld [vmem:[%s7263_s5 + $0xe0] sm:$0xff]  }
 0x343   :  { %v4934_v45 = vpack.c.bf16 %v2159_v43, %v2159_v43  ;;  %v2160_v49 = vmax.f32 %v2149_v32, 0.0 }
 0x345   :  { %2175 = vst.msk [vmem:[#allocation4 + $0xc] sm:$0xf] %vm1707_vm6, %v4934_v45  ;;  %v4935_v52 = vpack.c.bf16 %v2160_v49, %v2160_v49  ;;  %v5644_v49 = vld [vmem:[%s7263_s5 + $0xe8] sm:$0xff]  }
 0x347   :  { %2176 = vst.msk [vmem:[#allocation4 + $0x10] sm:$0xf] %vm1707_vm6, %v4935_v52  ;;  %v5645_v52 = vld [vmem:[%s7263_s5 + $0xf0] sm:$0xff]  }
 0x34c   :  { %v2877_v54 = vld [vmem:[#allocation4 + $0xc] sm:$0xf] }
 0x34d   :  { %5286 = vmatmul.mubr.msk.bf16.vlgmr.msra.gmra.mrb[60].mxu1 %vm2688_vm7, %v2877_v54  ;;  %v5647_v54 = vld [vmem:[%s7263_s5 + $0x100] sm:$0xff]  }
 0x34e   :  { %5290 = vmatpush3.bf16.msra.mxu1 %v5631_v53  ;;  %5297 = vmatprep.mubr.msk.bf16.mxu1 %vm5742_vm5, %v5741_v44  ;;  %v2955_v39 = vld [vmem:[#allocation4 + $0x10] sm:$0xf]  ;;  %v5646_v53 = vld [vmem:[%s7263_s5 + $0xf8] sm:$0xff]  }
 0x34f   :  { %5291 = vmatprep.subr.bf16.mxu1 %v5741_v44 }
 0x352   :  { %5292 = vmatpush3.bf16.msra.mxu1 %v5632_v58  ;;  %v5046_v59 = vpop.f32.mrb[28].mxu1 }
 0x353   :  { %5293 = vmatprep.subr.bf16.mxu1 %v5741_v44  ;;  %v5047_v8 = vpop.f32.mrb[29].mxu1 }
 0x354   :  { %v5048_v16 = vadd.f32 %v5047_v8, %v5046_v59  ;;  %v5049_v18 = vpop.f32.mrb[30].mxu1  ;;  %v5649_v59 = vld [vmem:[%s7263_s5 + $0x110] sm:$0xff]   ;;  %v5650_v8 = vld [vmem:[%s7263_s5 + $0x118] sm:$0xff]  }
 0x355   :  { %v5050_v27 = vpop.f32.mrb[31].mxu1  ;;  %v3356_v18 = vld [vmem:[%s7265_s7 + $0x20] sm:$0xff] }
 0x356   :  { %5294 = vmatpush3.bf16.msra.mxu1 %v5633_v26  ;;  %v2154_v61 = vadd.f32 %v5048_v16, %v2106_v11  ;;  %v5648_v26 = vld [vmem:[%s7263_s5 + $0x108] sm:$0xff]   ;;  %v3355_v16 = vld [vmem:[%s7265_s7] sm:$0xff] }
 0x357   :  { %5295 = vmatprep.subr.bf16.mxu1 %v5741_v44  ;;  %v4830_v27 = vcombine.low %v3355_v16, %v3356_v18 }
 0x358   :  { %v2161_v1 = vmax.f32 %v2154_v61, 0.0 }
 0x35a   :  { %5296 = vmatpush3.bf16.msra.mxu1 %v5634_v28  ;;  %v4936_v34 = vpack.c.bf16 %v2161_v1, %v2161_v1  ;;  %v4831_v28 = vcombine.high %v3355_v16, %v3356_v18 }
 0x35b   :  { %v5068_v35 = vpop.f32.mrb[32].mxu1  ;;  %5301 = vmatprep.subr.bf16.mxu1 %v5741_v44 }
 0x35c   :  { %v5069_v38 = vpop.f32.mrb[33].mxu1  ;;  %2177 = vst.msk [vmem:[#allocation4 + $0x14] sm:$0xf] %vm1707_vm6, %v4936_v34  ;;  %3418 = vmatprep.subr.bf16.mxu0 %v4831_v28 }
 0x35d   :  { %v5070_v6 = vadd.f32 %v5069_v38, %v5068_v35  ;;  %5298 = vmatmul.mubr.msk.bf16.vlgmr.msra.gmra.mrb[64].mxu1 %vm2688_vm7, %v2955_v39  ;;  %v5071_v47 = vpop.f32.mrb[34].mxu1  ;;  %3419 = vmatpush1.bf16.msra.mxu0 %v4830_v27  ;;  %v3495_v39 = vld [vmem:[%s7265_s7 + $0x8] sm:$0xff] }
 0x35e   :  { %5302 = vmatpush3.bf16.msra.mxu1 %v5635_v2  ;;  %v5072_v13 = vpop.f32.mrb[35].mxu1  ;;  %5309 = vmatprep.mubr.msk.bf16.mxu1 %vm5742_vm5, %v5741_v44 }
 0x35f   :  { %v5073_v50 = vadd.f32 %v5072_v13, %v5071_v47  ;;  %5303 = vmatprep.subr.bf16.mxu1 %v5741_v44  ;;  %v2565_v33 = vadd.f32 %v5070_v6, %v6753_v48  ;;  %v3496_v6 = vld [vmem:[%s7265_s7 + $0x28] sm:$0xff]  ;;  %v3357_v47 = vld [vmem:[%s7265_s7 + $0x40] sm:$0xff] }
 0x361   :  { %v2568_v51 = vadd.f32 %v5073_v50, %v6753_v48  ;;  %v4840_v50 = vcombine.high %v3495_v39, %v3496_v6 }
 0x362   :  { %5304 = vmatpush3.bf16.msra.mxu1 %v5636_v14  ;;  %v4839_v14 = vcombine.low %v3495_v39, %v3496_v6  ;;  %v4829_v39 = vld [vmem:[%s7267_s6] ss:$0 sm:$0xff] }
 0x363   :  { %v5074_v55 = vpop.f32.mrb[36].mxu1  ;;  %5305 = vmatprep.subr.bf16.mxu1 %v5741_v44  ;;  %v3033_v21 = vld [vmem:[#allocation4 + $0x14] sm:$0xf] }
 0x364   :  { %v5075_v57 = vpop.f32.mrb[37].mxu1 }
 0x365   :  { %v5076_v4 = vadd.f32 %v5075_v57, %v5074_v55  ;;  %v5077_v46 = vpop.f32.mrb[38].mxu1  ;;  %v3497_v55 = vld [vmem:[%s7265_s7 + $0x48] sm:$0xff] }
 0x366   :  { %5306 = vmatpush3.bf16.msra.mxu1 %v5637_v15  ;;  %v5078_v7 = vpop.f32.mrb[39].mxu1  ;;  %v3358_v15 = vld [vmem:[%s7265_s7 + $0x60] sm:$0xff]  ;;  %v3498_v57 = vld [vmem:[%s7265_s7 + $0x68] sm:$0xff] }
 0x367   :  { %5307 = vmatprep.subr.bf16.mxu1 %v5741_v44  ;;  %v2573_v31 = vadd.f32 %v5076_v4, %v6753_v48  ;;  %v4832_v46 = vcombine.low %v3357_v47, %v3358_v15  ;;  %v4833_v7 = vcombine.high %v3357_v47, %v3358_v15 }
 0x369   :  { %3420 = vmatprep.subr.bf16.mxu0 %v4833_v7  ;;  %v5657_v7 = vld [vmem:[%s7266_s9 + $0x48] sm:$0xff]  }
 0x36a   :  { %5308 = vmatpush3.bf16.msra.mxu1 %v5638_v19  ;;  %v4842_v19 = vcombine.high %v3497_v55, %v3498_v57  ;;  %3421 = vmatpush1.bf16.msra.mxu0 %v4832_v46  ;;  %v5655_v46 = vld [vmem:[%s7266_s9 + $0xc8] sm:$0xff]  }
 0x36b   :  { %5313 = vmatprep.subr.bf16.mxu1 %v5741_v44 }
 0x36d   :  { %5310 = vmatmul.mubr.msk.bf16.vlgmr.msra.gmra.mrb[68].mxu1 %vm2688_vm7, %v3033_v21 }
 0x36e   :  { %5314 = vmatpush3.bf16.msra.mxu1 %v5639_v20  ;;  %5321 = vmatprep.mubr.msk.bf16.mxu1 %vm5742_vm5, %v5741_v44  ;;  %v4841_v20 = vcombine.low %v3497_v55, %v3498_v57  ;;  %v5652_v55 = vld [vmem:[%s7266_s9 + $0x80] sm:$0xff]  }
 0x36f   :  { %5315 = vmatprep.subr.bf16.mxu1 %v5741_v44  ;;  %v5654_v57 = vld [vmem:[%s7266_s9] sm:$0xff]  }
 0x372   :  { %5316 = vmatpush3.bf16.msra.mxu1 %v5640_v23  ;;  %v3359_v23 = vld [vmem:[%s7265_s7 + $0x80] sm:$0xff] }
 0x373   :  { %5317 = vmatprep.subr.bf16.mxu1 %v5741_v44 }
 0x376   :  { %5318 = vmatpush3.bf16.msra.mxu1 %v5641_v60  ;;  %v3360_v60 = vld [vmem:[%s7265_s7 + $0xa0] sm:$0xff] }
 0x377   :  { %5319 = vmatprep.subr.bf16.mxu1 %v5741_v44 }
 0x37a   :  { %5320 = vmatpush3.bf16.msra.mxu1 %v5642_v10  ;;  %v3499_v10 = vld [vmem:[%s7265_s7 + $0x88] sm:$0xff] }
 0x37b   :  { %v5096_v63 = vpop.f32.mrb[40].mxu1  ;;  %5325 = vmatprep.subr.bf16.mxu1 %v5741_v44 }
 0x37c   :  { %v5097_v22 = vpop.f32.mrb[41].mxu1 }
 0x37d   :  { %v5098_v37 = vadd.f32 %v5097_v22, %v5096_v63  ;;  %v5099_v5 = vpop.f32.mrb[42].mxu1 }
 0x37e   :  { %v5100_v42 = vpop.f32.mrb[43].mxu1 }
 0x37f   :  { %v2613_v56 = vadd.f32 %v5098_v37, %v2565_v33  ;;  %v5101_v62 = vadd.f32 %v5100_v42, %v5099_v5  ;;  %v4835_v33 = vcombine.high %v3359_v23, %v3360_v60  ;;  %v3500_v37 = vld [vmem:[%s7265_s7 + $0xa8] sm:$0xff]  ;;  %v4834_v42 = vcombine.low %v3359_v23, %v3360_v60  ;;  %v5661_v23 = vld [vmem:[%s7266_s9 + $0x50] sm:$0xff]  }
 0x380   :  { %v5660_v60 = vld [vmem:[%s7266_s9 + $0x90] sm:$0xff]  }
 0x381   :  { %v2626_v3 = vmax.f32 %v2613_v56, 0.0  ;;  %v2616_v12 = vadd.f32 %v5101_v62, %v2568_v51  ;;  %v4843_v51 = vcombine.low %v3499_v10, %v3500_v37  ;;  %v4844_v56 = vcombine.high %v3499_v10, %v3500_v37  ;;  %3422 = vmatprep.subr.bf16.mxu0 %v4835_v33  ;;  %v5662_v10 = vld [vmem:[%s7266_s9 + $0x10] sm:$0xff]   ;;  %v5664_v33 = vld [vmem:[%s7266_s9 + $0x98] sm:$0xff]  }
 0x382   :  { %3423 = vmatpush1.bf16.msra.mxu0 %v4834_v42  ;;  %v5666_v37 = vld [vmem:[%s7266_s9 + $0x18] sm:$0xff]   ;;  %v5669_v42 = vld [vmem:[%s7266_s9 + $0x60] sm:$0xff]  }
 0x383   :  { %v4937_v24 = vpack.c.bf16 %v2626_v3, %v2626_v3  ;;  %v2627_v25 = vmax.f32 %v2616_v12, 0.0  ;;  %v3361_v3 = vld [vmem:[%s7265_s7 + $0xc0] sm:$0xff] }
 0x384   :  { %v3362_v12 = vld [vmem:[%s7265_s7 + $0xe0] sm:$0xff] }
 0x385   :  { %2642 = vst.msk [vmem:[#allocation4 + $0x18] sm:$0xf] %vm1707_vm6, %v4937_v24  ;;  %v4938_v29 = vpack.c.bf16 %v2627_v25, %v2627_v25  ;;  %v3501_v24 = vld [vmem:[%s7265_s7 + $0xc8] sm:$0xff]  ;;  %v4836_v25 = vcombine.low %v3361_v3, %v3362_v12 }
 0x386   :  { %v5102_v30 = vpop.f32.mrb[44].mxu1 }
 0x387   :  { %2643 = vst.msk [vmem:[#allocation4 + $0x1c] sm:$0xf] %vm1707_vm6, %v4938_v29  ;;  %v5103_v17 = vpop.f32.mrb[45].mxu1  ;;  %v4837_v29 = vcombine.high %v3361_v3, %v3362_v12  ;;  %v5673_v3 = vld [vmem:[%s7266_s9 + $0x68] sm:$0xff]  }
 0x388   :  { %v5104_v36 = vadd.f32 %v5103_v17, %v5102_v30  ;;  %v5105_v9 = vpop.f32.mrb[46].mxu1  ;;  %v3502_v30 = vld [vmem:[%s7265_s7 + $0xe8] sm:$0xff] }
 0x389   :  { %v5106_v40 = vpop.f32.mrb[47].mxu1  ;;  %v4845_v17 = vcombine.low %v3501_v24, %v3502_v30  ;;  %3424 = vmatprep.subr.bf16.mxu0 %v4837_v29  ;;  %v5653_v9 = vld [vmem:[%s7266_s9 + $0x40] sm:$0xff]   ;;  %v5672_v12 = vld [vmem:[%s7266_s9 + $0xa8] sm:$0xff]   ;;  %v5676_v29 = vld [vmem:[%s7266_s9 + $0xb0] sm:$0xff]  }
 0x38a   :  { %v2621_v43 = vadd.f32 %v5104_v36, %v2573_v31  ;;  %v4846_v31 = vcombine.high %v3501_v24, %v3502_v30  ;;  %3425 = vmatpush1.bf16.msra.mxu0 %v4836_v25  ;;  %v5651_v36 = vld [vmem:[%s7266_s9 + $0xc0] sm:$0xff]   ;;  %v5674_v24 = vld [vmem:[%s7266_s9 + $0x28] sm:$0xff]   ;;  %v5675_v25 = vld [vmem:[%s7266_s9 + $0xf0] sm:$0xff]  }
 0x38b   :  { %5153 = vmatprep.subr.bf16.mxu0 %v5651_v36  ;;  %v5677_v30 = vld [vmem:[%s7266_s9 + $0x70] sm:$0xff]   ;;  %v5680_v36 = vld [vmem:[%s7266_s9 + $0xb8] sm:$0xff]  }
 0x38c   :  { %v3111_v32 = vld [vmem:[#allocation4 + $0x18] sm:$0xf]  ;;  %v2628_v45 = vmax.f32 %v2621_v43, 0.0 }
 0x38d   :  { %5322 = vmatmul.mubr.msk.bf16.vlgmr.msra.gmra.mrb[72].mxu1 %vm2688_vm7, %v3111_v32 }
 0x38e   :  { %5326 = vmatpush3.bf16.msra.mxu1 %v5643_v41  ;;  %5333 = vmatprep.mubr.msk.bf16.mxu1 %vm5742_vm5, %v5741_v44  ;;  %v4939_v48 = vpack.c.bf16 %v2628_v45, %v2628_v45  ;;  %v3189_v58 = vld [vmem:[#allocation4 + $0x1c] sm:$0xf] }
 0x38f   :  { %5327 = vmatprep.subr.bf16.mxu1 %v5741_v44 }
 0x390   :  { %2644 = vst.msk [vmem:[#allocation4 + $0x20] sm:$0xf] %vm1707_vm6, %v4939_v48 }
 0x392   :  { %5328 = vmatpush3.bf16.msra.mxu1 %v5644_v49 }
 0x393   :  { %5329 = vmatprep.subr.bf16.mxu1 %v5741_v44 }
 0x396   :  { %5330 = vmatpush3.bf16.msra.mxu1 %v5645_v52 }
 0x397   :  { %5331 = vmatprep.subr.bf16.mxu1 %v5741_v44  ;;  %v3267_v11 = vld [vmem:[#allocation4 + $0x20] sm:$0xf] }
 0x39a   :  { %5332 = vmatpush3.bf16.msra.mxu1 %v5646_v53 }
 0x39b   :  { %5337 = vmatprep.subr.bf16.mxu1 %v5741_v44 }
 0x39d   :  { %5334 = vmatmul.mubr.msk.bf16.vlgmr.msra.gmra.mrb[76].mxu1 %vm2688_vm7, %v3189_v58 }
 0x39e   :  { %5338 = vmatpush3.bf16.msra.mxu1 %v5647_v54  ;;  %5345 = vmatprep.mubr.msk.bf16.mxu1 %vm5742_vm5, %v5741_v44 }
 0x39f   :  { %5339 = vmatprep.subr.bf16.mxu1 %v5741_v44 }
 0x3a2   :  { %5340 = vmatpush3.bf16.msra.mxu1 %v5648_v26 }
 0x3a3   :  { %5341 = vmatprep.subr.bf16.mxu1 %v5741_v44 }
 0x3a6   :  { %5342 = vmatpush3.bf16.msra.mxu1 %v5649_v59 }
 0x3a7   :  { %5343 = vmatprep.subr.bf16.mxu1 %v5741_v44 }
 0x3aa   :  { %5344 = vmatpush3.bf16.msra.mxu1 %v5650_v8 }
 0x3ab   :  { %3555 = vmatprep.subr.bf16.mxu1 %v4840_v50 }
 0x3ad   :  { %5346 = vmatmul.mubr.msk.bf16.vlgmr.msra.gmra.mrb[80].mxu1 %vm2688_vm7, %v3267_v11 }
 0x3ae   :  { %3587 = vmatprep.mubr.bf16.mxu1 %v5737_v0  ;;  %3556 = vmatpush1.bf16.msra.mxu1 %v4839_v14 }
 0x3af   :  { %3557 = vmatprep.subr.bf16.mxu1 %v4842_v19  ;;  %v5656_v19 = vld [vmem:[%s7266_s9 + $0x88] sm:$0xff]  }
 0x3b2   :  { %3558 = vmatpush1.bf16.msra.mxu1 %v4841_v20  ;;  %v5658_v20 = vld [vmem:[%s7266_s9 + $0x8] sm:$0xff]  }
 0x3b3   :  { %3559 = vmatprep.subr.bf16.mxu1 %v4844_v56  ;;  %v5670_v56 = vld [vmem:[%s7266_s9 + $0x20] sm:$0xff]  }
 0x3b6   :  { %3560 = vmatpush1.bf16.msra.mxu1 %v4843_v51  ;;  %v5668_v51 = vld [vmem:[%s7266_s9 + $0xa0] sm:$0xff]  }
 0x3b7   :  { %3561 = vmatprep.subr.bf16.mxu1 %v4846_v31  ;;  %v5679_v31 = vld [vmem:[%s7266_s9 + $0xf8] sm:$0xff]  }
 0x3ba   :  { %3562 = vmatpush1.bf16.msra.mxu1 %v4845_v17  ;;  %v5678_v17 = vld [vmem:[%s7266_s9 + $0x30] sm:$0xff]  }
 0x3bb   :  { %5175 = vmatprep.subr.bf16.mxu1 %v5653_v9  ;;  %v5681_v9 = vld [vmem:[%s7266_s9 + $0x78] sm:$0xff]  }
 0x3e2   :  { %v2726_v61 = vpop.f32.mrb[48].mxu1 }
 0x3e3   :  { %v5251_v44 = vpop.f32.mrb[49].mxu1 }
 0x3e4   :  { %v2729_v1 = vpop.f32.mrb[50].mxu1 }
 0x3e5   :  { %v5252_v2 = vpop.f32.mrb[51].mxu1 }
 0x3f2   :  { %v2793_v34 = vpop.f32.mrb[52].mxu1 }
 0x3f3   :  { %v2794_v35 = vadd.f32 %v2793_v34, %v2726_v61  ;;  %v5263_v38 = vpop.f32.mrb[53].mxu1 }
 0x3f4   :  { %v2796_v13 = vpop.f32.mrb[54].mxu1 }
 0x3f5   :  { %v5264_v4 = vpop.f32.mrb[55].mxu1 }
 0x402   :  { %v2870_v21 = vpop.f32.mrb[56].mxu1 }
 0x403   :  { %v2876_v63 = vadd.f32 %v2870_v21, %v2794_v35  ;;  %v5275_v22 = vpop.f32.mrb[57].mxu1  ;;  %v5659_v21 = vld [vmem:[%s7266_s9 + $0xd0] sm:$0xff]  }
 0x404   :  { %v2873_v5 = vpop.f32.mrb[58].mxu1  ;;  %v5665_v22 = vld [vmem:[%s7266_s9 + $0x58] sm:$0xff]  }
 0x405   :  { %v5276_v62 = vpop.f32.mrb[59].mxu1  ;;  %v5667_v5 = vld [vmem:[%s7266_s9 + $0xe0] sm:$0xff]  }
 0x406   :  { %v5671_v62 = vld [vmem:[%s7266_s9 + $0xe8] sm:$0xff]  }
 0x420   :  { %v2948_v40 = vpop.f32.mrb[60].mxu1 }
 0x421   :  { %v2954_v41 = vadd.f32 %v2948_v40, %v2876_v63  ;;  %v5287_v43 = vpop.f32.mrb[61].mxu1  ;;  %v5663_v63 = vld [vmem:[%s7266_s9 + $0xd8] sm:$0xff]  }
 0x422   :  { %v2951_v32 = vpop.f32.mrb[62].mxu1  ;;  %v5682_v40 = vld [vmem:[%s7266_s9 + $0x38] sm:$0xff]   ;;  %v3905_v43 = vld [vmem:[%s7265_s7 + $0x30] sm:$0xff] }
 0x423   :  { %v5288_v45 = vpop.f32.mrb[63].mxu1 }
 0x430   :  { %v3026_v49 = vpop.f32.mrb[64].mxu1 }
 0x431   :  { %v3032_v48 = vadd.f32 %v3026_v49, %v2954_v41  ;;  %v5299_v52 = vpop.f32.mrb[65].mxu1  ;;  %v3904_v41 = vld [vmem:[%s7265_s7 + $0x10] sm:$0xff]  ;;  %v5683_v49 = vld [vmem:[%s7266_s9 + $0x140] sm:$0xff]  }
 0x432   :  { %v3029_v53 = vpop.f32.mrb[66].mxu1  ;;  %v4880_v32 = vcombine.low %v3904_v41, %v3905_v43  ;;  %v4881_v45 = vcombine.high %v3904_v41, %v3905_v43  ;;  %v4185_v41 = vld [vmem:[%s7265_s7 + $0xf8] sm:$0xff] }
 0x433   :  { %v5300_v54 = vpop.f32.mrb[67].mxu1 }
 0x434   :  { %v3363_v54 = vld [vmem:[%s7268_s8] sm:$0x3] }
 0x440   :  { %v3104_v58 = vpop.f32.mrb[68].mxu1 }
 0x441   :  { %v3110_v26 = vadd.f32 %v3104_v58, %v3032_v48  ;;  %v5311_v59 = vpop.f32.mrb[69].mxu1  ;;  %v3365_v48 = vlaneseq  ;;  %v3503_v58 = vld [vmem:[%s7268_s8 + $0x2] sm:$0x3] }
 0x442   :  { %v3107_v8 = vpop.f32.mrb[70].mxu1 }
 0x443   :  { %v5312_v11 = vpop.f32.mrb[71].mxu1  ;;  %v3366_v52 = vshrl.u32 %v3365_v48, 7  ;;  %v5689_v48 = vld [vmem:[%s7266_s9 + $0x158] sm:$0xff]  }
 0x445   :  { %v7088_v53 = vsub.s32 0, %v3366_v52 }
 0x447   :  { %v3368_v59 = vrot.slane %v3363_v54, %v7088_v53  ;;  %v3508_v8 = vrot.slane %v3503_v58, %v7088_v53 }
 0x460   :  { %v3182_v16 = vpop.f32.mrb[72].mxu1 }
 0x461   :  { %v3188_v18 = vadd.f32 %v3182_v16, %v3110_v26  ;;  %v5323_v27 = vpop.f32.mrb[73].mxu1  ;;  %v7096_v26 = vsub.s32 1, %v3366_v52  ;;  %v5690_v52 = vld [vmem:[%s7266_s9 + $0x118] sm:$0xff]  }
 0x462   :  { %v3185_v28 = vpop.f32.mrb[74].mxu1 }
 0x463   :  { %v5324_v61 = vpop.f32.mrb[75].mxu1  ;;  %v3372_v11 = vrot.slane %v3363_v54, %v7096_v26  ;;  %v3512_v16 = vrot.slane %v3503_v58, %v7096_v26  ;;  %v5694_v54 = vld [vmem:[%s7266_s9 + $0x180] sm:$0xff]  }
 0x464   :  { %v5691_v58 = vld [vmem:[%s7266_s9 + $0x160] sm:$0xff]  }
 0x470   :  { %v3260_v44 = vpop.f32.mrb[76].mxu1 }
 0x471   :  { %v3266_v1 = vadd.f32 %v3260_v44, %v3188_v18  ;;  %v5335_v2 = vpop.f32.mrb[77].mxu1 }
 0x472   :  { %v3263_v34 = vpop.f32.mrb[78].mxu1 }
 0x473   :  { %v5336_v35 = vpop.f32.mrb[79].mxu1 }
 0x480   :  { %v3338_v38 = vpop.f32.mrb[80].mxu1 }
 0x481   :  { %v3344_v6 = vadd.f32 %v3338_v38, %v3266_v1  ;;  %v5347_v47 = vpop.f32.mrb[81].mxu1 }
 0x482   :  { %v3341_v13 = vpop.f32.mrb[82].mxu1 }
 0x483   :  { %v3352_v14 = vadd.f32 %v4829_v39, %v3344_v6  ;;  %v5348_v50 = vpop.f32.mrb[83].mxu1 }
 0x485   :  { %v3353_v15 = vmax.f32 %v3352_v14, 0.0 }
 0x487   :  { %v6989_v4 = vpack.c.bf16 %v3353_v15, %v3353_v15  ;;  %v3906_v15 = vld [vmem:[%s7265_s7 + $0x50] sm:$0xff] }
 0x489   :  { %4838 = vmatmul.mubr.msk.bf16.vlgmr.msra.gmra.mrb[128].mxu0 %vm2688_vm7, %v6989_v4  ;;  %4847 = vmatmul.mubr.msk.bf16.vlgmr.msra.gmra.mrb[84].mxu1 %vm2688_vm7, %v6989_v4 }
 0x48a   :  { %5154 = vmatpush3.bf16.msra.mxu0 %v5652_v55  ;;  %5176 = vmatpush3.bf16.msra.mxu1 %v5654_v57  ;;  %v3907_v55 = vld [vmem:[%s7265_s7 + $0x70] sm:$0xff] }
 0x48b   :  { %5155 = vmatprep.subr.bf16.mxu0 %v5655_v46  ;;  %5177 = vmatprep.subr.bf16.mxu1 %v5657_v7 }
 0x48e   :  { %5156 = vmatpush3.bf16.msra.mxu0 %v5656_v19  ;;  %5178 = vmatpush3.bf16.msra.mxu1 %v5658_v20  ;;  %v4883_v20 = vcombine.high %v3906_v15, %v3907_v55 }
 0x48f   :  { %5157 = vmatprep.subr.bf16.mxu0 %v5659_v21  ;;  %5179 = vmatprep.subr.bf16.mxu1 %v5661_v23  ;;  %v5684_v21 = vld [vmem:[%s7266_s9 + $0x100] sm:$0xff]   ;;  %v3908_v23 = vld [vmem:[%s7265_s7 + $0x90] sm:$0xff] }
 0x492   :  { %5158 = vmatpush3.bf16.msra.mxu0 %v5660_v60  ;;  %5180 = vmatpush3.bf16.msra.mxu1 %v5662_v10  ;;  %v3909_v60 = vld [vmem:[%s7265_s7 + $0xb0] sm:$0xff]  ;;  %v5685_v10 = vld [vmem:[%s7266_s9 + $0x148] sm:$0xff]  }
 0x493   :  { %5159 = vmatprep.subr.bf16.mxu0 %v5663_v63  ;;  %5181 = vmatprep.subr.bf16.mxu1 %v5665_v22  ;;  %v4882_v63 = vcombine.low %v3906_v15, %v3907_v55  ;;  %v4885_v22 = vcombine.high %v3908_v23, %v3909_v60  ;;  %v5714_v15 = vld [vmem:[%s7266_s9 + $0x1b8] sm:$0xff]  }
 0x496   :  { %5160 = vmatpush3.bf16.msra.mxu0 %v5664_v33  ;;  %5182 = vmatpush3.bf16.msra.mxu1 %v5666_v37  ;;  %v5686_v33 = vld [vmem:[%s7266_s9 + $0x108] sm:$0xff]   ;;  %v3910_v37 = vld [vmem:[%s7265_s7 + $0xd0] sm:$0xff] }
 0x497   :  { %5161 = vmatprep.subr.bf16.mxu0 %v5667_v5  ;;  %5183 = vmatprep.subr.bf16.mxu1 %v5669_v42  ;;  %v3911_v5 = vld [vmem:[%s7265_s7 + $0xf0] sm:$0xff]  ;;  %v4884_v42 = vcombine.low %v3908_v23, %v3909_v60 }
 0x49a   :  { %5162 = vmatpush3.bf16.msra.mxu0 %v5668_v51  ;;  %5184 = vmatpush3.bf16.msra.mxu1 %v5670_v56  ;;  %v4887_v51 = vcombine.high %v3910_v37, %v3911_v5  ;;  %v4178_v56 = vld [vmem:[%s7265_s7 + $0x18] sm:$0xff] }
 0x49b   :  { %5163 = vmatprep.subr.bf16.mxu0 %v5671_v62  ;;  %5185 = vmatprep.subr.bf16.mxu1 %v5673_v3  ;;  %v4179_v62 = vld [vmem:[%s7265_s7 + $0x38] sm:$0xff]  ;;  %v4886_v3 = vcombine.low %v3910_v37, %v3911_v5 }
 0x49e   :  { %5164 = vmatpush3.bf16.msra.mxu0 %v5672_v12  ;;  %5186 = vmatpush3.bf16.msra.mxu1 %v5674_v24  ;;  %v4906_v12 = vcombine.high %v4178_v56, %v4179_v62  ;;  %v4180_v24 = vld [vmem:[%s7265_s7 + $0x58] sm:$0xff] }
 0x49f   :  { %5165 = vmatprep.subr.bf16.mxu0 %v5675_v25  ;;  %5187 = vmatprep.subr.bf16.mxu1 %v5677_v30  ;;  %v4181_v25 = vld [vmem:[%s7265_s7 + $0x78] sm:$0xff] }
 0x4a0   :  { %v4908_v30 = vcombine.high %v4180_v24, %v4181_v25 }
 0x4a2   :  { %5166 = vmatpush3.bf16.msra.mxu0 %v5676_v29  ;;  %5188 = vmatpush3.bf16.msra.mxu1 %v5678_v17  ;;  %v4905_v29 = vcombine.low %v4178_v56, %v4179_v62  ;;  %v4182_v17 = vld [vmem:[%s7265_s7 + $0x98] sm:$0xff] }
 0x4a3   :  { %5167 = vmatprep.subr.bf16.mxu0 %v5679_v31  ;;  %5189 = vmatprep.subr.bf16.mxu1 %v5681_v9  ;;  %v4183_v31 = vld [vmem:[%s7265_s7 + $0xb8] sm:$0xff] }
 0x4a4   :  { %v4910_v9 = vcombine.high %v4182_v17, %v4183_v31  ;;  %v4909_v43 = vcombine.low %v4182_v17, %v4183_v31 }
 0x4a6   :  { %5168 = vmatpush3.bf16.msra.mxu0 %v5680_v36  ;;  %5190 = vmatpush3.bf16.msra.mxu1 %v5682_v40  ;;  %v4907_v36 = vcombine.low %v4180_v24, %v4181_v25  ;;  %v4184_v40 = vld [vmem:[%s7265_s7 + $0xd8] sm:$0xff] }
 0x4a7   :  { %3964 = vmatprep.subr.bf16.mxu0 %v4881_v45  ;;  %5197 = vmatprep.subr.bf16.mxu1 %v5683_v49  ;;  %v4911_v45 = vcombine.low %v4184_v40, %v4185_v41  ;;  %v5688_v49 = vld [vmem:[%s7266_s9 + $0x110] sm:$0xff]  }
 0x55c   :  { %v3452_v18 = vpop.f32.mrb[128].mxu0  ;;  %v3589_v27 = vpop.f32.mrb[84].mxu1 }
 0x55d   :  { %v3453_v28 = vadd.f32 %v3452_v18, %v3368_v59  ;;  %v3590_v61 = vadd.f32 %v3589_v27, %v3508_v8  ;;  %v3454_v44 = vpop.f32.mrb[129].mxu0  ;;  %v3591_v1 = vpop.f32.mrb[85].mxu1  ;;  %v5696_v59 = vld [vmem:[%s7266_s9 + $0x1c8] sm:$0xff]   ;;  %v5699_v27 = vld [vmem:[%s7266_s9 + $0x170] sm:$0xff]  }
 0x55e   :  { %v3455_v2 = vadd.f32 %v3454_v44, %v3372_v11  ;;  %v3592_v34 = vadd.f32 %v3591_v1, %v3512_v16  ;;  %v3456_v35 = vpop.f32.mrb[130].mxu0  ;;  %v3593_v38 = vpop.f32.mrb[86].mxu1  ;;  %v5698_v8 = vld [vmem:[%s7266_s9 + $0x188] sm:$0xff]   ;;  %v5693_v11 = vld [vmem:[%s7266_s9 + $0x120] sm:$0xff]   ;;  %v5702_v44 = vld [vmem:[%s7266_s9 + $0x190] sm:$0xff]  }
 0x55f   :  { %v3459_v39 = vmax.f32 %v3453_v28, 0.0  ;;  %v3596_v6 = vmax.f32 %v3590_v61, 0.0  ;;  %v3457_v47 = vpop.f32.mrb[131].mxu0  ;;  %v3594_v13 = vpop.f32.mrb[87].mxu1  ;;  %v5695_v16 = vld [vmem:[%s7266_s9 + $0x168] sm:$0xff]   ;;  %v5700_v28 = vld [vmem:[%s7266_s9 + $0x1d0] sm:$0xff]  }
 0x560   :  { %v3460_v14 = vmax.f32 %v3455_v2, 0.0  ;;  %v3597_v50 = vmax.f32 %v3592_v34, 0.0  ;;  %v5697_v18 = vld [vmem:[%s7266_s9 + $0x128] sm:$0xff]   ;;  %v5701_v61 = vld [vmem:[%s7266_s9 + $0x130] sm:$0xff]   ;;  %v5703_v1 = vld [vmem:[%s7266_s9 + $0x178] sm:$0xff]  }
 0x561   :  { %v3461_v7 = vpack.c.bf16 %v3459_v39, %v3459_v39  ;;  %v3598_v19 = vpack.c.bf16 %v3596_v6, %v3596_v6  ;;  %v5704_v2 = vld [vmem:[%s7266_s9 + $0x1d8] sm:$0xff]   ;;  %v5707_v38 = vld [vmem:[%s7266_s9 + $0x1e0] sm:$0xff]   ;;  %v5709_v6 = vld [vmem:[%s7266_s9 + $0x1e8] sm:$0xff]  }
 0x562   :  { %v3462_v57 = vpack.c.bf16 %v3460_v14, %v3460_v14  ;;  %v3599_v46 = vpack.c.bf16 %v3597_v50, %v3597_v50  ;;  %v5705_v34 = vld [vmem:[%s7266_s9 + $0x138] sm:$0xff]   ;;  %v5708_v39 = vld [vmem:[%s7266_s9 + $0x1a0] sm:$0xff]   ;;  %v5710_v47 = vld [vmem:[%s7266_s9 + $0x1a8] sm:$0xff]  }
 0x563   :  { %v5706_v35 = vld [vmem:[%s7266_s9 + $0x198] sm:$0xff]   ;;  %v5711_v13 = vld [vmem:[%s7266_s9 + $0x1f0] sm:$0xff]  }
 0x564   :  { %3760 = vmatprep.mubr.bf16.mxu0 %v3599_v46  ;;  %3896 = vmatprep.mubr.bf16.mxu1 %v3462_v57  ;;  %v5712_v14 = vld [vmem:[%s7266_s9 + $0x1b0] sm:$0xff]   ;;  %v5713_v50 = vld [vmem:[%s7266_s9 + $0x1f8] sm:$0xff]  }
 0x565   :  { %3761 = vmatmul.mubr.bf16.vlgmr.msra.gmra.mrb[132].mxu0 %v3598_v19  ;;  %3897 = vmatmul.mubr.bf16.vlgmr.msra.gmra.mrb[88].mxu1 %v3461_v7 }
 0x566   :  { %3965 = vmatpush1.bf16.msra.mxu0 %v4880_v32  ;;  %3996 = vmatprep.mubr.bf16.mxu0 %v5737_v0  ;;  %v4912_v32 = vcombine.high %v4184_v40, %v4185_v41 }
 0x567   :  { %3966 = vmatprep.subr.bf16.mxu0 %v4883_v20  ;;  %5198 = vmatpush3.bf16.msra.mxu1 %v5684_v21 }
 0x568   :  { %5199 = vmatprep.subr.bf16.mxu1 %v5685_v10 }
 0x56a   :  { %3967 = vmatpush1.bf16.msra.mxu0 %v4882_v63 }
 0x56b   :  { %3968 = vmatprep.subr.bf16.mxu0 %v4885_v22  ;;  %5200 = vmatpush3.bf16.msra.mxu1 %v5686_v33  ;;  %v3912_v22 = vld [vmem:[%s7268_s8 + $0x4] sm:$0x3] }
 0x56c   :  { %v3917_v33 = vrot.slane %v3912_v22, %v7088_v53  ;;  %v3921_v37 = vrot.slane %v3912_v22, %v7096_v26 }
 0x56e   :  { %3969 = vmatpush1.bf16.msra.mxu0 %v4884_v42 }
 0x56f   :  { %3970 = vmatprep.subr.bf16.mxu0 %v4887_v51 }
 0x572   :  { %3971 = vmatpush1.bf16.msra.mxu0 %v4886_v3 }
 0x573   :  { %4238 = vmatprep.subr.bf16.mxu0 %v4906_v12 }
 0x575   :  { %4888 = vmatmul.mubr.msk.bf16.vlgmr.msra.gmra.mrb[136].mxu0 %vm2688_vm7, %v6989_v4 }
 0x576   :  { %4239 = vmatpush1.bf16.msra.mxu0 %v4905_v29  ;;  %4270 = vmatprep.mubr.bf16.mxu0 %v5737_v0  ;;  %v5687_v0 = vld [vmem:[%s7266_s9 + $0x150] sm:$0xff]  }
 0x577   :  { %4240 = vmatprep.subr.bf16.mxu0 %v4908_v30  ;;  %5201 = vmatprep.subr.bf16.mxu1 %v5687_v0  ;;  %v4186_v30 = vld [vmem:[%s7268_s8 + $0x6] sm:$0x3] }
 0x578   :  { %5202 = vmatpush3.bf16.msra.mxu1 %v5688_v49  ;;  %v4191_v17 = vrot.slane %v4186_v30, %v7088_v53  ;;  %v4195_v31 = vrot.slane %v4186_v30, %v7096_v26 }
 0x579   :  { %5203 = vmatprep.subr.bf16.mxu1 %v5689_v48 }
 0x57a   :  { %4241 = vmatpush1.bf16.msra.mxu0 %v4907_v36 }
 0x57b   :  { %4242 = vmatprep.subr.bf16.mxu0 %v4910_v9 }
 0x57c   :  { %5204 = vmatpush3.bf16.msra.mxu1 %v5690_v52 }
 0x57d   :  { %5205 = vmatprep.subr.bf16.mxu1 %v5691_v58 }
 0x57e   :  { %4243 = vmatpush1.bf16.msra.mxu0 %v4909_v43 }
 0x57f   :  { %4244 = vmatprep.subr.bf16.mxu0 %v4912_v32 }
 0x580   :  { %5206 = vmatpush3.bf16.msra.mxu1 %v5693_v11 }
 0x581   :  { %5207 = vmatprep.subr.bf16.mxu1 %v5695_v16 }
 0x582   :  { %4245 = vmatpush1.bf16.msra.mxu0 %v4911_v45 }
 0x584   :  { %5208 = vmatpush3.bf16.msra.mxu1 %v5697_v18  ;;  %v4930_v18 = vld [vmem:[%s7269_s10] ss:$0 sm:$0xff] }
 0x585   :  { %4913 = vmatmul.mubr.msk.bf16.vlgmr.msra.gmra.mrb[140].mxu0 %vm2688_vm7, %v6989_v4  ;;  %v5692_v4 = vld [vmem:[%s7266_s9 + $0x1c0] sm:$0xff]   ;;  %5209 = vmatprep.subr.bf16.mxu1 %v5699_v27 }
 0x586   :  { %5219 = vmatprep.subr.bf16.mxu0 %v5692_v4 }
 0x587   :  { %5220 = vmatpush3.bf16.msra.mxu0 %v5694_v54 }
 0x588   :  { %5221 = vmatprep.subr.bf16.mxu0 %v5696_v59  ;;  %5210 = vmatpush3.bf16.msra.mxu1 %v5701_v61 }
 0x589   :  { %5211 = vmatprep.subr.bf16.mxu1 %v5703_v1 }
 0x58b   :  { %5222 = vmatpush3.bf16.msra.mxu0 %v5698_v8 }
 0x58c   :  { %5223 = vmatprep.subr.bf16.mxu0 %v5700_v28  ;;  %5212 = vmatpush3.bf16.msra.mxu1 %v5705_v34 }
 0x58f   :  { %5224 = vmatpush3.bf16.msra.mxu0 %v5702_v44 }
 0x590   :  { %5225 = vmatprep.subr.bf16.mxu0 %v5704_v2 }
 0x593   :  { %5226 = vmatpush3.bf16.msra.mxu0 %v5706_v35 }
 0x594   :  { %5227 = vmatprep.subr.bf16.mxu0 %v5707_v38 }
 0x597   :  { %5228 = vmatpush3.bf16.msra.mxu0 %v5708_v39 }
 0x598   :  { %5229 = vmatprep.subr.bf16.mxu0 %v5709_v6 }
 0x59b   :  { %5230 = vmatpush3.bf16.msra.mxu0 %v5710_v47 }
 0x59c   :  { %5231 = vmatprep.subr.bf16.mxu0 %v5711_v13 }
 0x59f   :  { %5232 = vmatpush3.bf16.msra.mxu0 %v5712_v14 }
 0x5a0   :  { %5233 = vmatprep.subr.bf16.mxu0 %v5713_v50 }
 0x5a3   :  { %5234 = vmatpush3.bf16.msra.mxu0 %v5714_v15 }
 0x638   :  { %v5169_v55 = vpop.f32.mrb[132].mxu0  ;;  %v5191_v57 = vpop.f32.mrb[88].mxu1 }
 0x639   :  { %v5170_v46 = vpop.f32.mrb[133].mxu0  ;;  %v5192_v7 = vpop.f32.mrb[89].mxu1 }
 0x63a   :  { %v5171_v19 = vadd.f32 %v5170_v46, %v5169_v55  ;;  %v5193_v20 = vadd.f32 %v5192_v7, %v5191_v57  ;;  %v5172_v21 = vpop.f32.mrb[134].mxu0  ;;  %v5194_v23 = vpop.f32.mrb[90].mxu1 }
 0x63b   :  { %v5173_v60 = vpop.f32.mrb[135].mxu0  ;;  %v5195_v10 = vpop.f32.mrb[91].mxu1 }
 0x63c   :  { %v3899_v63 = vadd.f32 %v5193_v20, %v5171_v19 }
 0x648   :  { %v3998_v5 = vpop.f32.mrb[136].mxu0 }
 0x649   :  { %v3999_v42 = vadd.f32 %v3998_v5, %v3917_v33  ;;  %v4000_v51 = vpop.f32.mrb[137].mxu0 }
 0x64a   :  { %v4001_v56 = vadd.f32 %v4000_v51, %v3921_v37  ;;  %v4002_v62 = vpop.f32.mrb[138].mxu0 }
 0x64b   :  { %v4005_v3 = vmax.f32 %v3999_v42, 0.0  ;;  %v4003_v12 = vpop.f32.mrb[139].mxu0 }
 0x64c   :  { %v4006_v24 = vmax.f32 %v4001_v56, 0.0 }
 0x64d   :  { %v4007_v29 = vpack.c.bf16 %v4005_v3, %v4005_v3 }
 0x64e   :  { %v4008_v25 = vpack.c.bf16 %v4006_v24, %v4006_v24 }
 0x650   :  { %4169 = vmatprep.mubr.bf16.mxu1 %v4008_v25 }
 0x651   :  { %4170 = vmatmul.mubr.bf16.vlgmr.msra.gmra.mrb[92].mxu1 %v4007_v29 }
 0x658   :  { %v4272_v36 = vpop.f32.mrb[140].mxu0 }
 0x659   :  { %v4273_v9 = vadd.f32 %v4272_v36, %v4191_v17  ;;  %v4274_v40 = vpop.f32.mrb[141].mxu0 }
 0x65a   :  { %v4275_v41 = vadd.f32 %v4274_v40, %v4195_v31  ;;  %v4276_v43 = vpop.f32.mrb[142].mxu0 }
 0x65b   :  { %v4279_v32 = vmax.f32 %v4273_v9, 0.0  ;;  %v4277_v45 = vpop.f32.mrb[143].mxu0 }
 0x65c   :  { %v4280_v0 = vmax.f32 %v4275_v41, 0.0 }
 0x65d   :  { %v4281_v48 = vpack.c.bf16 %v4279_v32, %v4279_v32 }
 0x65e   :  { %v4282_v49 = vpack.c.bf16 %v4280_v0, %v4280_v0 }
 0x660   :  { %4443 = vmatprep.mubr.bf16.mxu0 %v4282_v49 }
 0x661   :  { %4444 = vmatmul.mubr.bf16.vlgmr.msra.gmra.mrb[144].mxu0 %v4281_v48 }
 0x724   :  { %v5213_v52 = vpop.f32.mrb[92].mxu1 }
 0x725   :  { %v5214_v4 = vpop.f32.mrb[93].mxu1 }
 0x726   :  { %v5215_v54 = vadd.f32 %v5214_v4, %v5213_v52  ;;  %v5216_v58 = vpop.f32.mrb[94].mxu1 }
 0x727   :  { %v5217_v59 = vpop.f32.mrb[95].mxu1 }
 0x728   :  { %v4177_v53 = vadd.f32 %v5215_v54, %v3899_v63 }
 0x734   :  { %v5235_v8 = vpop.f32.mrb[144].mxu0 }
 0x735   :  { %v5236_v26 = vpop.f32.mrb[145].mxu0 }
 0x736   :  { %v5237_v11 = vadd.f32 %v5236_v26, %v5235_v8  ;;  %v5238_v16 = vpop.f32.mrb[146].mxu0 }
 0x737   :  { %v5239_v27 = vpop.f32.mrb[147].mxu0 }
 0x738   :  { %v4451_v28 = vadd.f32 %v5237_v11, %v4177_v53 }
 0x73a   :  { %v4459_v61 = vadd.f32 %v4930_v18, %v4451_v28 }
 0x73c   :  { %4460 = vst [vmem:[%s7270_s11] sm:$0xff] %v4459_v61 }

</bundles_post_ra>
